<compile_context>
chip_gen: v5e
topology: v5e:2x2
jax: 0.10.0
libtpu: 0.0.40
codegen_flags: <defaults>
</compile_context>

<pallas_src>
import functools

import jax
import jax.numpy as jnp
from jax import lax
from jax.experimental import pallas as pl
from jax.experimental.pallas import tpu as pltpu


# ---------------------------------------------------------------------------
# Pallas kernel: `gps` channel-GROUPS per grid step (independent chains)
# ---------------------------------------------------------------------------
def _lstm_group_kernel(*refs, gh, num_layers, seq_len, batch, gps, tchunk,
                       mxu_dtype):
    """One grid step = gps channel groups (block-diagonal weights), full sequence.

    Ref shapes (leading dim = gps groups processed this step):
      patches_ref : (gps, Y*B, G*P)           rows (y, b), lanes (g, p), mxu dtype
      w_ih0_ref   : (gps, G*P, 4*G*H)         block-diag, gate-major cols, mxu dtype
      w_ihr_ref   : (gps, NL-1, G*H, 4*G*H)   only when num_layers > 1
      w_hh_ref    : (gps, NL, G*H, 4*G*H)
      b_ref       : (gps, NL, 1, 4*G*H)       b_ih + b_hh, gate-major, f32
      fc_w_ref    : (gps, G*H, G*P)           block-diag, channel-major, mxu dtype
      fc_b_ref    : (gps, 1, G*P)             f32
      out_ref     : (gps, Y*B, G*P)           f32
    Scratch:
      h_scr, c_scr : (gps, B, G*H)            f32
      seq_scr      : (gps, Y*B, G*H)          mxu dtype (only ever a matmul operand)
      gates_scr    : (gps, tchunk*B, 4*G*H)   f32, bounded time-chunked slab
    """
    GH, Y, B, NL = gh, seq_len, batch, num_layers
    if NL > 1:
        (patches_ref, w_ih0_ref, w_ihr_ref, w_hh_ref, b_ref,
         fc_w_ref, fc_b_ref, out_ref,
         h_scr, c_scr, seq_scr, gates_scr) = refs
    else:
        (patches_ref, w_ih0_ref, w_hh_ref, b_ref,
         fc_w_ref, fc_b_ref, out_ref,
         h_scr, c_scr, seq_scr, gates_scr) = refs
        w_ihr_ref = None

    for l in range(NL):                                # static unroll over layers
        # recurrent weights / bias for this layer, loaded once per (group, layer)
        w_hh_l = [w_hh_ref[j, l] for j in range(gps)]  # each (GH, 4GH), mxu dtype
        b_l = [b_ref[j, l] for j in range(gps)]        # each (1, 4GH), f32

        for j in range(gps):
            h_scr[j, :, :] = jnp.zeros((B, GH), jnp.float32)
            c_scr[j, :, :] = jnp.zeros((B, GH), jnp.float32)

        # ---- time-chunked hoisted input projection + serial recurrence ----
        for c0 in range(0, Y, tchunk):                 # static chunk loop
            cs = min(tchunk, Y - c0)
            rows_in = pl.ds(c0 * B, cs * B)            # rows in patches/seq
            rows_gs = pl.ds(0, cs * B)                 # rows in gates slab

            # hoisted x @ W_ih (+ bias) for the whole chunk: one MXU pass / group
            for j in range(gps):
                if l == 0:
                    x_chunk = patches_ref[j, rows_in, :]       # (cs*B, GP)
                    w_in = w_ih0_ref[j]                        # (GP, 4GH)
                else:
                    x_chunk = seq_scr[j, rows_in, :]           # (cs*B, GH)
                    w_in = w_ihr_ref[j, l - 1]                 # (GH, 4GH)
                gates_scr[j, rows_gs, :] = (
                    jnp.dot(x_chunk, w_in,
                            preferred_element_type=jnp.float32)
                    + b_l[j])                                  # (cs*B, 4GH) f32

            # serial recurrence: only h @ W_hh is on the critical path; when
            # gps == 2 the two chains are independent and interleave on the MXU.
            for t in range(cs):                        # static unroll (Y small)
                rg = pl.ds(t * B, B)
                rs = pl.ds((c0 + t) * B, B)
                for j in range(gps):
                    g_pre = gates_scr[j, rg, :] + jnp.dot(
                        h_scr[j, :, :].astype(mxu_dtype), w_hh_l[j],
                        preferred_element_type=jnp.float32)    # (B, 4GH) f32
                    # gate-major columns: [ i | f | g | o ], each GH lanes wide
                    i_g = jax.nn.sigmoid(g_pre[:, 0 * GH:1 * GH])
                    f_g = jax.nn.sigmoid(g_pre[:, 1 * GH:2 * GH])
                    g_g = jnp.tanh(g_pre[:, 2 * GH:3 * GH])
                    o_g = jax.nn.sigmoid(g_pre[:, 3 * GH:4 * GH])
                    c_new = f_g * c_scr[j, :, :] + i_g * g_g   # f32 cell state
                    h_new = o_g * jnp.tanh(c_new)
                    c_scr[j, :, :] = c_new
                    h_scr[j, :, :] = h_new
                    seq_scr[j, rs, :] = h_new.astype(mxu_dtype)

    # ---- per-channel FC over all timesteps: one matmul, one store per group ----
    for j in range(gps):
        out_ref[j, :, :] = (
            jnp.dot(seq_scr[j, :, :], fc_w_ref[j],
                    preferred_element_type=jnp.float32)
            + fc_b_ref[j, :, :]).astype(out_ref.dtype)


# ---------------------------------------------------------------------------
# VMEM budgeting / tiling heuristics
# ---------------------------------------------------------------------------
def _vmem_limit_bytes(NL, Y, B, GH, GP, gps, tchunk, mxu_dtype):
    """Scoped-VMEM request: double-buffered I/O blocks + scratch, with headroom."""
    it = jnp.dtype(mxu_dtype).itemsize
    f4 = 4
    YB = Y * B
    GH4 = 4 * GH
    in_bytes = gps * YB * GP * it                      # patches block
    in_bytes += gps * GP * GH4 * it                    # w_ih layer 0
    if NL > 1:
        in_bytes += gps * (NL - 1) * GH * GH4 * it     # w_ih layers >= 1
    in_bytes += gps * NL * GH * GH4 * it               # w_hh
    in_bytes += gps * NL * 1 * GH4 * f4                # bias
    in_bytes += gps * GH * GP * it                     # fc weight
    in_bytes += gps * 1 * GP * f4                      # fc bias
    out_bytes = gps * YB * GP * f4
    scratch = (2 * gps * B * GH * f4                   # h, c
               + gps * YB * GH * it                    # seq
               + gps * tchunk * B * GH4 * f4)          # gates slab
    need = 2 * (in_bytes + out_bytes) + scratch        # BlockSpec double-buffering
    limit = int(need * 1.5) + (1 << 20)                # headroom
    return int(min(64 << 20, max(32 << 20, limit)))    # v7x-safe cap, sane floor


def _pick_tchunk(Y, B, GH, gps, budget_bytes=8 << 20):
    """Largest time-chunk whose f32 gate slab fits the budget (bounds gates_scr)."""
    per_t = max(1, gps * B * 4 * GH * 4)
    return int(max(1, min(Y, budget_bytes // per_t)))


def _default_lane_cap():
    """MXU contraction-depth target: 256 on v6e/v7x (2x256x256 MXU), 128 otherwise."""
    try:
        kind = jax.devices()[0].device_kind.lower()
    except Exception:
        return 128
    return 256 if ("v6" in kind or "v7" in kind) else 128


def _pick_group(C, H, lane_cap):
    """Largest divisor G of C with G*H <= lane_cap, stepped down so NG = C/G >= 2
    when possible (lets the 'parallel' group axis split across v7x's two TCs)."""
    max_g = max(1, lane_cap // max(H, 1))
    g = 1
    for cand in range(1, min(C, max_g) + 1):
        if C % cand == 0:
            g = cand
    while C // g < 2 and g > 1:
        nxt = 1
        for cand in range(1, g):
            if C % cand == 0:
                nxt = cand
        if nxt == g:
            break
        g = nxt
    return g


# ---------------------------------------------------------------------------
# pallas_call wrapper
# ---------------------------------------------------------------------------
def channelwise_lstm_pallas(patches, packed, *, hidden, num_layers, seq_len,
                            batch, group, gps, tchunk, mxu_dtype):
    NG, YB, GP = patches.shape
    NL, Y, B, G = num_layers, seq_len, batch, group
    GH = G * hidden
    GH4 = 4 * GH
    assert NG % gps == 0

    kernel = functools.partial(_lstm_group_kernel, gh=GH, num_layers=NL,
                               seq_len=Y, batch=B, gps=gps, tchunk=tchunk,
                               mxu_dtype=mxu_dtype)

    in_specs = [
        pl.BlockSpec((gps, YB, GP), lambda n: (n, 0, 0)),            # patches
        pl.BlockSpec((gps, GP, GH4), lambda n: (n, 0, 0)),           # w_ih layer 0
    ]
    inputs = [patches, packed["w_ih0"]]
    if NL > 1:                     # avoid DMAing a dummy tensor when NL == 1
        in_specs.append(pl.BlockSpec((gps, NL - 1, GH, GH4),
                                     lambda n: (n, 0, 0, 0)))        # w_ih layers>=1
        inputs.append(packed["w_ihr"])
    in_specs += [
        pl.BlockSpec((gps, NL, GH, GH4), lambda n: (n, 0, 0, 0)),    # w_hh
        pl.BlockSpec((gps, NL, 1, GH4), lambda n: (n, 0, 0, 0)),     # bias
        pl.BlockSpec((gps, GH, GP), lambda n: (n, 0, 0)),            # fc weight
        pl.BlockSpec((gps, 1, GP), lambda n: (n, 0, 0)),             # fc bias
    ]
    inputs += [packed["w_hh"], packed["b"], packed["fc_w"], packed["fc_b"]]

    vmem_limit = _vmem_limit_bytes(NL, Y, B, GH, GP, gps, tchunk, mxu_dtype)

    return pl.pallas_call(
        kernel,
        out_shape=jax.ShapeDtypeStruct((NG, YB, GP), jnp.float32),
        grid_spec=pltpu.PrefetchScalarGridSpec(
            num_scalar_prefetch=0,
            grid=(NG // gps,),
            in_specs=in_specs,
            out_specs=pl.BlockSpec((gps, YB, GP), lambda n: (n, 0, 0)),
            scratch_shapes=[
                pltpu.VMEM((gps, B, GH), jnp.float32),           # h
                pltpu.VMEM((gps, B, GH), jnp.float32),           # c (f32 cell state)
                pltpu.VMEM((gps, YB, GH), mxu_dtype),            # layer output sequence
                pltpu.VMEM((gps, tchunk * B, GH4), jnp.float32), # bounded gate slab
            ],
        ),
        # group blocks are fully independent -> "parallel" lets Mosaic split the
        # grid across v7x's two TensorCores; neutral on v5e / v6e.
        compiler_params=pltpu.CompilerParams(
            dimension_semantics=("parallel",),
            vmem_limit_bytes=vmem_limit),
    )(*inputs)


# ---------------------------------------------------------------------------
# Host-side weight packing: block-diagonal, gate-major channel groups
# ---------------------------------------------------------------------------
def _block_diag_gate_major(w_t):
    """(G, Din, 4H) transposed per-channel weights -> (G*Din, 4*G*H) block diagonal,
    columns ordered gate-major: [i(ch0..chG-1) | f(...) | g(...) | o(...)]."""
    G, din, four_h = w_t.shape
    H = four_h // 4
    w4 = w_t.reshape(G, din, 4, H)
    eye = jnp.eye(G, dtype=w_t.dtype)
    big = jnp.einsum("gdkh,gj->gdkjh", w4, eye)      # nonzero only where j == g
    return big.reshape(G * din, 4 * G * H)


def _block_diag(w_t):
    """(G, A, B) -> (G*A, G*B) block diagonal (channel-major rows and columns)."""
    G, a, b = w_t.shape
    eye = jnp.eye(G, dtype=w_t.dtype)
    big = jnp.einsum("gab,gj->gajb", w_t, eye)
    return big.reshape(G * a, G * b)


def _bias_gate_major(b):
    """(G, 4H) -> (4*G*H,) gate-major, matching the block-diag weight columns."""
    G, four_h = b.shape
    H = four_h // 4
    return jnp.transpose(b.reshape(G, 4, H), (1, 0, 2)).reshape(4 * G * H)


def pack_params(p, group, num_layers, mxu_dtype=jnp.bfloat16):
    C = p["fc_b"].shape[0]
    G = group
    NG = C // G

    w_ih0_t = jnp.swapaxes(p["w_ih0"], -1, -2)           # (C, P, 4H)
    w_hh_t = jnp.swapaxes(p["w_hh"], -1, -2)             # (C, NL, H, 4H)
    fc_w_t = jnp.swapaxes(p["fc_w"], -1, -2)             # (C, H, P)
    bias = p["b_ih"] + p["b_hh"]                         # (C, NL, 4H)

    def grp(a):                                          # (C, ...) -> (NG, G, ...)
        return a.reshape(NG, G, *a.shape[1:])

    packed = {
        # MXU operands in mxu_dtype (bf16 default); biases stay f32.
        "w_ih0": jax.vmap(_block_diag_gate_major)(grp(w_ih0_t)).astype(mxu_dtype),
        "w_hh": jax.vmap(jax.vmap(_block_diag_gate_major))(
            jnp.swapaxes(grp(w_hh_t), 1, 2)).astype(mxu_dtype),     # (NG, NL, GH, 4GH)
        "b": jax.vmap(jax.vmap(_bias_gate_major))(
            jnp.swapaxes(grp(bias), 1, 2))[:, :, None, :],          # (NG, NL, 1, 4GH)
        "fc_w": jax.vmap(_block_diag)(grp(fc_w_t)).astype(mxu_dtype),  # (NG, GH, G*P)
        "fc_b": grp(p["fc_b"]).reshape(NG, 1, -1),                  # (NG, 1, G*P) f32
    }
    if num_layers > 1:
        w_ihr_t = jnp.swapaxes(p["w_ihr"], -1, -2)       # (C, NL-1, H, 4H)
        packed["w_ihr"] = jax.vmap(jax.vmap(_block_diag_gate_major))(
            jnp.swapaxes(grp(w_ihr_t), 1, 2)).astype(mxu_dtype)     # (NG, NL-1, GH, 4GH)
    return packed


# ---------------------------------------------------------------------------
# Full forward (vectorized glue + kernel)
# ---------------------------------------------------------------------------
def channelwise_lstm_forward(x, params, patch_size, stride, hidden, num_layers,
                             mxu_dtype=jnp.bfloat16, lane_cap=None,
                             groups_per_step=None):
    B, C, L = x.shape
    P, S = patch_size, stride
    Y = (L - P) // S + 1

    if lane_cap is None:
        lane_cap = _default_lane_cap()
    G = _pick_group(C, hidden, lane_cap)
    NG = C // G
    if groups_per_step is None:
        # two interleaved dependence chains per step, but only if the grid still
        # has >= 2 steps afterwards (so v7x can split groups across its two TCs)
        gps = 2 if (NG % 2 == 0 and NG // 2 >= 2) else 1
    else:
        gps = groups_per_step
    assert NG % gps == 0, (NG, gps)
    tchunk = _pick_tchunk(Y, B, G * hidden, gps)

    # --- vectorized Build_Patches for all channels at once: (B, C, Y, P) ---
    idx = jnp.arange(Y)[:, None] * S + jnp.arange(P)[None, :]
    patches = x[:, :, idx]

    # --- channel-group packing: rows (y, b), lanes (g, p); mxu dtype input ---
    pk = (patches.reshape(B, NG, G, Y, P)
          .transpose(1, 3, 0, 2, 4)                 # (NG, Y, B, G, P)
          .reshape(NG, Y * B, G * P)).astype(mxu_dtype)

    packed = pack_params(params, G, num_layers, mxu_dtype)
    out_flat = channelwise_lstm_pallas(
        pk, packed, hidden=hidden, num_layers=num_layers, seq_len=Y, batch=B,
        group=G, gps=gps, tchunk=tchunk, mxu_dtype=mxu_dtype)

    # --- unpack: (NG, Y*B, G*P) -> (B, C, Y, P) ---
    out_patches = (out_flat.reshape(NG, Y, B, G, P)
                   .transpose(2, 0, 3, 1, 4)         # (B, NG, G, Y, P)
                   .reshape(B, C, Y, P))

    # --- vectorized Restore_Patches (overwrite semantics, zero fill) ---
    if S == P and Y * P == L:
        return out_patches.reshape(B, C, L)          # non-overlapping: pure reshape
    out = jnp.zeros((B, C, L), out_patches.dtype)
    for i in range(Y):
        out = out.at[:, :, i * S:i * S + P].set(out_patches[:, :, i, :])
    return out


# ---------------------------------------------------------------------------
# Parameters (deterministic, PyTorch-shaped)
# ---------------------------------------------------------------------------
def init_params(key, C, P, H, NL):
    ks = jax.random.split(key, 7)
    bound = 1.0 / float(H) ** 0.5     # matches nn.LSTM / nn.Linear(H, P) bound
    u = lambda k, s: jax.random.uniform(k, s, jnp.float32, -bound, bound)
    params = {
        "w_ih0": u(ks[0], (C, 4 * H, P)),                 # layer-0 W_ih
        "w_hh":  u(ks[2], (C, NL, 4 * H, H)),
        "b_ih":  u(ks[3], (C, NL, 4 * H)),
        "b_hh":  u(ks[4], (C, NL, 4 * H)),
        "fc_w":  u(ks[5], (C, P, H)),
        "fc_b":  u(ks[6], (C, P)),
    }
    if NL > 1:
        params["w_ihr"] = u(ks[1], (C, NL - 1, 4 * H, H)) # layers>=1 W_ih
    return params


# ---------------------------------------------------------------------------
# Pure-JAX reference (mirrors the PyTorch module exactly) for a self-check
# ---------------------------------------------------------------------------
def _ref_build_patches(ch, patch_size, stride):
    B, L = ch.shape
    Y = (L - patch_size) // stride + 1
    return jnp.stack(
        [ch[:, i * stride:i * stride + patch_size] for i in range(Y)], axis=1)


def _ref_restore_patches(patches, original_length, stride):
    B, Y, P = patches.shape
    out = jnp.zeros((B, original_length), dtype=patches.dtype)
    for i in range(Y):
        out = out.at[:, i * stride:i * stride + P].set(patches[:, i, :])
    return out


def ref_forward(x, params, patch_size, stride, hidden, num_layers):
    B, C, L = x.shape
    H = hidden
    outs = []
    for ci in range(C):
        patches = _ref_build_patches(x[:, ci, :], patch_size, stride)  # (B, Y, P)
        seq = jnp.swapaxes(patches, 0, 1)                              # (Y, B, P)
        for l in range(num_layers):
            w_ih = params["w_ih0"][ci] if l == 0 else params["w_ihr"][ci, l - 1]
            w_hh = params["w_hh"][ci, l]
            bias = params["b_ih"][ci, l] + params["b_hh"][ci, l]

            def step(carry, x_t, w_ih=w_ih, w_hh=w_hh, bias=bias):
                h, c = carry
                gates = x_t @ w_ih.T + h @ w_hh.T + bias
                i_g = jax.nn.sigmoid(gates[:, 0 * H:1 * H])
                f_g = jax.nn.sigmoid(gates[:, 1 * H:2 * H])
                g_g = jnp.tanh(gates[:, 2 * H:3 * H])
                o_g = jax.nn.sigmoid(gates[:, 3 * H:4 * H])
                c = f_g * c + i_g * g_g
                h = o_g * jnp.tanh(c)
                return (h, c), h

            init = (jnp.zeros((B, H), jnp.float32),
                    jnp.zeros((B, H), jnp.float32))
            _, seq = lax.scan(step, init, seq)                         # (Y, B, H)
        fc_out = (jnp.swapaxes(seq, 0, 1) @ params["fc_w"][ci].T
                  + params["fc_b"][ci])                                # (B, Y, P)
        outs.append(_ref_restore_patches(fc_out, L, stride))
    return jnp.stack(outs, axis=1)


if __name__ == "__main__":
    key = jax.random.PRNGKey(0)
    k1, k2 = jax.random.split(key)

    # ---------- Config 1: module-consistent small shapes (NL=2) ----------
    B, C, L = 2, 4, 32
    patch_size = 4
    stride = patch_size        # module default (stride=None -> patch_size)
    hidden = 32
    num_layers = 2
    kx, kp = jax.random.split(k1)
    x = jax.random.normal(kx, (B, C, L), dtype=jnp.float32)
    params = init_params(kp, C, patch_size, hidden, num_layers)
    ref = ref_forward(x, params, patch_size, stride, hidden, num_layers)

    # exact f32 path: proves the packing / recurrence math against the reference
    fwd_f32 = jax.jit(functools.partial(
        channelwise_lstm_forward, patch_size=patch_size, stride=stride,
        hidden=hidden, num_layers=num_layers, mxu_dtype=jnp.float32))
    out32 = jax.block_until_ready(fwd_f32(x, params))
    assert out32.shape == (B, C, L)
    err32 = float(jnp.max(jnp.abs(out32 - ref)))
    assert err32 < 1e-4, f"f32 max_err={err32}"

    # performance path: bf16 MXU operands, f32 accumulation / cell state
    fwd_bf16 = jax.jit(functools.partial(
        channelwise_lstm_forward, patch_size=patch_size, stride=stride,
        hidden=hidden, num_layers=num_layers, mxu_dtype=jnp.bfloat16))
    out16 = jax.block_until_ready(fwd_bf16(x, params))
    err16 = float(jnp.max(jnp.abs(out16 - ref)))
    assert err16 < 1e-1, f"bf16 max_err={err16}"

    # ---------- Config 2: exercises NL=1 and the 2-chain (gps=2) path ----------
    B2, C2, L2 = 2, 8, 32
    P2, H2, NL2 = 4, 16, 1
    kx2, kp2 = jax.random.split(k2)
    x2 = jax.random.normal(kx2, (B2, C2, L2), dtype=jnp.float32)
    params2 = init_params(kp2, C2, P2, H2, NL2)
    ref2 = ref_forward(x2, params2, P2, P2, H2, NL2)
    fwd2 = jax.jit(functools.partial(
        channelwise_lstm_forward, patch_size=P2, stride=P2, hidden=H2,
        num_layers=NL2, mxu_dtype=jnp.float32, lane_cap=32, groups_per_step=2))
    out2 = jax.block_until_ready(fwd2(x2, params2))
    err2 = float(jnp.max(jnp.abs(out2 - ref2)))
    assert err2 < 1e-4, f"gps=2 max_err={err2}"

    print("KERNEL_OK")
</pallas_src>

<mosaic_0001>
module attributes {stable_mosaic.version = 11 : i64} {
  func.func @_lstm_group_kernel(%arg0: i32, %arg1: memref<1x16x8xf32, #tpu.memory_space<vmem>>, %arg2: memref<1x8x256xf32, #tpu.memory_space<vmem>>, %arg3: memref<1x1x64x256xf32, #tpu.memory_space<vmem>>, %arg4: memref<1x2x64x256xf32, #tpu.memory_space<vmem>>, %arg5: memref<1x2x1x256xf32, #tpu.memory_space<vmem>>, %arg6: memref<1x64x8xf32, #tpu.memory_space<vmem>>, %arg7: memref<1x1x8xf32, #tpu.memory_space<vmem>>, %arg8: memref<1x16x8xf32, #tpu.memory_space<vmem>>, %arg9: memref<1x2x64xf32, #tpu.memory_space<vmem>>, %arg10: memref<1x2x64xf32, #tpu.memory_space<vmem>>, %arg11: memref<1x16x64xf32, #tpu.memory_space<vmem>>, %arg12: memref<1x16x256xf32, #tpu.memory_space<vmem>>) attributes {dimension_semantics = [#tpu.dimension_semantics<parallel>], iteration_bounds = array<i64: 2>, scalar_prefetch = 0 : i64, scratch_operands = 4 : i64, tpu.core_type = #tpu.core_type<tc>, window_params = [{transform_indices = @transform_0, window_bounds = array<i64: 1, 16, 8>}, {transform_indices = @transform_1, window_bounds = array<i64: 1, 8, 256>}, {transform_indices = @transform_2, window_bounds = array<i64: 1, 1, 64, 256>}, {transform_indices = @transform_3, window_bounds = array<i64: 1, 2, 64, 256>}, {transform_indices = @transform_4, window_bounds = array<i64: 1, 2, 1, 256>}, {transform_indices = @transform_5, window_bounds = array<i64: 1, 64, 8>}, {transform_indices = @transform_6, window_bounds = array<i64: 1, 1, 8>}, {transform_indices = @transform_7, window_bounds = array<i64: 1, 16, 8>}]} {
    %c0 = arith.constant 0 : index
    %c0_0 = arith.constant 0 : index
    %c0_1 = arith.constant 0 : index
    %c0_2 = arith.constant 0 : index
    %0 = vector.load %arg4[%c0, %c0_0, %c0_1, %c0_2] : memref<1x2x64x256xf32, #tpu.memory_space<vmem>>, vector<1x1x64x256xf32>
    %1 = vector.shape_cast %0 : vector<1x1x64x256xf32> to vector<64x256xf32>
    %c0_3 = arith.constant 0 : index
    %c0_4 = arith.constant 0 : index
    %c0_5 = arith.constant 0 : index
    %c0_6 = arith.constant 0 : index
    %2 = vector.load %arg5[%c0_3, %c0_4, %c0_5, %c0_6] : memref<1x2x1x256xf32, #tpu.memory_space<vmem>>, vector<1x1x1x256xf32>
    %3 = vector.shape_cast %2 : vector<1x1x1x256xf32> to vector<1x256xf32>
    %cst = arith.constant 0.000000e+00 : f32
    %4 = vector.broadcast %cst : f32 to vector<2x64xf32>
    %c0_7 = arith.constant 0 : index
    %c0_8 = arith.constant 0 : index
    %c0_9 = arith.constant 0 : index
    %5 = vector.load %arg9[%c0_7, %c0_8, %c0_9] : memref<1x2x64xf32, #tpu.memory_space<vmem>>, vector<1x2x64xf32>
    %6 = vector.shape_cast %5 : vector<1x2x64xf32> to vector<2x64xf32>
    %7 = vector.shape_cast %4 : vector<2x64xf32> to vector<1x2x64xf32>
    tpu.vector_store %arg9[%c0_7, %c0_8, %c0_9], %7 {strides = array<i32>} : memref<1x2x64xf32, #tpu.memory_space<vmem>>, vector<1x2x64xf32>,
    %cst_10 = arith.constant 0.000000e+00 : f32
    %8 = vector.broadcast %cst_10 : f32 to vector<2x64xf32>
    %c0_11 = arith.constant 0 : index
    %c0_12 = arith.constant 0 : index
    %c0_13 = arith.constant 0 : index
    %9 = vector.load %arg10[%c0_11, %c0_12, %c0_13] : memref<1x2x64xf32, #tpu.memory_space<vmem>>, vector<1x2x64xf32>
    %10 = vector.shape_cast %9 : vector<1x2x64xf32> to vector<2x64xf32>
    %11 = vector.shape_cast %8 : vector<2x64xf32> to vector<1x2x64xf32>
    tpu.vector_store %arg10[%c0_11, %c0_12, %c0_13], %11 {strides = array<i32>} : memref<1x2x64xf32, #tpu.memory_space<vmem>>, vector<1x2x64xf32>,
    %c0_14 = arith.constant 0 : index
    %c0_15 = arith.constant 0 : index
    %c0_16 = arith.constant 0 : index
    %12 = vector.load %arg1[%c0_14, %c0_15, %c0_16] : memref<1x16x8xf32, #tpu.memory_space<vmem>>, vector<1x16x8xf32>
    %13 = vector.shape_cast %12 : vector<1x16x8xf32> to vector<16x8xf32>
    %c0_17 = arith.constant 0 : index
    %c0_18 = arith.constant 0 : index
    %c0_19 = arith.constant 0 : index
    %14 = vector.load %arg2[%c0_17, %c0_18, %c0_19] : memref<1x8x256xf32, #tpu.memory_space<vmem>>, vector<1x8x256xf32>
    %15 = vector.shape_cast %14 : vector<1x8x256xf32> to vector<8x256xf32>
    %cst_20 = arith.constant dense<0.000000e+00> : vector<16x256xf32>
    %16 = tpu.matmul %13, %15, %cst_20 {dimension_numbers = #tpu.dot_dimension_numbers<[1], [0], [0], [1], [0, 0, 1, 1], [], []>} : vector<16x8xf32>, vector<8x256xf32>, vector<16x256xf32> -> vector<16x256xf32>
    %17 = vector.broadcast %3 : vector<1x256xf32> to vector<16x256xf32>
    %18 = arith.addf %16, %17 : vector<16x256xf32>
    %c0_21 = arith.constant 0 : index
    %c0_22 = arith.constant 0 : index
    %c0_23 = arith.constant 0 : index
    %19 = vector.load %arg12[%c0_21, %c0_22, %c0_23] : memref<1x16x256xf32, #tpu.memory_space<vmem>>, vector<1x16x256xf32>
    %20 = vector.shape_cast %19 : vector<1x16x256xf32> to vector<16x256xf32>
    %21 = vector.shape_cast %18 : vector<16x256xf32> to vector<1x16x256xf32>
    tpu.vector_store %arg12[%c0_21, %c0_22, %c0_23], %21 {strides = array<i32>} : memref<1x16x256xf32, #tpu.memory_space<vmem>>, vector<1x16x256xf32>,
    %c0_24 = arith.constant 0 : index
    %c0_25 = arith.constant 0 : index
    %c0_26 = arith.constant 0 : index
    %22 = vector.load %arg12[%c0_24, %c0_25, %c0_26] : memref<1x16x256xf32, #tpu.memory_space<vmem>>, vector<1x2x256xf32>
    %23 = vector.shape_cast %22 : vector<1x2x256xf32> to vector<2x256xf32>
    %c0_27 = arith.constant 0 : index
    %c0_28 = arith.constant 0 : index
    %c0_29 = arith.constant 0 : index
    %24 = vector.load %arg9[%c0_27, %c0_28, %c0_29] : memref<1x2x64xf32, #tpu.memory_space<vmem>>, vector<1x2x64xf32>
    %25 = vector.shape_cast %24 : vector<1x2x64xf32> to vector<2x64xf32>
    %cst_30 = arith.constant dense<0.000000e+00> : vector<2x256xf32>
    %26 = tpu.matmul %25, %1, %cst_30 {dimension_numbers = #tpu.dot_dimension_numbers<[1], [0], [0], [1], [0, 0, 1, 1], [], []>} : vector<2x64xf32>, vector<64x256xf32>, vector<2x256xf32> -> vector<2x256xf32>
    %27 = arith.addf %23, %26 : vector<2x256xf32>
    %28 = vector.extract_strided_slice %27 {offsets = [0, 0], sizes = [2, 64], strides = [1, 1]} : vector<2x256xf32> to vector<2x64xf32>
    %29 = arith.negf %28 : vector<2x64xf32>
    %30 = math.exp %29 : vector<2x64xf32>
    %cst_31 = arith.constant 1.000000e+00 : f32
    %31 = vector.broadcast %cst_31 : f32 to vector<2x64xf32>
    %32 = arith.addf %31, %30 : vector<2x64xf32>
    %33 = arith.divf %31, %32 : vector<2x64xf32>
    %34 = vector.extract_strided_slice %27 {offsets = [0, 64], sizes = [2, 64], strides = [1, 1]} : vector<2x256xf32> to vector<2x64xf32>
    %35 = arith.negf %34 : vector<2x64xf32>
    %36 = math.exp %35 : vector<2x64xf32>
    %cst_32 = arith.constant 1.000000e+00 : f32
    %37 = vector.broadcast %cst_32 : f32 to vector<2x64xf32>
    %38 = arith.addf %37, %36 : vector<2x64xf32>
    %39 = arith.divf %37, %38 : vector<2x64xf32>
    %40 = vector.extract_strided_slice %27 {offsets = [0, 128], sizes = [2, 64], strides = [1, 1]} : vector<2x256xf32> to vector<2x64xf32>
    %41 = math.tanh %40 : vector<2x64xf32>
    %42 = vector.extract_strided_slice %27 {offsets = [0, 192], sizes = [2, 64], strides = [1, 1]} : vector<2x256xf32> to vector<2x64xf32>
    %43 = arith.negf %42 : vector<2x64xf32>
    %44 = math.exp %43 : vector<2x64xf32>
    %cst_33 = arith.constant 1.000000e+00 : f32
    %45 = vector.broadcast %cst_33 : f32 to vector<2x64xf32>
    %46 = arith.addf %45, %44 : vector<2x64xf32>
    %47 = arith.divf %45, %46 : vector<2x64xf32>
    %c0_34 = arith.constant 0 : index
    %c0_35 = arith.constant 0 : index
    %c0_36 = arith.constant 0 : index
    %48 = vector.load %arg10[%c0_34, %c0_35, %c0_36] : memref<1x2x64xf32, #tpu.memory_space<vmem>>, vector<1x2x64xf32>
    %49 = vector.shape_cast %48 : vector<1x2x64xf32> to vector<2x64xf32>
    %50 = arith.mulf %39, %49 : vector<2x64xf32>
    %51 = arith.mulf %33, %41 : vector<2x64xf32>
    %52 = arith.addf %50, %51 : vector<2x64xf32>
    %53 = math.tanh %52 : vector<2x64xf32>
    %54 = arith.mulf %47, %53 : vector<2x64xf32>
    %c0_37 = arith.constant 0 : index
    %c0_38 = arith.constant 0 : index
    %c0_39 = arith.constant 0 : index
    %55 = vector.load %arg10[%c0_37, %c0_38, %c0_39] : memref<1x2x64xf32, #tpu.memory_space<vmem>>, vector<1x2x64xf32>
    %56 = vector.shape_cast %55 : vector<1x2x64xf32> to vector<2x64xf32>
    %57 = vector.shape_cast %52 : vector<2x64xf32> to vector<1x2x64xf32>
    tpu.vector_store %arg10[%c0_37, %c0_38, %c0_39], %57 {strides = array<i32>} : memref<1x2x64xf32, #tpu.memory_space<vmem>>, vector<1x2x64xf32>,
    %c0_40 = arith.constant 0 : index
    %c0_41 = arith.constant 0 : index
    %c0_42 = arith.constant 0 : index
    %58 = vector.load %arg9[%c0_40, %c0_41, %c0_42] : memref<1x2x64xf32, #tpu.memory_space<vmem>>, vector<1x2x64xf32>
    %59 = vector.shape_cast %58 : vector<1x2x64xf32> to vector<2x64xf32>
    %60 = vector.shape_cast %54 : vector<2x64xf32> to vector<1x2x64xf32>
    tpu.vector_store %arg9[%c0_40, %c0_41, %c0_42], %60 {strides = array<i32>} : memref<1x2x64xf32, #tpu.memory_space<vmem>>, vector<1x2x64xf32>,
    %c0_43 = arith.constant 0 : index
    %c0_44 = arith.constant 0 : index
    %c0_45 = arith.constant 0 : index
    %61 = vector.load %arg11[%c0_43, %c0_44, %c0_45] : memref<1x16x64xf32, #tpu.memory_space<vmem>>, vector<1x2x64xf32>
    %62 = vector.shape_cast %61 : vector<1x2x64xf32> to vector<2x64xf32>
    %63 = vector.shape_cast %54 : vector<2x64xf32> to vector<1x2x64xf32>
    tpu.vector_store %arg11[%c0_43, %c0_44, %c0_45], %63 {strides = array<i32>} : memref<1x16x64xf32, #tpu.memory_space<vmem>>, vector<1x2x64xf32>,
    %c0_46 = arith.constant 0 : index
    %c2 = arith.constant 2 : index
    %c0_47 = arith.constant 0 : index
    %64 = vector.load %arg12[%c0_46, %c2, %c0_47] : memref<1x16x256xf32, #tpu.memory_space<vmem>>, vector<1x2x256xf32>
    %65 = vector.shape_cast %64 : vector<1x2x256xf32> to vector<2x256xf32>
    %c0_48 = arith.constant 0 : index
    %c0_49 = arith.constant 0 : index
    %c0_50 = arith.constant 0 : index
    %66 = vector.load %arg9[%c0_48, %c0_49, %c0_50] : memref<1x2x64xf32, #tpu.memory_space<vmem>>, vector<1x2x64xf32>
    %67 = vector.shape_cast %66 : vector<1x2x64xf32> to vector<2x64xf32>
    %cst_51 = arith.constant dense<0.000000e+00> : vector<2x256xf32>
    %68 = tpu.matmul %67, %1, %cst_51 {dimension_numbers = #tpu.dot_dimension_numbers<[1], [0], [0], [1], [0, 0, 1, 1], [], []>} : vector<2x64xf32>, vector<64x256xf32>, vector<2x256xf32> -> vector<2x256xf32>
    %69 = arith.addf %65, %68 : vector<2x256xf32>
    %70 = vector.extract_strided_slice %69 {offsets = [0, 0], sizes = [2, 64], strides = [1, 1]} : vector<2x256xf32> to vector<2x64xf32>
    %71 = arith.negf %70 : vector<2x64xf32>
    %72 = math.exp %71 : vector<2x64xf32>
    %cst_52 = arith.constant 1.000000e+00 : f32
    %73 = vector.broadcast %cst_52 : f32 to vector<2x64xf32>
    %74 = arith.addf %73, %72 : vector<2x64xf32>
    %75 = arith.divf %73, %74 : vector<2x64xf32>
    %76 = vector.extract_strided_slice %69 {offsets = [0, 64], sizes = [2, 64], strides = [1, 1]} : vector<2x256xf32> to vector<2x64xf32>
    %77 = arith.negf %76 : vector<2x64xf32>
    %78 = math.exp %77 : vector<2x64xf32>
    %cst_53 = arith.constant 1.000000e+00 : f32
    %79 = vector.broadcast %cst_53 : f32 to vector<2x64xf32>
    %80 = arith.addf %79, %78 : vector<2x64xf32>
    %81 = arith.divf %79, %80 : vector<2x64xf32>
    %82 = vector.extract_strided_slice %69 {offsets = [0, 128], sizes = [2, 64], strides = [1, 1]} : vector<2x256xf32> to vector<2x64xf32>
    %83 = math.tanh %82 : vector<2x64xf32>
    %84 = vector.extract_strided_slice %69 {offsets = [0, 192], sizes = [2, 64], strides = [1, 1]} : vector<2x256xf32> to vector<2x64xf32>
    %85 = arith.negf %84 : vector<2x64xf32>
    %86 = math.exp %85 : vector<2x64xf32>
    %cst_54 = arith.constant 1.000000e+00 : f32
    %87 = vector.broadcast %cst_54 : f32 to vector<2x64xf32>
    %88 = arith.addf %87, %86 : vector<2x64xf32>
    %89 = arith.divf %87, %88 : vector<2x64xf32>
    %c0_55 = arith.constant 0 : index
    %c0_56 = arith.constant 0 : index
    %c0_57 = arith.constant 0 : index
    %90 = vector.load %arg10[%c0_55, %c0_56, %c0_57] : memref<1x2x64xf32, #tpu.memory_space<vmem>>, vector<1x2x64xf32>
    %91 = vector.shape_cast %90 : vector<1x2x64xf32> to vector<2x64xf32>
    %92 = arith.mulf %81, %91 : vector<2x64xf32>
    %93 = arith.mulf %75, %83 : vector<2x64xf32>
    %94 = arith.addf %92, %93 : vector<2x64xf32>
    %95 = math.tanh %94 : vector<2x64xf32>
    %96 = arith.mulf %89, %95 : vector<2x64xf32>
    %c0_58 = arith.constant 0 : index
    %c0_59 = arith.constant 0 : index
    %c0_60 = arith.constant 0 : index
    %97 = vector.load %arg10[%c0_58, %c0_59, %c0_60] : memref<1x2x64xf32, #tpu.memory_space<vmem>>, vector<1x2x64xf32>
    %98 = vector.shape_cast %97 : vector<1x2x64xf32> to vector<2x64xf32>
    %99 = vector.shape_cast %94 : vector<2x64xf32> to vector<1x2x64xf32>
    tpu.vector_store %arg10[%c0_58, %c0_59, %c0_60], %99 {strides = array<i32>} : memref<1x2x64xf32, #tpu.memory_space<vmem>>, vector<1x2x64xf32>,
    %c0_61 = arith.constant 0 : index
    %c0_62 = arith.constant 0 : index
    %c0_63 = arith.constant 0 : index
    %100 = vector.load %arg9[%c0_61, %c0_62, %c0_63] : memref<1x2x64xf32, #tpu.memory_space<vmem>>, vector<1x2x64xf32>
    %101 = vector.shape_cast %100 : vector<1x2x64xf32> to vector<2x64xf32>
    %102 = vector.shape_cast %96 : vector<2x64xf32> to vector<1x2x64xf32>
    tpu.vector_store %arg9[%c0_61, %c0_62, %c0_63], %102 {strides = array<i32>} : memref<1x2x64xf32, #tpu.memory_space<vmem>>, vector<1x2x64xf32>,
    %c0_64 = arith.constant 0 : index
    %c2_65 = arith.constant 2 : index
    %c0_66 = arith.constant 0 : index
    %103 = vector.load %arg11[%c0_64, %c2_65, %c0_66] : memref<1x16x64xf32, #tpu.memory_space<vmem>>, vector<1x2x64xf32>
    %104 = vector.shape_cast %103 : vector<1x2x64xf32> to vector<2x64xf32>
    %105 = vector.shape_cast %96 : vector<2x64xf32> to vector<1x2x64xf32>
    tpu.vector_store %arg11[%c0_64, %c2_65, %c0_66], %105 {strides = array<i32>} : memref<1x16x64xf32, #tpu.memory_space<vmem>>, vector<1x2x64xf32>,
    %c0_67 = arith.constant 0 : index
    %c4 = arith.constant 4 : index
    %c0_68 = arith.constant 0 : index
    %106 = vector.load %arg12[%c0_67, %c4, %c0_68] : memref<1x16x256xf32, #tpu.memory_space<vmem>>, vector<1x2x256xf32>
    %107 = vector.shape_cast %106 : vector<1x2x256xf32> to vector<2x256xf32>
    %c0_69 = arith.constant 0 : index
    %c0_70 = arith.constant 0 : index
    %c0_71 = arith.constant 0 : index
    %108 = vector.load %arg9[%c0_69, %c0_70, %c0_71] : memref<1x2x64xf32, #tpu.memory_space<vmem>>, vector<1x2x64xf32>
    %109 = vector.shape_cast %108 : vector<1x2x64xf32> to vector<2x64xf32>
    %cst_72 = arith.constant dense<0.000000e+00> : vector<2x256xf32>
    %110 = tpu.matmul %109, %1, %cst_72 {dimension_numbers = #tpu.dot_dimension_numbers<[1], [0], [0], [1], [0, 0, 1, 1], [], []>} : vector<2x64xf32>, vector<64x256xf32>, vector<2x256xf32> -> vector<2x256xf32>
    %111 = arith.addf %107, %110 : vector<2x256xf32>
    %112 = vector.extract_strided_slice %111 {offsets = [0, 0], sizes = [2, 64], strides = [1, 1]} : vector<2x256xf32> to vector<2x64xf32>
    %113 = arith.negf %112 : vector<2x64xf32>
    %114 = math.exp %113 : vector<2x64xf32>
    %cst_73 = arith.constant 1.000000e+00 : f32
    %115 = vector.broadcast %cst_73 : f32 to vector<2x64xf32>
    %116 = arith.addf %115, %114 : vector<2x64xf32>
    %117 = arith.divf %115, %116 : vector<2x64xf32>
    %118 = vector.extract_strided_slice %111 {offsets = [0, 64], sizes = [2, 64], strides = [1, 1]} : vector<2x256xf32> to vector<2x64xf32>
    %119 = arith.negf %118 : vector<2x64xf32>
    %120 = math.exp %119 : vector<2x64xf32>
    %cst_74 = arith.constant 1.000000e+00 : f32
    %121 = vector.broadcast %cst_74 : f32 to vector<2x64xf32>
    %122 = arith.addf %121, %120 : vector<2x64xf32>
    %123 = arith.divf %121, %122 : vector<2x64xf32>
    %124 = vector.extract_strided_slice %111 {offsets = [0, 128], sizes = [2, 64], strides = [1, 1]} : vector<2x256xf32> to vector<2x64xf32>
    %125 = math.tanh %124 : vector<2x64xf32>
    %126 = vector.extract_strided_slice %111 {offsets = [0, 192], sizes = [2, 64], strides = [1, 1]} : vector<2x256xf32> to vector<2x64xf32>
    %127 = arith.negf %126 : vector<2x64xf32>
    %128 = math.exp %127 : vector<2x64xf32>
    %cst_75 = arith.constant 1.000000e+00 : f32
    %129 = vector.broadcast %cst_75 : f32 to vector<2x64xf32>
    %130 = arith.addf %129, %128 : vector<2x64xf32>
    %131 = arith.divf %129, %130 : vector<2x64xf32>
    %c0_76 = arith.constant 0 : index
    %c0_77 = arith.constant 0 : index
    %c0_78 = arith.constant 0 : index
    %132 = vector.load %arg10[%c0_76, %c0_77, %c0_78] : memref<1x2x64xf32, #tpu.memory_space<vmem>>, vector<1x2x64xf32>
    %133 = vector.shape_cast %132 : vector<1x2x64xf32> to vector<2x64xf32>
    %134 = arith.mulf %123, %133 : vector<2x64xf32>
    %135 = arith.mulf %117, %125 : vector<2x64xf32>
    %136 = arith.addf %134, %135 : vector<2x64xf32>
    %137 = math.tanh %136 : vector<2x64xf32>
    %138 = arith.mulf %131, %137 : vector<2x64xf32>
    %c0_79 = arith.constant 0 : index
    %c0_80 = arith.constant 0 : index
    %c0_81 = arith.constant 0 : index
    %139 = vector.load %arg10[%c0_79, %c0_80, %c0_81] : memref<1x2x64xf32, #tpu.memory_space<vmem>>, vector<1x2x64xf32>
    %140 = vector.shape_cast %139 : vector<1x2x64xf32> to vector<2x64xf32>
    %141 = vector.shape_cast %136 : vector<2x64xf32> to vector<1x2x64xf32>
    tpu.vector_store %arg10[%c0_79, %c0_80, %c0_81], %141 {strides = array<i32>} : memref<1x2x64xf32, #tpu.memory_space<vmem>>, vector<1x2x64xf32>,
    %c0_82 = arith.constant 0 : index
    %c0_83 = arith.constant 0 : index
    %c0_84 = arith.constant 0 : index
    %142 = vector.load %arg9[%c0_82, %c0_83, %c0_84] : memref<1x2x64xf32, #tpu.memory_space<vmem>>, vector<1x2x64xf32>
    %143 = vector.shape_cast %142 : vector<1x2x64xf32> to vector<2x64xf32>
    %144 = vector.shape_cast %138 : vector<2x64xf32> to vector<1x2x64xf32>
    tpu.vector_store %arg9[%c0_82, %c0_83, %c0_84], %144 {strides = array<i32>} : memref<1x2x64xf32, #tpu.memory_space<vmem>>, vector<1x2x64xf32>,
    %c0_85 = arith.constant 0 : index
    %c4_86 = arith.constant 4 : index
    %c0_87 = arith.constant 0 : index
    %145 = vector.load %arg11[%c0_85, %c4_86, %c0_87] : memref<1x16x64xf32, #tpu.memory_space<vmem>>, vector<1x2x64xf32>
    %146 = vector.shape_cast %145 : vector<1x2x64xf32> to vector<2x64xf32>
    %147 = vector.shape_cast %138 : vector<2x64xf32> to vector<1x2x64xf32>
    tpu.vector_store %arg11[%c0_85, %c4_86, %c0_87], %147 {strides = array<i32>} : memref<1x16x64xf32, #tpu.memory_space<vmem>>, vector<1x2x64xf32>,
    %c0_88 = arith.constant 0 : index
    %c6 = arith.constant 6 : index
    %c0_89 = arith.constant 0 : index
    %148 = vector.load %arg12[%c0_88, %c6, %c0_89] : memref<1x16x256xf32, #tpu.memory_space<vmem>>, vector<1x2x256xf32>
    %149 = vector.shape_cast %148 : vector<1x2x256xf32> to vector<2x256xf32>
    %c0_90 = arith.constant 0 : index
    %c0_91 = arith.constant 0 : index
    %c0_92 = arith.constant 0 : index
    %150 = vector.load %arg9[%c0_90, %c0_91, %c0_92] : memref<1x2x64xf32, #tpu.memory_space<vmem>>, vector<1x2x64xf32>
    %151 = vector.shape_cast %150 : vector<1x2x64xf32> to vector<2x64xf32>
    %cst_93 = arith.constant dense<0.000000e+00> : vector<2x256xf32>
    %152 = tpu.matmul %151, %1, %cst_93 {dimension_numbers = #tpu.dot_dimension_numbers<[1], [0], [0], [1], [0, 0, 1, 1], [], []>} : vector<2x64xf32>, vector<64x256xf32>, vector<2x256xf32> -> vector<2x256xf32>
    %153 = arith.addf %149, %152 : vector<2x256xf32>
    %154 = vector.extract_strided_slice %153 {offsets = [0, 0], sizes = [2, 64], strides = [1, 1]} : vector<2x256xf32> to vector<2x64xf32>
    %155 = arith.negf %154 : vector<2x64xf32>
    %156 = math.exp %155 : vector<2x64xf32>
    %cst_94 = arith.constant 1.000000e+00 : f32
    %157 = vector.broadcast %cst_94 : f32 to vector<2x64xf32>
    %158 = arith.addf %157, %156 : vector<2x64xf32>
    %159 = arith.divf %157, %158 : vector<2x64xf32>
    %160 = vector.extract_strided_slice %153 {offsets = [0, 64], sizes = [2, 64], strides = [1, 1]} : vector<2x256xf32> to vector<2x64xf32>
    %161 = arith.negf %160 : vector<2x64xf32>
    %162 = math.exp %161 : vector<2x64xf32>
    %cst_95 = arith.constant 1.000000e+00 : f32
    %163 = vector.broadcast %cst_95 : f32 to vector<2x64xf32>
    %164 = arith.addf %163, %162 : vector<2x64xf32>
    %165 = arith.divf %163, %164 : vector<2x64xf32>
    %166 = vector.extract_strided_slice %153 {offsets = [0, 128], sizes = [2, 64], strides = [1, 1]} : vector<2x256xf32> to vector<2x64xf32>
    %167 = math.tanh %166 : vector<2x64xf32>
    %168 = vector.extract_strided_slice %153 {offsets = [0, 192], sizes = [2, 64], strides = [1, 1]} : vector<2x256xf32> to vector<2x64xf32>
    %169 = arith.negf %168 : vector<2x64xf32>
    %170 = math.exp %169 : vector<2x64xf32>
    %cst_96 = arith.constant 1.000000e+00 : f32
    %171 = vector.broadcast %cst_96 : f32 to vector<2x64xf32>
    %172 = arith.addf %171, %170 : vector<2x64xf32>
    %173 = arith.divf %171, %172 : vector<2x64xf32>
    %c0_97 = arith.constant 0 : index
    %c0_98 = arith.constant 0 : index
    %c0_99 = arith.constant 0 : index
    %174 = vector.load %arg10[%c0_97, %c0_98, %c0_99] : memref<1x2x64xf32, #tpu.memory_space<vmem>>, vector<1x2x64xf32>
    %175 = vector.shape_cast %174 : vector<1x2x64xf32> to vector<2x64xf32>
    %176 = arith.mulf %165, %175 : vector<2x64xf32>
    %177 = arith.mulf %159, %167 : vector<2x64xf32>
    %178 = arith.addf %176, %177 : vector<2x64xf32>
    %179 = math.tanh %178 : vector<2x64xf32>
    %180 = arith.mulf %173, %179 : vector<2x64xf32>
    %c0_100 = arith.constant 0 : index
    %c0_101 = arith.constant 0 : index
    %c0_102 = arith.constant 0 : index
    %181 = vector.load %arg10[%c0_100, %c0_101, %c0_102] : memref<1x2x64xf32, #tpu.memory_space<vmem>>, vector<1x2x64xf32>
    %182 = vector.shape_cast %181 : vector<1x2x64xf32> to vector<2x64xf32>
    %183 = vector.shape_cast %178 : vector<2x64xf32> to vector<1x2x64xf32>
    tpu.vector_store %arg10[%c0_100, %c0_101, %c0_102], %183 {strides = array<i32>} : memref<1x2x64xf32, #tpu.memory_space<vmem>>, vector<1x2x64xf32>,
    %c0_103 = arith.constant 0 : index
    %c0_104 = arith.constant 0 : index
    %c0_105 = arith.constant 0 : index
    %184 = vector.load %arg9[%c0_103, %c0_104, %c0_105] : memref<1x2x64xf32, #tpu.memory_space<vmem>>, vector<1x2x64xf32>
    %185 = vector.shape_cast %184 : vector<1x2x64xf32> to vector<2x64xf32>
    %186 = vector.shape_cast %180 : vector<2x64xf32> to vector<1x2x64xf32>
    tpu.vector_store %arg9[%c0_103, %c0_104, %c0_105], %186 {strides = array<i32>} : memref<1x2x64xf32, #tpu.memory_space<vmem>>, vector<1x2x64xf32>,
    %c0_106 = arith.constant 0 : index
    %c6_107 = arith.constant 6 : index
    %c0_108 = arith.constant 0 : index
    %187 = vector.load %arg11[%c0_106, %c6_107, %c0_108] : memref<1x16x64xf32, #tpu.memory_space<vmem>>, vector<1x2x64xf32>
    %188 = vector.shape_cast %187 : vector<1x2x64xf32> to vector<2x64xf32>
    %189 = vector.shape_cast %180 : vector<2x64xf32> to vector<1x2x64xf32>
    tpu.vector_store %arg11[%c0_106, %c6_107, %c0_108], %189 {strides = array<i32>} : memref<1x16x64xf32, #tpu.memory_space<vmem>>, vector<1x2x64xf32>,
    %c0_109 = arith.constant 0 : index
    %c8 = arith.constant 8 : index
    %c0_110 = arith.constant 0 : index
    %190 = vector.load %arg12[%c0_109, %c8, %c0_110] : memref<1x16x256xf32, #tpu.memory_space<vmem>>, vector<1x2x256xf32>
    %191 = vector.shape_cast %190 : vector<1x2x256xf32> to vector<2x256xf32>
    %c0_111 = arith.constant 0 : index
    %c0_112 = arith.constant 0 : index
    %c0_113 = arith.constant 0 : index
    %192 = vector.load %arg9[%c0_111, %c0_112, %c0_113] : memref<1x2x64xf32, #tpu.memory_space<vmem>>, vector<1x2x64xf32>
    %193 = vector.shape_cast %192 : vector<1x2x64xf32> to vector<2x64xf32>
    %cst_114 = arith.constant dense<0.000000e+00> : vector<2x256xf32>
    %194 = tpu.matmul %193, %1, %cst_114 {dimension_numbers = #tpu.dot_dimension_numbers<[1], [0], [0], [1], [0, 0, 1, 1], [], []>} : vector<2x64xf32>, vector<64x256xf32>, vector<2x256xf32> -> vector<2x256xf32>
    %195 = arith.addf %191, %194 : vector<2x256xf32>
    %196 = vector.extract_strided_slice %195 {offsets = [0, 0], sizes = [2, 64], strides = [1, 1]} : vector<2x256xf32> to vector<2x64xf32>
    %197 = arith.negf %196 : vector<2x64xf32>
    %198 = math.exp %197 : vector<2x64xf32>
    %cst_115 = arith.constant 1.000000e+00 : f32
    %199 = vector.broadcast %cst_115 : f32 to vector<2x64xf32>
    %200 = arith.addf %199, %198 : vector<2x64xf32>
    %201 = arith.divf %199, %200 : vector<2x64xf32>
    %202 = vector.extract_strided_slice %195 {offsets = [0, 64], sizes = [2, 64], strides = [1, 1]} : vector<2x256xf32> to vector<2x64xf32>
    %203 = arith.negf %202 : vector<2x64xf32>
    %204 = math.exp %203 : vector<2x64xf32>
    %cst_116 = arith.constant 1.000000e+00 : f32
    %205 = vector.broadcast %cst_116 : f32 to vector<2x64xf32>
    %206 = arith.addf %205, %204 : vector<2x64xf32>
    %207 = arith.divf %205, %206 : vector<2x64xf32>
    %208 = vector.extract_strided_slice %195 {offsets = [0, 128], sizes = [2, 64], strides = [1, 1]} : vector<2x256xf32> to vector<2x64xf32>
    %209 = math.tanh %208 : vector<2x64xf32>
    %210 = vector.extract_strided_slice %195 {offsets = [0, 192], sizes = [2, 64], strides = [1, 1]} : vector<2x256xf32> to vector<2x64xf32>
    %211 = arith.negf %210 : vector<2x64xf32>
    %212 = math.exp %211 : vector<2x64xf32>
    %cst_117 = arith.constant 1.000000e+00 : f32
    %213 = vector.broadcast %cst_117 : f32 to vector<2x64xf32>
    %214 = arith.addf %213, %212 : vector<2x64xf32>
    %215 = arith.divf %213, %214 : vector<2x64xf32>
    %c0_118 = arith.constant 0 : index
    %c0_119 = arith.constant 0 : index
    %c0_120 = arith.constant 0 : index
    %216 = vector.load %arg10[%c0_118, %c0_119, %c0_120] : memref<1x2x64xf32, #tpu.memory_space<vmem>>, vector<1x2x64xf32>
    %217 = vector.shape_cast %216 : vector<1x2x64xf32> to vector<2x64xf32>
    %218 = arith.mulf %207, %217 : vector<2x64xf32>
    %219 = arith.mulf %201, %209 : vector<2x64xf32>
    %220 = arith.addf %218, %219 : vector<2x64xf32>
    %221 = math.tanh %220 : vector<2x64xf32>
    %222 = arith.mulf %215, %221 : vector<2x64xf32>
    %c0_121 = arith.constant 0 : index
    %c0_122 = arith.constant 0 : index
    %c0_123 = arith.constant 0 : index
    %223 = vector.load %arg10[%c0_121, %c0_122, %c0_123] : memref<1x2x64xf32, #tpu.memory_space<vmem>>, vector<1x2x64xf32>
    %224 = vector.shape_cast %223 : vector<1x2x64xf32> to vector<2x64xf32>
    %225 = vector.shape_cast %220 : vector<2x64xf32> to vector<1x2x64xf32>
    tpu.vector_store %arg10[%c0_121, %c0_122, %c0_123], %225 {strides = array<i32>} : memref<1x2x64xf32, #tpu.memory_space<vmem>>, vector<1x2x64xf32>,
    %c0_124 = arith.constant 0 : index
    %c0_125 = arith.constant 0 : index
    %c0_126 = arith.constant 0 : index
    %226 = vector.load %arg9[%c0_124, %c0_125, %c0_126] : memref<1x2x64xf32, #tpu.memory_space<vmem>>, vector<1x2x64xf32>
    %227 = vector.shape_cast %226 : vector<1x2x64xf32> to vector<2x64xf32>
    %228 = vector.shape_cast %222 : vector<2x64xf32> to vector<1x2x64xf32>
    tpu.vector_store %arg9[%c0_124, %c0_125, %c0_126], %228 {strides = array<i32>} : memref<1x2x64xf32, #tpu.memory_space<vmem>>, vector<1x2x64xf32>,
    %c0_127 = arith.constant 0 : index
    %c8_128 = arith.constant 8 : index
    %c0_129 = arith.constant 0 : index
    %229 = vector.load %arg11[%c0_127, %c8_128, %c0_129] : memref<1x16x64xf32, #tpu.memory_space<vmem>>, vector<1x2x64xf32>
    %230 = vector.shape_cast %229 : vector<1x2x64xf32> to vector<2x64xf32>
    %231 = vector.shape_cast %222 : vector<2x64xf32> to vector<1x2x64xf32>
    tpu.vector_store %arg11[%c0_127, %c8_128, %c0_129], %231 {strides = array<i32>} : memref<1x16x64xf32, #tpu.memory_space<vmem>>, vector<1x2x64xf32>,
    %c0_130 = arith.constant 0 : index
    %c10 = arith.constant 10 : index
    %c0_131 = arith.constant 0 : index
    %232 = vector.load %arg12[%c0_130, %c10, %c0_131] : memref<1x16x256xf32, #tpu.memory_space<vmem>>, vector<1x2x256xf32>
    %233 = vector.shape_cast %232 : vector<1x2x256xf32> to vector<2x256xf32>
    %c0_132 = arith.constant 0 : index
    %c0_133 = arith.constant 0 : index
    %c0_134 = arith.constant 0 : index
    %234 = vector.load %arg9[%c0_132, %c0_133, %c0_134] : memref<1x2x64xf32, #tpu.memory_space<vmem>>, vector<1x2x64xf32>
    %235 = vector.shape_cast %234 : vector<1x2x64xf32> to vector<2x64xf32>
    %cst_135 = arith.constant dense<0.000000e+00> : vector<2x256xf32>
    %236 = tpu.matmul %235, %1, %cst_135 {dimension_numbers = #tpu.dot_dimension_numbers<[1], [0], [0], [1], [0, 0, 1, 1], [], []>} : vector<2x64xf32>, vector<64x256xf32>, vector<2x256xf32> -> vector<2x256xf32>
    %237 = arith.addf %233, %236 : vector<2x256xf32>
    %238 = vector.extract_strided_slice %237 {offsets = [0, 0], sizes = [2, 64], strides = [1, 1]} : vector<2x256xf32> to vector<2x64xf32>
    %239 = arith.negf %238 : vector<2x64xf32>
    %240 = math.exp %239 : vector<2x64xf32>
    %cst_136 = arith.constant 1.000000e+00 : f32
    %241 = vector.broadcast %cst_136 : f32 to vector<2x64xf32>
    %242 = arith.addf %241, %240 : vector<2x64xf32>
    %243 = arith.divf %241, %242 : vector<2x64xf32>
    %244 = vector.extract_strided_slice %237 {offsets = [0, 64], sizes = [2, 64], strides = [1, 1]} : vector<2x256xf32> to vector<2x64xf32>
    %245 = arith.negf %244 : vector<2x64xf32>
    %246 = math.exp %245 : vector<2x64xf32>
    %cst_137 = arith.constant 1.000000e+00 : f32
    %247 = vector.broadcast %cst_137 : f32 to vector<2x64xf32>
    %248 = arith.addf %247, %246 : vector<2x64xf32>
    %249 = arith.divf %247, %248 : vector<2x64xf32>
    %250 = vector.extract_strided_slice %237 {offsets = [0, 128], sizes = [2, 64], strides = [1, 1]} : vector<2x256xf32> to vector<2x64xf32>
    %251 = math.tanh %250 : vector<2x64xf32>
    %252 = vector.extract_strided_slice %237 {offsets = [0, 192], sizes = [2, 64], strides = [1, 1]} : vector<2x256xf32> to vector<2x64xf32>
    %253 = arith.negf %252 : vector<2x64xf32>
    %254 = math.exp %253 : vector<2x64xf32>
    %cst_138 = arith.constant 1.000000e+00 : f32
    %255 = vector.broadcast %cst_138 : f32 to vector<2x64xf32>
    %256 = arith.addf %255, %254 : vector<2x64xf32>
    %257 = arith.divf %255, %256 : vector<2x64xf32>
    %c0_139 = arith.constant 0 : index
    %c0_140 = arith.constant 0 : index
    %c0_141 = arith.constant 0 : index
    %258 = vector.load %arg10[%c0_139, %c0_140, %c0_141] : memref<1x2x64xf32, #tpu.memory_space<vmem>>, vector<1x2x64xf32>
    %259 = vector.shape_cast %258 : vector<1x2x64xf32> to vector<2x64xf32>
    %260 = arith.mulf %249, %259 : vector<2x64xf32>
    %261 = arith.mulf %243, %251 : vector<2x64xf32>
    %262 = arith.addf %260, %261 : vector<2x64xf32>
    %263 = math.tanh %262 : vector<2x64xf32>
    %264 = arith.mulf %257, %263 : vector<2x64xf32>
    %c0_142 = arith.constant 0 : index
    %c0_143 = arith.constant 0 : index
    %c0_144 = arith.constant 0 : index
    %265 = vector.load %arg10[%c0_142, %c0_143, %c0_144] : memref<1x2x64xf32, #tpu.memory_space<vmem>>, vector<1x2x64xf32>
    %266 = vector.shape_cast %265 : vector<1x2x64xf32> to vector<2x64xf32>
    %267 = vector.shape_cast %262 : vector<2x64xf32> to vector<1x2x64xf32>
    tpu.vector_store %arg10[%c0_142, %c0_143, %c0_144], %267 {strides = array<i32>} : memref<1x2x64xf32, #tpu.memory_space<vmem>>, vector<1x2x64xf32>,
    %c0_145 = arith.constant 0 : index
    %c0_146 = arith.constant 0 : index
    %c0_147 = arith.constant 0 : index
    %268 = vector.load %arg9[%c0_145, %c0_146, %c0_147] : memref<1x2x64xf32, #tpu.memory_space<vmem>>, vector<1x2x64xf32>
    %269 = vector.shape_cast %268 : vector<1x2x64xf32> to vector<2x64xf32>
    %270 = vector.shape_cast %264 : vector<2x64xf32> to vector<1x2x64xf32>
    tpu.vector_store %arg9[%c0_145, %c0_146, %c0_147], %270 {strides = array<i32>} : memref<1x2x64xf32, #tpu.memory_space<vmem>>, vector<1x2x64xf32>,
    %c0_148 = arith.constant 0 : index
    %c10_149 = arith.constant 10 : index
    %c0_150 = arith.constant 0 : index
    %271 = vector.load %arg11[%c0_148, %c10_149, %c0_150] : memref<1x16x64xf32, #tpu.memory_space<vmem>>, vector<1x2x64xf32>
    %272 = vector.shape_cast %271 : vector<1x2x64xf32> to vector<2x64xf32>
    %273 = vector.shape_cast %264 : vector<2x64xf32> to vector<1x2x64xf32>
    tpu.vector_store %arg11[%c0_148, %c10_149, %c0_150], %273 {strides = array<i32>} : memref<1x16x64xf32, #tpu.memory_space<vmem>>, vector<1x2x64xf32>,
    %c0_151 = arith.constant 0 : index
    %c12 = arith.constant 12 : index
    %c0_152 = arith.constant 0 : index
    %274 = vector.load %arg12[%c0_151, %c12, %c0_152] : memref<1x16x256xf32, #tpu.memory_space<vmem>>, vector<1x2x256xf32>
    %275 = vector.shape_cast %274 : vector<1x2x256xf32> to vector<2x256xf32>
    %c0_153 = arith.constant 0 : index
    %c0_154 = arith.constant 0 : index
    %c0_155 = arith.constant 0 : index
    %276 = vector.load %arg9[%c0_153, %c0_154, %c0_155] : memref<1x2x64xf32, #tpu.memory_space<vmem>>, vector<1x2x64xf32>
    %277 = vector.shape_cast %276 : vector<1x2x64xf32> to vector<2x64xf32>
    %cst_156 = arith.constant dense<0.000000e+00> : vector<2x256xf32>
    %278 = tpu.matmul %277, %1, %cst_156 {dimension_numbers = #tpu.dot_dimension_numbers<[1], [0], [0], [1], [0, 0, 1, 1], [], []>} : vector<2x64xf32>, vector<64x256xf32>, vector<2x256xf32> -> vector<2x256xf32>
    %279 = arith.addf %275, %278 : vector<2x256xf32>
    %280 = vector.extract_strided_slice %279 {offsets = [0, 0], sizes = [2, 64], strides = [1, 1]} : vector<2x256xf32> to vector<2x64xf32>
    %281 = arith.negf %280 : vector<2x64xf32>
    %282 = math.exp %281 : vector<2x64xf32>
    %cst_157 = arith.constant 1.000000e+00 : f32
    %283 = vector.broadcast %cst_157 : f32 to vector<2x64xf32>
    %284 = arith.addf %283, %282 : vector<2x64xf32>
    %285 = arith.divf %283, %284 : vector<2x64xf32>
    %286 = vector.extract_strided_slice %279 {offsets = [0, 64], sizes = [2, 64], strides = [1, 1]} : vector<2x256xf32> to vector<2x64xf32>
    %287 = arith.negf %286 : vector<2x64xf32>
    %288 = math.exp %287 : vector<2x64xf32>
    %cst_158 = arith.constant 1.000000e+00 : f32
    %289 = vector.broadcast %cst_158 : f32 to vector<2x64xf32>
    %290 = arith.addf %289, %288 : vector<2x64xf32>
    %291 = arith.divf %289, %290 : vector<2x64xf32>
    %292 = vector.extract_strided_slice %279 {offsets = [0, 128], sizes = [2, 64], strides = [1, 1]} : vector<2x256xf32> to vector<2x64xf32>
    %293 = math.tanh %292 : vector<2x64xf32>
    %294 = vector.extract_strided_slice %279 {offsets = [0, 192], sizes = [2, 64], strides = [1, 1]} : vector<2x256xf32> to vector<2x64xf32>
    %295 = arith.negf %294 : vector<2x64xf32>
    %296 = math.exp %295 : vector<2x64xf32>
    %cst_159 = arith.constant 1.000000e+00 : f32
    %297 = vector.broadcast %cst_159 : f32 to vector<2x64xf32>
    %298 = arith.addf %297, %296 : vector<2x64xf32>
    %299 = arith.divf %297, %298 : vector<2x64xf32>
    %c0_160 = arith.constant 0 : index
    %c0_161 = arith.constant 0 : index
    %c0_162 = arith.constant 0 : index
    %300 = vector.load %arg10[%c0_160, %c0_161, %c0_162] : memref<1x2x64xf32, #tpu.memory_space<vmem>>, vector<1x2x64xf32>
    %301 = vector.shape_cast %300 : vector<1x2x64xf32> to vector<2x64xf32>
    %302 = arith.mulf %291, %301 : vector<2x64xf32>
    %303 = arith.mulf %285, %293 : vector<2x64xf32>
    %304 = arith.addf %302, %303 : vector<2x64xf32>
    %305 = math.tanh %304 : vector<2x64xf32>
    %306 = arith.mulf %299, %305 : vector<2x64xf32>
    %c0_163 = arith.constant 0 : index
    %c0_164 = arith.constant 0 : index
    %c0_165 = arith.constant 0 : index
    %307 = vector.load %arg10[%c0_163, %c0_164, %c0_165] : memref<1x2x64xf32, #tpu.memory_space<vmem>>, vector<1x2x64xf32>
    %308 = vector.shape_cast %307 : vector<1x2x64xf32> to vector<2x64xf32>
    %309 = vector.shape_cast %304 : vector<2x64xf32> to vector<1x2x64xf32>
    tpu.vector_store %arg10[%c0_163, %c0_164, %c0_165], %309 {strides = array<i32>} : memref<1x2x64xf32, #tpu.memory_space<vmem>>, vector<1x2x64xf32>,
    %c0_166 = arith.constant 0 : index
    %c0_167 = arith.constant 0 : index
    %c0_168 = arith.constant 0 : index
    %310 = vector.load %arg9[%c0_166, %c0_167, %c0_168] : memref<1x2x64xf32, #tpu.memory_space<vmem>>, vector<1x2x64xf32>
    %311 = vector.shape_cast %310 : vector<1x2x64xf32> to vector<2x64xf32>
    %312 = vector.shape_cast %306 : vector<2x64xf32> to vector<1x2x64xf32>
    tpu.vector_store %arg9[%c0_166, %c0_167, %c0_168], %312 {strides = array<i32>} : memref<1x2x64xf32, #tpu.memory_space<vmem>>, vector<1x2x64xf32>,
    %c0_169 = arith.constant 0 : index
    %c12_170 = arith.constant 12 : index
    %c0_171 = arith.constant 0 : index
    %313 = vector.load %arg11[%c0_169, %c12_170, %c0_171] : memref<1x16x64xf32, #tpu.memory_space<vmem>>, vector<1x2x64xf32>
    %314 = vector.shape_cast %313 : vector<1x2x64xf32> to vector<2x64xf32>
    %315 = vector.shape_cast %306 : vector<2x64xf32> to vector<1x2x64xf32>
    tpu.vector_store %arg11[%c0_169, %c12_170, %c0_171], %315 {strides = array<i32>} : memref<1x16x64xf32, #tpu.memory_space<vmem>>, vector<1x2x64xf32>,
    %c0_172 = arith.constant 0 : index
    %c14 = arith.constant 14 : index
    %c0_173 = arith.constant 0 : index
    %316 = vector.load %arg12[%c0_172, %c14, %c0_173] : memref<1x16x256xf32, #tpu.memory_space<vmem>>, vector<1x2x256xf32>
    %317 = vector.shape_cast %316 : vector<1x2x256xf32> to vector<2x256xf32>
    %c0_174 = arith.constant 0 : index
    %c0_175 = arith.constant 0 : index
    %c0_176 = arith.constant 0 : index
    %318 = vector.load %arg9[%c0_174, %c0_175, %c0_176] : memref<1x2x64xf32, #tpu.memory_space<vmem>>, vector<1x2x64xf32>
    %319 = vector.shape_cast %318 : vector<1x2x64xf32> to vector<2x64xf32>
    %cst_177 = arith.constant dense<0.000000e+00> : vector<2x256xf32>
    %320 = tpu.matmul %319, %1, %cst_177 {dimension_numbers = #tpu.dot_dimension_numbers<[1], [0], [0], [1], [0, 0, 1, 1], [], []>} : vector<2x64xf32>, vector<64x256xf32>, vector<2x256xf32> -> vector<2x256xf32>
    %321 = arith.addf %317, %320 : vector<2x256xf32>
    %322 = vector.extract_strided_slice %321 {offsets = [0, 0], sizes = [2, 64], strides = [1, 1]} : vector<2x256xf32> to vector<2x64xf32>
    %323 = arith.negf %322 : vector<2x64xf32>
    %324 = math.exp %323 : vector<2x64xf32>
    %cst_178 = arith.constant 1.000000e+00 : f32
    %325 = vector.broadcast %cst_178 : f32 to vector<2x64xf32>
    %326 = arith.addf %325, %324 : vector<2x64xf32>
    %327 = arith.divf %325, %326 : vector<2x64xf32>
    %328 = vector.extract_strided_slice %321 {offsets = [0, 64], sizes = [2, 64], strides = [1, 1]} : vector<2x256xf32> to vector<2x64xf32>
    %329 = arith.negf %328 : vector<2x64xf32>
    %330 = math.exp %329 : vector<2x64xf32>
    %cst_179 = arith.constant 1.000000e+00 : f32
    %331 = vector.broadcast %cst_179 : f32 to vector<2x64xf32>
    %332 = arith.addf %331, %330 : vector<2x64xf32>
    %333 = arith.divf %331, %332 : vector<2x64xf32>
    %334 = vector.extract_strided_slice %321 {offsets = [0, 128], sizes = [2, 64], strides = [1, 1]} : vector<2x256xf32> to vector<2x64xf32>
    %335 = math.tanh %334 : vector<2x64xf32>
    %336 = vector.extract_strided_slice %321 {offsets = [0, 192], sizes = [2, 64], strides = [1, 1]} : vector<2x256xf32> to vector<2x64xf32>
    %337 = arith.negf %336 : vector<2x64xf32>
    %338 = math.exp %337 : vector<2x64xf32>
    %cst_180 = arith.constant 1.000000e+00 : f32
    %339 = vector.broadcast %cst_180 : f32 to vector<2x64xf32>
    %340 = arith.addf %339, %338 : vector<2x64xf32>
    %341 = arith.divf %339, %340 : vector<2x64xf32>
    %c0_181 = arith.constant 0 : index
    %c0_182 = arith.constant 0 : index
    %c0_183 = arith.constant 0 : index
    %342 = vector.load %arg10[%c0_181, %c0_182, %c0_183] : memref<1x2x64xf32, #tpu.memory_space<vmem>>, vector<1x2x64xf32>
    %343 = vector.shape_cast %342 : vector<1x2x64xf32> to vector<2x64xf32>
    %344 = arith.mulf %333, %343 : vector<2x64xf32>
    %345 = arith.mulf %327, %335 : vector<2x64xf32>
    %346 = arith.addf %344, %345 : vector<2x64xf32>
    %347 = math.tanh %346 : vector<2x64xf32>
    %348 = arith.mulf %341, %347 : vector<2x64xf32>
    %c0_184 = arith.constant 0 : index
    %c0_185 = arith.constant 0 : index
    %c0_186 = arith.constant 0 : index
    %349 = vector.load %arg10[%c0_184, %c0_185, %c0_186] : memref<1x2x64xf32, #tpu.memory_space<vmem>>, vector<1x2x64xf32>
    %350 = vector.shape_cast %349 : vector<1x2x64xf32> to vector<2x64xf32>
    %351 = vector.shape_cast %346 : vector<2x64xf32> to vector<1x2x64xf32>
    tpu.vector_store %arg10[%c0_184, %c0_185, %c0_186], %351 {strides = array<i32>} : memref<1x2x64xf32, #tpu.memory_space<vmem>>, vector<1x2x64xf32>,
    %c0_187 = arith.constant 0 : index
    %c0_188 = arith.constant 0 : index
    %c0_189 = arith.constant 0 : index
    %352 = vector.load %arg9[%c0_187, %c0_188, %c0_189] : memref<1x2x64xf32, #tpu.memory_space<vmem>>, vector<1x2x64xf32>
    %353 = vector.shape_cast %352 : vector<1x2x64xf32> to vector<2x64xf32>
    %354 = vector.shape_cast %348 : vector<2x64xf32> to vector<1x2x64xf32>
    tpu.vector_store %arg9[%c0_187, %c0_188, %c0_189], %354 {strides = array<i32>} : memref<1x2x64xf32, #tpu.memory_space<vmem>>, vector<1x2x64xf32>,
    %c0_190 = arith.constant 0 : index
    %c14_191 = arith.constant 14 : index
    %c0_192 = arith.constant 0 : index
    %355 = vector.load %arg11[%c0_190, %c14_191, %c0_192] : memref<1x16x64xf32, #tpu.memory_space<vmem>>, vector<1x2x64xf32>
    %356 = vector.shape_cast %355 : vector<1x2x64xf32> to vector<2x64xf32>
    %357 = vector.shape_cast %348 : vector<2x64xf32> to vector<1x2x64xf32>
    tpu.vector_store %arg11[%c0_190, %c14_191, %c0_192], %357 {strides = array<i32>} : memref<1x16x64xf32, #tpu.memory_space<vmem>>, vector<1x2x64xf32>,
    %c0_193 = arith.constant 0 : index
    %c1 = arith.constant 1 : index
    %c0_194 = arith.constant 0 : index
    %c0_195 = arith.constant 0 : index
    %358 = vector.load %arg4[%c0_193, %c1, %c0_194, %c0_195] : memref<1x2x64x256xf32, #tpu.memory_space<vmem>>, vector<1x1x64x256xf32>
    %359 = vector.shape_cast %358 : vector<1x1x64x256xf32> to vector<64x256xf32>
    %c0_196 = arith.constant 0 : index
    %c1_197 = arith.constant 1 : index
    %c0_198 = arith.constant 0 : index
    %c0_199 = arith.constant 0 : index
    %360 = vector.load %arg5[%c0_196, %c1_197, %c0_198, %c0_199] : memref<1x2x1x256xf32, #tpu.memory_space<vmem>>, vector<1x1x1x256xf32>
    %361 = vector.shape_cast %360 : vector<1x1x1x256xf32> to vector<1x256xf32>
    %cst_200 = arith.constant 0.000000e+00 : f32
    %362 = vector.broadcast %cst_200 : f32 to vector<2x64xf32>
    %c0_201 = arith.constant 0 : index
    %c0_202 = arith.constant 0 : index
    %c0_203 = arith.constant 0 : index
    %363 = vector.load %arg9[%c0_201, %c0_202, %c0_203] : memref<1x2x64xf32, #tpu.memory_space<vmem>>, vector<1x2x64xf32>
    %364 = vector.shape_cast %363 : vector<1x2x64xf32> to vector<2x64xf32>
    %365 = vector.shape_cast %362 : vector<2x64xf32> to vector<1x2x64xf32>
    tpu.vector_store %arg9[%c0_201, %c0_202, %c0_203], %365 {strides = array<i32>} : memref<1x2x64xf32, #tpu.memory_space<vmem>>, vector<1x2x64xf32>,
    %cst_204 = arith.constant 0.000000e+00 : f32
    %366 = vector.broadcast %cst_204 : f32 to vector<2x64xf32>
    %c0_205 = arith.constant 0 : index
    %c0_206 = arith.constant 0 : index
    %c0_207 = arith.constant 0 : index
    %367 = vector.load %arg10[%c0_205, %c0_206, %c0_207] : memref<1x2x64xf32, #tpu.memory_space<vmem>>, vector<1x2x64xf32>
    %368 = vector.shape_cast %367 : vector<1x2x64xf32> to vector<2x64xf32>
    %369 = vector.shape_cast %366 : vector<2x64xf32> to vector<1x2x64xf32>
    tpu.vector_store %arg10[%c0_205, %c0_206, %c0_207], %369 {strides = array<i32>} : memref<1x2x64xf32, #tpu.memory_space<vmem>>, vector<1x2x64xf32>,
    %c0_208 = arith.constant 0 : index
    %c0_209 = arith.constant 0 : index
    %c0_210 = arith.constant 0 : index
    %370 = vector.load %arg11[%c0_208, %c0_209, %c0_210] : memref<1x16x64xf32, #tpu.memory_space<vmem>>, vector<1x16x64xf32>
    %371 = vector.shape_cast %370 : vector<1x16x64xf32> to vector<16x64xf32>
    %c0_211 = arith.constant 0 : index
    %c0_212 = arith.constant 0 : index
    %c0_213 = arith.constant 0 : index
    %c0_214 = arith.constant 0 : index
    %372 = vector.load %arg3[%c0_211, %c0_212, %c0_213, %c0_214] : memref<1x1x64x256xf32, #tpu.memory_space<vmem>>, vector<1x1x64x256xf32>
    %373 = vector.shape_cast %372 : vector<1x1x64x256xf32> to vector<64x256xf32>
    %cst_215 = arith.constant dense<0.000000e+00> : vector<16x256xf32>
    %374 = tpu.matmul %371, %373, %cst_215 {dimension_numbers = #tpu.dot_dimension_numbers<[1], [0], [0], [1], [0, 0, 1, 1], [], []>} : vector<16x64xf32>, vector<64x256xf32>, vector<16x256xf32> -> vector<16x256xf32>
    %375 = vector.broadcast %361 : vector<1x256xf32> to vector<16x256xf32>
    %376 = arith.addf %374, %375 : vector<16x256xf32>
    %c0_216 = arith.constant 0 : index
    %c0_217 = arith.constant 0 : index
    %c0_218 = arith.constant 0 : index
    %377 = vector.load %arg12[%c0_216, %c0_217, %c0_218] : memref<1x16x256xf32, #tpu.memory_space<vmem>>, vector<1x16x256xf32>
    %378 = vector.shape_cast %377 : vector<1x16x256xf32> to vector<16x256xf32>
    %379 = vector.shape_cast %376 : vector<16x256xf32> to vector<1x16x256xf32>
    tpu.vector_store %arg12[%c0_216, %c0_217, %c0_218], %379 {strides = array<i32>} : memref<1x16x256xf32, #tpu.memory_space<vmem>>, vector<1x16x256xf32>,
    %c0_219 = arith.constant 0 : index
    %c0_220 = arith.constant 0 : index
    %c0_221 = arith.constant 0 : index
    %380 = vector.load %arg12[%c0_219, %c0_220, %c0_221] : memref<1x16x256xf32, #tpu.memory_space<vmem>>, vector<1x2x256xf32>
    %381 = vector.shape_cast %380 : vector<1x2x256xf32> to vector<2x256xf32>
    %c0_222 = arith.constant 0 : index
    %c0_223 = arith.constant 0 : index
    %c0_224 = arith.constant 0 : index
    %382 = vector.load %arg9[%c0_222, %c0_223, %c0_224] : memref<1x2x64xf32, #tpu.memory_space<vmem>>, vector<1x2x64xf32>
    %383 = vector.shape_cast %382 : vector<1x2x64xf32> to vector<2x64xf32>
    %cst_225 = arith.constant dense<0.000000e+00> : vector<2x256xf32>
    %384 = tpu.matmul %383, %359, %cst_225 {dimension_numbers = #tpu.dot_dimension_numbers<[1], [0], [0], [1], [0, 0, 1, 1], [], []>} : vector<2x64xf32>, vector<64x256xf32>, vector<2x256xf32> -> vector<2x256xf32>
    %385 = arith.addf %381, %384 : vector<2x256xf32>
    %386 = vector.extract_strided_slice %385 {offsets = [0, 0], sizes = [2, 64], strides = [1, 1]} : vector<2x256xf32> to vector<2x64xf32>
    %387 = arith.negf %386 : vector<2x64xf32>
    %388 = math.exp %387 : vector<2x64xf32>
    %cst_226 = arith.constant 1.000000e+00 : f32
    %389 = vector.broadcast %cst_226 : f32 to vector<2x64xf32>
    %390 = arith.addf %389, %388 : vector<2x64xf32>
    %391 = arith.divf %389, %390 : vector<2x64xf32>
    %392 = vector.extract_strided_slice %385 {offsets = [0, 64], sizes = [2, 64], strides = [1, 1]} : vector<2x256xf32> to vector<2x64xf32>
    %393 = arith.negf %392 : vector<2x64xf32>
    %394 = math.exp %393 : vector<2x64xf32>
    %cst_227 = arith.constant 1.000000e+00 : f32
    %395 = vector.broadcast %cst_227 : f32 to vector<2x64xf32>
    %396 = arith.addf %395, %394 : vector<2x64xf32>
    %397 = arith.divf %395, %396 : vector<2x64xf32>
    %398 = vector.extract_strided_slice %385 {offsets = [0, 128], sizes = [2, 64], strides = [1, 1]} : vector<2x256xf32> to vector<2x64xf32>
    %399 = math.tanh %398 : vector<2x64xf32>
    %400 = vector.extract_strided_slice %385 {offsets = [0, 192], sizes = [2, 64], strides = [1, 1]} : vector<2x256xf32> to vector<2x64xf32>
    %401 = arith.negf %400 : vector<2x64xf32>
    %402 = math.exp %401 : vector<2x64xf32>
    %cst_228 = arith.constant 1.000000e+00 : f32
    %403 = vector.broadcast %cst_228 : f32 to vector<2x64xf32>
    %404 = arith.addf %403, %402 : vector<2x64xf32>
    %405 = arith.divf %403, %404 : vector<2x64xf32>
    %c0_229 = arith.constant 0 : index
    %c0_230 = arith.constant 0 : index
    %c0_231 = arith.constant 0 : index
    %406 = vector.load %arg10[%c0_229, %c0_230, %c0_231] : memref<1x2x64xf32, #tpu.memory_space<vmem>>, vector<1x2x64xf32>
    %407 = vector.shape_cast %406 : vector<1x2x64xf32> to vector<2x64xf32>
    %408 = arith.mulf %397, %407 : vector<2x64xf32>
    %409 = arith.mulf %391, %399 : vector<2x64xf32>
    %410 = arith.addf %408, %409 : vector<2x64xf32>
    %411 = math.tanh %410 : vector<2x64xf32>
    %412 = arith.mulf %405, %411 : vector<2x64xf32>
    %c0_232 = arith.constant 0 : index
    %c0_233 = arith.constant 0 : index
    %c0_234 = arith.constant 0 : index
    %413 = vector.load %arg10[%c0_232, %c0_233, %c0_234] : memref<1x2x64xf32, #tpu.memory_space<vmem>>, vector<1x2x64xf32>
    %414 = vector.shape_cast %413 : vector<1x2x64xf32> to vector<2x64xf32>
    %415 = vector.shape_cast %410 : vector<2x64xf32> to vector<1x2x64xf32>
    tpu.vector_store %arg10[%c0_232, %c0_233, %c0_234], %415 {strides = array<i32>} : memref<1x2x64xf32, #tpu.memory_space<vmem>>, vector<1x2x64xf32>,
    %c0_235 = arith.constant 0 : index
    %c0_236 = arith.constant 0 : index
    %c0_237 = arith.constant 0 : index
    %416 = vector.load %arg9[%c0_235, %c0_236, %c0_237] : memref<1x2x64xf32, #tpu.memory_space<vmem>>, vector<1x2x64xf32>
    %417 = vector.shape_cast %416 : vector<1x2x64xf32> to vector<2x64xf32>
    %418 = vector.shape_cast %412 : vector<2x64xf32> to vector<1x2x64xf32>
    tpu.vector_store %arg9[%c0_235, %c0_236, %c0_237], %418 {strides = array<i32>} : memref<1x2x64xf32, #tpu.memory_space<vmem>>, vector<1x2x64xf32>,
    %c0_238 = arith.constant 0 : index
    %c0_239 = arith.constant 0 : index
    %c0_240 = arith.constant 0 : index
    %419 = vector.load %arg11[%c0_238, %c0_239, %c0_240] : memref<1x16x64xf32, #tpu.memory_space<vmem>>, vector<1x2x64xf32>
    %420 = vector.shape_cast %419 : vector<1x2x64xf32> to vector<2x64xf32>
    %421 = vector.shape_cast %412 : vector<2x64xf32> to vector<1x2x64xf32>
    tpu.vector_store %arg11[%c0_238, %c0_239, %c0_240], %421 {strides = array<i32>} : memref<1x16x64xf32, #tpu.memory_space<vmem>>, vector<1x2x64xf32>,
    %c0_241 = arith.constant 0 : index
    %c2_242 = arith.constant 2 : index
    %c0_243 = arith.constant 0 : index
    %422 = vector.load %arg12[%c0_241, %c2_242, %c0_243] : memref<1x16x256xf32, #tpu.memory_space<vmem>>, vector<1x2x256xf32>
    %423 = vector.shape_cast %422 : vector<1x2x256xf32> to vector<2x256xf32>
    %c0_244 = arith.constant 0 : index
    %c0_245 = arith.constant 0 : index
    %c0_246 = arith.constant 0 : index
    %424 = vector.load %arg9[%c0_244, %c0_245, %c0_246] : memref<1x2x64xf32, #tpu.memory_space<vmem>>, vector<1x2x64xf32>
    %425 = vector.shape_cast %424 : vector<1x2x64xf32> to vector<2x64xf32>
    %cst_247 = arith.constant dense<0.000000e+00> : vector<2x256xf32>
    %426 = tpu.matmul %425, %359, %cst_247 {dimension_numbers = #tpu.dot_dimension_numbers<[1], [0], [0], [1], [0, 0, 1, 1], [], []>} : vector<2x64xf32>, vector<64x256xf32>, vector<2x256xf32> -> vector<2x256xf32>
    %427 = arith.addf %423, %426 : vector<2x256xf32>
    %428 = vector.extract_strided_slice %427 {offsets = [0, 0], sizes = [2, 64], strides = [1, 1]} : vector<2x256xf32> to vector<2x64xf32>
    %429 = arith.negf %428 : vector<2x64xf32>
    %430 = math.exp %429 : vector<2x64xf32>
    %cst_248 = arith.constant 1.000000e+00 : f32
    %431 = vector.broadcast %cst_248 : f32 to vector<2x64xf32>
    %432 = arith.addf %431, %430 : vector<2x64xf32>
    %433 = arith.divf %431, %432 : vector<2x64xf32>
    %434 = vector.extract_strided_slice %427 {offsets = [0, 64], sizes = [2, 64], strides = [1, 1]} : vector<2x256xf32> to vector<2x64xf32>
    %435 = arith.negf %434 : vector<2x64xf32>
    %436 = math.exp %435 : vector<2x64xf32>
    %cst_249 = arith.constant 1.000000e+00 : f32
    %437 = vector.broadcast %cst_249 : f32 to vector<2x64xf32>
    %438 = arith.addf %437, %436 : vector<2x64xf32>
    %439 = arith.divf %437, %438 : vector<2x64xf32>
    %440 = vector.extract_strided_slice %427 {offsets = [0, 128], sizes = [2, 64], strides = [1, 1]} : vector<2x256xf32> to vector<2x64xf32>
    %441 = math.tanh %440 : vector<2x64xf32>
    %442 = vector.extract_strided_slice %427 {offsets = [0, 192], sizes = [2, 64], strides = [1, 1]} : vector<2x256xf32> to vector<2x64xf32>
    %443 = arith.negf %442 : vector<2x64xf32>
    %444 = math.exp %443 : vector<2x64xf32>
    %cst_250 = arith.constant 1.000000e+00 : f32
    %445 = vector.broadcast %cst_250 : f32 to vector<2x64xf32>
    %446 = arith.addf %445, %444 : vector<2x64xf32>
    %447 = arith.divf %445, %446 : vector<2x64xf32>
    %c0_251 = arith.constant 0 : index
    %c0_252 = arith.constant 0 : index
    %c0_253 = arith.constant 0 : index
    %448 = vector.load %arg10[%c0_251, %c0_252, %c0_253] : memref<1x2x64xf32, #tpu.memory_space<vmem>>, vector<1x2x64xf32>
    %449 = vector.shape_cast %448 : vector<1x2x64xf32> to vector<2x64xf32>
    %450 = arith.mulf %439, %449 : vector<2x64xf32>
    %451 = arith.mulf %433, %441 : vector<2x64xf32>
    %452 = arith.addf %450, %451 : vector<2x64xf32>
    %453 = math.tanh %452 : vector<2x64xf32>
    %454 = arith.mulf %447, %453 : vector<2x64xf32>
    %c0_254 = arith.constant 0 : index
    %c0_255 = arith.constant 0 : index
    %c0_256 = arith.constant 0 : index
    %455 = vector.load %arg10[%c0_254, %c0_255, %c0_256] : memref<1x2x64xf32, #tpu.memory_space<vmem>>, vector<1x2x64xf32>
    %456 = vector.shape_cast %455 : vector<1x2x64xf32> to vector<2x64xf32>
    %457 = vector.shape_cast %452 : vector<2x64xf32> to vector<1x2x64xf32>
    tpu.vector_store %arg10[%c0_254, %c0_255, %c0_256], %457 {strides = array<i32>} : memref<1x2x64xf32, #tpu.memory_space<vmem>>, vector<1x2x64xf32>,
    %c0_257 = arith.constant 0 : index
    %c0_258 = arith.constant 0 : index
    %c0_259 = arith.constant 0 : index
    %458 = vector.load %arg9[%c0_257, %c0_258, %c0_259] : memref<1x2x64xf32, #tpu.memory_space<vmem>>, vector<1x2x64xf32>
    %459 = vector.shape_cast %458 : vector<1x2x64xf32> to vector<2x64xf32>
    %460 = vector.shape_cast %454 : vector<2x64xf32> to vector<1x2x64xf32>
    tpu.vector_store %arg9[%c0_257, %c0_258, %c0_259], %460 {strides = array<i32>} : memref<1x2x64xf32, #tpu.memory_space<vmem>>, vector<1x2x64xf32>,
    %c0_260 = arith.constant 0 : index
    %c2_261 = arith.constant 2 : index
    %c0_262 = arith.constant 0 : index
    %461 = vector.load %arg11[%c0_260, %c2_261, %c0_262] : memref<1x16x64xf32, #tpu.memory_space<vmem>>, vector<1x2x64xf32>
    %462 = vector.shape_cast %461 : vector<1x2x64xf32> to vector<2x64xf32>
    %463 = vector.shape_cast %454 : vector<2x64xf32> to vector<1x2x64xf32>
    tpu.vector_store %arg11[%c0_260, %c2_261, %c0_262], %463 {strides = array<i32>} : memref<1x16x64xf32, #tpu.memory_space<vmem>>, vector<1x2x64xf32>,
    %c0_263 = arith.constant 0 : index
    %c4_264 = arith.constant 4 : index
    %c0_265 = arith.constant 0 : index
    %464 = vector.load %arg12[%c0_263, %c4_264, %c0_265] : memref<1x16x256xf32, #tpu.memory_space<vmem>>, vector<1x2x256xf32>
    %465 = vector.shape_cast %464 : vector<1x2x256xf32> to vector<2x256xf32>
    %c0_266 = arith.constant 0 : index
    %c0_267 = arith.constant 0 : index
    %c0_268 = arith.constant 0 : index
    %466 = vector.load %arg9[%c0_266, %c0_267, %c0_268] : memref<1x2x64xf32, #tpu.memory_space<vmem>>, vector<1x2x64xf32>
    %467 = vector.shape_cast %466 : vector<1x2x64xf32> to vector<2x64xf32>
    %cst_269 = arith.constant dense<0.000000e+00> : vector<2x256xf32>
    %468 = tpu.matmul %467, %359, %cst_269 {dimension_numbers = #tpu.dot_dimension_numbers<[1], [0], [0], [1], [0, 0, 1, 1], [], []>} : vector<2x64xf32>, vector<64x256xf32>, vector<2x256xf32> -> vector<2x256xf32>
    %469 = arith.addf %465, %468 : vector<2x256xf32>
    %470 = vector.extract_strided_slice %469 {offsets = [0, 0], sizes = [2, 64], strides = [1, 1]} : vector<2x256xf32> to vector<2x64xf32>
    %471 = arith.negf %470 : vector<2x64xf32>
    %472 = math.exp %471 : vector<2x64xf32>
    %cst_270 = arith.constant 1.000000e+00 : f32
    %473 = vector.broadcast %cst_270 : f32 to vector<2x64xf32>
    %474 = arith.addf %473, %472 : vector<2x64xf32>
    %475 = arith.divf %473, %474 : vector<2x64xf32>
    %476 = vector.extract_strided_slice %469 {offsets = [0, 64], sizes = [2, 64], strides = [1, 1]} : vector<2x256xf32> to vector<2x64xf32>
    %477 = arith.negf %476 : vector<2x64xf32>
    %478 = math.exp %477 : vector<2x64xf32>
    %cst_271 = arith.constant 1.000000e+00 : f32
    %479 = vector.broadcast %cst_271 : f32 to vector<2x64xf32>
    %480 = arith.addf %479, %478 : vector<2x64xf32>
    %481 = arith.divf %479, %480 : vector<2x64xf32>
    %482 = vector.extract_strided_slice %469 {offsets = [0, 128], sizes = [2, 64], strides = [1, 1]} : vector<2x256xf32> to vector<2x64xf32>
    %483 = math.tanh %482 : vector<2x64xf32>
    %484 = vector.extract_strided_slice %469 {offsets = [0, 192], sizes = [2, 64], strides = [1, 1]} : vector<2x256xf32> to vector<2x64xf32>
    %485 = arith.negf %484 : vector<2x64xf32>
    %486 = math.exp %485 : vector<2x64xf32>
    %cst_272 = arith.constant 1.000000e+00 : f32
    %487 = vector.broadcast %cst_272 : f32 to vector<2x64xf32>
    %488 = arith.addf %487, %486 : vector<2x64xf32>
    %489 = arith.divf %487, %488 : vector<2x64xf32>
    %c0_273 = arith.constant 0 : index
    %c0_274 = arith.constant 0 : index
    %c0_275 = arith.constant 0 : index
    %490 = vector.load %arg10[%c0_273, %c0_274, %c0_275] : memref<1x2x64xf32, #tpu.memory_space<vmem>>, vector<1x2x64xf32>
    %491 = vector.shape_cast %490 : vector<1x2x64xf32> to vector<2x64xf32>
    %492 = arith.mulf %481, %491 : vector<2x64xf32>
    %493 = arith.mulf %475, %483 : vector<2x64xf32>
    %494 = arith.addf %492, %493 : vector<2x64xf32>
    %495 = math.tanh %494 : vector<2x64xf32>
    %496 = arith.mulf %489, %495 : vector<2x64xf32>
    %c0_276 = arith.constant 0 : index
    %c0_277 = arith.constant 0 : index
    %c0_278 = arith.constant 0 : index
    %497 = vector.load %arg10[%c0_276, %c0_277, %c0_278] : memref<1x2x64xf32, #tpu.memory_space<vmem>>, vector<1x2x64xf32>
    %498 = vector.shape_cast %497 : vector<1x2x64xf32> to vector<2x64xf32>
    %499 = vector.shape_cast %494 : vector<2x64xf32> to vector<1x2x64xf32>
    tpu.vector_store %arg10[%c0_276, %c0_277, %c0_278], %499 {strides = array<i32>} : memref<1x2x64xf32, #tpu.memory_space<vmem>>, vector<1x2x64xf32>,
    %c0_279 = arith.constant 0 : index
    %c0_280 = arith.constant 0 : index
    %c0_281 = arith.constant 0 : index
    %500 = vector.load %arg9[%c0_279, %c0_280, %c0_281] : memref<1x2x64xf32, #tpu.memory_space<vmem>>, vector<1x2x64xf32>
    %501 = vector.shape_cast %500 : vector<1x2x64xf32> to vector<2x64xf32>
    %502 = vector.shape_cast %496 : vector<2x64xf32> to vector<1x2x64xf32>
    tpu.vector_store %arg9[%c0_279, %c0_280, %c0_281], %502 {strides = array<i32>} : memref<1x2x64xf32, #tpu.memory_space<vmem>>, vector<1x2x64xf32>,
    %c0_282 = arith.constant 0 : index
    %c4_283 = arith.constant 4 : index
    %c0_284 = arith.constant 0 : index
    %503 = vector.load %arg11[%c0_282, %c4_283, %c0_284] : memref<1x16x64xf32, #tpu.memory_space<vmem>>, vector<1x2x64xf32>
    %504 = vector.shape_cast %503 : vector<1x2x64xf32> to vector<2x64xf32>
    %505 = vector.shape_cast %496 : vector<2x64xf32> to vector<1x2x64xf32>
    tpu.vector_store %arg11[%c0_282, %c4_283, %c0_284], %505 {strides = array<i32>} : memref<1x16x64xf32, #tpu.memory_space<vmem>>, vector<1x2x64xf32>,
    %c0_285 = arith.constant 0 : index
    %c6_286 = arith.constant 6 : index
    %c0_287 = arith.constant 0 : index
    %506 = vector.load %arg12[%c0_285, %c6_286, %c0_287] : memref<1x16x256xf32, #tpu.memory_space<vmem>>, vector<1x2x256xf32>
    %507 = vector.shape_cast %506 : vector<1x2x256xf32> to vector<2x256xf32>
    %c0_288 = arith.constant 0 : index
    %c0_289 = arith.constant 0 : index
    %c0_290 = arith.constant 0 : index
    %508 = vector.load %arg9[%c0_288, %c0_289, %c0_290] : memref<1x2x64xf32, #tpu.memory_space<vmem>>, vector<1x2x64xf32>
    %509 = vector.shape_cast %508 : vector<1x2x64xf32> to vector<2x64xf32>
    %cst_291 = arith.constant dense<0.000000e+00> : vector<2x256xf32>
    %510 = tpu.matmul %509, %359, %cst_291 {dimension_numbers = #tpu.dot_dimension_numbers<[1], [0], [0], [1], [0, 0, 1, 1], [], []>} : vector<2x64xf32>, vector<64x256xf32>, vector<2x256xf32> -> vector<2x256xf32>
    %511 = arith.addf %507, %510 : vector<2x256xf32>
    %512 = vector.extract_strided_slice %511 {offsets = [0, 0], sizes = [2, 64], strides = [1, 1]} : vector<2x256xf32> to vector<2x64xf32>
    %513 = arith.negf %512 : vector<2x64xf32>
    %514 = math.exp %513 : vector<2x64xf32>
    %cst_292 = arith.constant 1.000000e+00 : f32
    %515 = vector.broadcast %cst_292 : f32 to vector<2x64xf32>
    %516 = arith.addf %515, %514 : vector<2x64xf32>
    %517 = arith.divf %515, %516 : vector<2x64xf32>
    %518 = vector.extract_strided_slice %511 {offsets = [0, 64], sizes = [2, 64], strides = [1, 1]} : vector<2x256xf32> to vector<2x64xf32>
    %519 = arith.negf %518 : vector<2x64xf32>
    %520 = math.exp %519 : vector<2x64xf32>
    %cst_293 = arith.constant 1.000000e+00 : f32
    %521 = vector.broadcast %cst_293 : f32 to vector<2x64xf32>
    %522 = arith.addf %521, %520 : vector<2x64xf32>
    %523 = arith.divf %521, %522 : vector<2x64xf32>
    %524 = vector.extract_strided_slice %511 {offsets = [0, 128], sizes = [2, 64], strides = [1, 1]} : vector<2x256xf32> to vector<2x64xf32>
    %525 = math.tanh %524 : vector<2x64xf32>
    %526 = vector.extract_strided_slice %511 {offsets = [0, 192], sizes = [2, 64], strides = [1, 1]} : vector<2x256xf32> to vector<2x64xf32>
    %527 = arith.negf %526 : vector<2x64xf32>
    %528 = math.exp %527 : vector<2x64xf32>
    %cst_294 = arith.constant 1.000000e+00 : f32
    %529 = vector.broadcast %cst_294 : f32 to vector<2x64xf32>
    %530 = arith.addf %529, %528 : vector<2x64xf32>
    %531 = arith.divf %529, %530 : vector<2x64xf32>
    %c0_295 = arith.constant 0 : index
    %c0_296 = arith.constant 0 : index
    %c0_297 = arith.constant 0 : index
    %532 = vector.load %arg10[%c0_295, %c0_296, %c0_297] : memref<1x2x64xf32, #tpu.memory_space<vmem>>, vector<1x2x64xf32>
    %533 = vector.shape_cast %532 : vector<1x2x64xf32> to vector<2x64xf32>
    %534 = arith.mulf %523, %533 : vector<2x64xf32>
    %535 = arith.mulf %517, %525 : vector<2x64xf32>
    %536 = arith.addf %534, %535 : vector<2x64xf32>
    %537 = math.tanh %536 : vector<2x64xf32>
    %538 = arith.mulf %531, %537 : vector<2x64xf32>
    %c0_298 = arith.constant 0 : index
    %c0_299 = arith.constant 0 : index
    %c0_300 = arith.constant 0 : index
    %539 = vector.load %arg10[%c0_298, %c0_299, %c0_300] : memref<1x2x64xf32, #tpu.memory_space<vmem>>, vector<1x2x64xf32>
    %540 = vector.shape_cast %539 : vector<1x2x64xf32> to vector<2x64xf32>
    %541 = vector.shape_cast %536 : vector<2x64xf32> to vector<1x2x64xf32>
    tpu.vector_store %arg10[%c0_298, %c0_299, %c0_300], %541 {strides = array<i32>} : memref<1x2x64xf32, #tpu.memory_space<vmem>>, vector<1x2x64xf32>,
    %c0_301 = arith.constant 0 : index
    %c0_302 = arith.constant 0 : index
    %c0_303 = arith.constant 0 : index
    %542 = vector.load %arg9[%c0_301, %c0_302, %c0_303] : memref<1x2x64xf32, #tpu.memory_space<vmem>>, vector<1x2x64xf32>
    %543 = vector.shape_cast %542 : vector<1x2x64xf32> to vector<2x64xf32>
    %544 = vector.shape_cast %538 : vector<2x64xf32> to vector<1x2x64xf32>
    tpu.vector_store %arg9[%c0_301, %c0_302, %c0_303], %544 {strides = array<i32>} : memref<1x2x64xf32, #tpu.memory_space<vmem>>, vector<1x2x64xf32>,
    %c0_304 = arith.constant 0 : index
    %c6_305 = arith.constant 6 : index
    %c0_306 = arith.constant 0 : index
    %545 = vector.load %arg11[%c0_304, %c6_305, %c0_306] : memref<1x16x64xf32, #tpu.memory_space<vmem>>, vector<1x2x64xf32>
    %546 = vector.shape_cast %545 : vector<1x2x64xf32> to vector<2x64xf32>
    %547 = vector.shape_cast %538 : vector<2x64xf32> to vector<1x2x64xf32>
    tpu.vector_store %arg11[%c0_304, %c6_305, %c0_306], %547 {strides = array<i32>} : memref<1x16x64xf32, #tpu.memory_space<vmem>>, vector<1x2x64xf32>,
    %c0_307 = arith.constant 0 : index
    %c8_308 = arith.constant 8 : index
    %c0_309 = arith.constant 0 : index
    %548 = vector.load %arg12[%c0_307, %c8_308, %c0_309] : memref<1x16x256xf32, #tpu.memory_space<vmem>>, vector<1x2x256xf32>
    %549 = vector.shape_cast %548 : vector<1x2x256xf32> to vector<2x256xf32>
    %c0_310 = arith.constant 0 : index
    %c0_311 = arith.constant 0 : index
    %c0_312 = arith.constant 0 : index
    %550 = vector.load %arg9[%c0_310, %c0_311, %c0_312] : memref<1x2x64xf32, #tpu.memory_space<vmem>>, vector<1x2x64xf32>
    %551 = vector.shape_cast %550 : vector<1x2x64xf32> to vector<2x64xf32>
    %cst_313 = arith.constant dense<0.000000e+00> : vector<2x256xf32>
    %552 = tpu.matmul %551, %359, %cst_313 {dimension_numbers = #tpu.dot_dimension_numbers<[1], [0], [0], [1], [0, 0, 1, 1], [], []>} : vector<2x64xf32>, vector<64x256xf32>, vector<2x256xf32> -> vector<2x256xf32>
    %553 = arith.addf %549, %552 : vector<2x256xf32>
    %554 = vector.extract_strided_slice %553 {offsets = [0, 0], sizes = [2, 64], strides = [1, 1]} : vector<2x256xf32> to vector<2x64xf32>
    %555 = arith.negf %554 : vector<2x64xf32>
    %556 = math.exp %555 : vector<2x64xf32>
    %cst_314 = arith.constant 1.000000e+00 : f32
    %557 = vector.broadcast %cst_314 : f32 to vector<2x64xf32>
    %558 = arith.addf %557, %556 : vector<2x64xf32>
    %559 = arith.divf %557, %558 : vector<2x64xf32>
    %560 = vector.extract_strided_slice %553 {offsets = [0, 64], sizes = [2, 64], strides = [1, 1]} : vector<2x256xf32> to vector<2x64xf32>
    %561 = arith.negf %560 : vector<2x64xf32>
    %562 = math.exp %561 : vector<2x64xf32>
    %cst_315 = arith.constant 1.000000e+00 : f32
    %563 = vector.broadcast %cst_315 : f32 to vector<2x64xf32>
    %564 = arith.addf %563, %562 : vector<2x64xf32>
    %565 = arith.divf %563, %564 : vector<2x64xf32>
    %566 = vector.extract_strided_slice %553 {offsets = [0, 128], sizes = [2, 64], strides = [1, 1]} : vector<2x256xf32> to vector<2x64xf32>
    %567 = math.tanh %566 : vector<2x64xf32>
    %568 = vector.extract_strided_slice %553 {offsets = [0, 192], sizes = [2, 64], strides = [1, 1]} : vector<2x256xf32> to vector<2x64xf32>
    %569 = arith.negf %568 : vector<2x64xf32>
    %570 = math.exp %569 : vector<2x64xf32>
    %cst_316 = arith.constant 1.000000e+00 : f32
    %571 = vector.broadcast %cst_316 : f32 to vector<2x64xf32>
    %572 = arith.addf %571, %570 : vector<2x64xf32>
    %573 = arith.divf %571, %572 : vector<2x64xf32>
    %c0_317 = arith.constant 0 : index
    %c0_318 = arith.constant 0 : index
    %c0_319 = arith.constant 0 : index
    %574 = vector.load %arg10[%c0_317, %c0_318, %c0_319] : memref<1x2x64xf32, #tpu.memory_space<vmem>>, vector<1x2x64xf32>
    %575 = vector.shape_cast %574 : vector<1x2x64xf32> to vector<2x64xf32>
    %576 = arith.mulf %565, %575 : vector<2x64xf32>
    %577 = arith.mulf %559, %567 : vector<2x64xf32>
    %578 = arith.addf %576, %577 : vector<2x64xf32>
    %579 = math.tanh %578 : vector<2x64xf32>
    %580 = arith.mulf %573, %579 : vector<2x64xf32>
    %c0_320 = arith.constant 0 : index
    %c0_321 = arith.constant 0 : index
    %c0_322 = arith.constant 0 : index
    %581 = vector.load %arg10[%c0_320, %c0_321, %c0_322] : memref<1x2x64xf32, #tpu.memory_space<vmem>>, vector<1x2x64xf32>
    %582 = vector.shape_cast %581 : vector<1x2x64xf32> to vector<2x64xf32>
    %583 = vector.shape_cast %578 : vector<2x64xf32> to vector<1x2x64xf32>
    tpu.vector_store %arg10[%c0_320, %c0_321, %c0_322], %583 {strides = array<i32>} : memref<1x2x64xf32, #tpu.memory_space<vmem>>, vector<1x2x64xf32>,
    %c0_323 = arith.constant 0 : index
    %c0_324 = arith.constant 0 : index
    %c0_325 = arith.constant 0 : index
    %584 = vector.load %arg9[%c0_323, %c0_324, %c0_325] : memref<1x2x64xf32, #tpu.memory_space<vmem>>, vector<1x2x64xf32>
    %585 = vector.shape_cast %584 : vector<1x2x64xf32> to vector<2x64xf32>
    %586 = vector.shape_cast %580 : vector<2x64xf32> to vector<1x2x64xf32>
    tpu.vector_store %arg9[%c0_323, %c0_324, %c0_325], %586 {strides = array<i32>} : memref<1x2x64xf32, #tpu.memory_space<vmem>>, vector<1x2x64xf32>,
    %c0_326 = arith.constant 0 : index
    %c8_327 = arith.constant 8 : index
    %c0_328 = arith.constant 0 : index
    %587 = vector.load %arg11[%c0_326, %c8_327, %c0_328] : memref<1x16x64xf32, #tpu.memory_space<vmem>>, vector<1x2x64xf32>
    %588 = vector.shape_cast %587 : vector<1x2x64xf32> to vector<2x64xf32>
    %589 = vector.shape_cast %580 : vector<2x64xf32> to vector<1x2x64xf32>
    tpu.vector_store %arg11[%c0_326, %c8_327, %c0_328], %589 {strides = array<i32>} : memref<1x16x64xf32, #tpu.memory_space<vmem>>, vector<1x2x64xf32>,
    %c0_329 = arith.constant 0 : index
    %c10_330 = arith.constant 10 : index
    %c0_331 = arith.constant 0 : index
    %590 = vector.load %arg12[%c0_329, %c10_330, %c0_331] : memref<1x16x256xf32, #tpu.memory_space<vmem>>, vector<1x2x256xf32>
    %591 = vector.shape_cast %590 : vector<1x2x256xf32> to vector<2x256xf32>
    %c0_332 = arith.constant 0 : index
    %c0_333 = arith.constant 0 : index
    %c0_334 = arith.constant 0 : index
    %592 = vector.load %arg9[%c0_332, %c0_333, %c0_334] : memref<1x2x64xf32, #tpu.memory_space<vmem>>, vector<1x2x64xf32>
    %593 = vector.shape_cast %592 : vector<1x2x64xf32> to vector<2x64xf32>
    %cst_335 = arith.constant dense<0.000000e+00> : vector<2x256xf32>
    %594 = tpu.matmul %593, %359, %cst_335 {dimension_numbers = #tpu.dot_dimension_numbers<[1], [0], [0], [1], [0, 0, 1, 1], [], []>} : vector<2x64xf32>, vector<64x256xf32>, vector<2x256xf32> -> vector<2x256xf32>
    %595 = arith.addf %591, %594 : vector<2x256xf32>
    %596 = vector.extract_strided_slice %595 {offsets = [0, 0], sizes = [2, 64], strides = [1, 1]} : vector<2x256xf32> to vector<2x64xf32>
    %597 = arith.negf %596 : vector<2x64xf32>
    %598 = math.exp %597 : vector<2x64xf32>
    %cst_336 = arith.constant 1.000000e+00 : f32
    %599 = vector.broadcast %cst_336 : f32 to vector<2x64xf32>
    %600 = arith.addf %599, %598 : vector<2x64xf32>
    %601 = arith.divf %599, %600 : vector<2x64xf32>
    %602 = vector.extract_strided_slice %595 {offsets = [0, 64], sizes = [2, 64], strides = [1, 1]} : vector<2x256xf32> to vector<2x64xf32>
    %603 = arith.negf %602 : vector<2x64xf32>
    %604 = math.exp %603 : vector<2x64xf32>
    %cst_337 = arith.constant 1.000000e+00 : f32
    %605 = vector.broadcast %cst_337 : f32 to vector<2x64xf32>
    %606 = arith.addf %605, %604 : vector<2x64xf32>
    %607 = arith.divf %605, %606 : vector<2x64xf32>
    %608 = vector.extract_strided_slice %595 {offsets = [0, 128], sizes = [2, 64], strides = [1, 1]} : vector<2x256xf32> to vector<2x64xf32>
    %609 = math.tanh %608 : vector<2x64xf32>
    %610 = vector.extract_strided_slice %595 {offsets = [0, 192], sizes = [2, 64], strides = [1, 1]} : vector<2x256xf32> to vector<2x64xf32>
    %611 = arith.negf %610 : vector<2x64xf32>
    %612 = math.exp %611 : vector<2x64xf32>
    %cst_338 = arith.constant 1.000000e+00 : f32
    %613 = vector.broadcast %cst_338 : f32 to vector<2x64xf32>
    %614 = arith.addf %613, %612 : vector<2x64xf32>
    %615 = arith.divf %613, %614 : vector<2x64xf32>
    %c0_339 = arith.constant 0 : index
    %c0_340 = arith.constant 0 : index
    %c0_341 = arith.constant 0 : index
    %616 = vector.load %arg10[%c0_339, %c0_340, %c0_341] : memref<1x2x64xf32, #tpu.memory_space<vmem>>, vector<1x2x64xf32>
    %617 = vector.shape_cast %616 : vector<1x2x64xf32> to vector<2x64xf32>
    %618 = arith.mulf %607, %617 : vector<2x64xf32>
    %619 = arith.mulf %601, %609 : vector<2x64xf32>
    %620 = arith.addf %618, %619 : vector<2x64xf32>
    %621 = math.tanh %620 : vector<2x64xf32>
    %622 = arith.mulf %615, %621 : vector<2x64xf32>
    %c0_342 = arith.constant 0 : index
    %c0_343 = arith.constant 0 : index
    %c0_344 = arith.constant 0 : index
    %623 = vector.load %arg10[%c0_342, %c0_343, %c0_344] : memref<1x2x64xf32, #tpu.memory_space<vmem>>, vector<1x2x64xf32>
    %624 = vector.shape_cast %623 : vector<1x2x64xf32> to vector<2x64xf32>
    %625 = vector.shape_cast %620 : vector<2x64xf32> to vector<1x2x64xf32>
    tpu.vector_store %arg10[%c0_342, %c0_343, %c0_344], %625 {strides = array<i32>} : memref<1x2x64xf32, #tpu.memory_space<vmem>>, vector<1x2x64xf32>,
    %c0_345 = arith.constant 0 : index
    %c0_346 = arith.constant 0 : index
    %c0_347 = arith.constant 0 : index
    %626 = vector.load %arg9[%c0_345, %c0_346, %c0_347] : memref<1x2x64xf32, #tpu.memory_space<vmem>>, vector<1x2x64xf32>
    %627 = vector.shape_cast %626 : vector<1x2x64xf32> to vector<2x64xf32>
    %628 = vector.shape_cast %622 : vector<2x64xf32> to vector<1x2x64xf32>
    tpu.vector_store %arg9[%c0_345, %c0_346, %c0_347], %628 {strides = array<i32>} : memref<1x2x64xf32, #tpu.memory_space<vmem>>, vector<1x2x64xf32>,
    %c0_348 = arith.constant 0 : index
    %c10_349 = arith.constant 10 : index
    %c0_350 = arith.constant 0 : index
    %629 = vector.load %arg11[%c0_348, %c10_349, %c0_350] : memref<1x16x64xf32, #tpu.memory_space<vmem>>, vector<1x2x64xf32>
    %630 = vector.shape_cast %629 : vector<1x2x64xf32> to vector<2x64xf32>
    %631 = vector.shape_cast %622 : vector<2x64xf32> to vector<1x2x64xf32>
    tpu.vector_store %arg11[%c0_348, %c10_349, %c0_350], %631 {strides = array<i32>} : memref<1x16x64xf32, #tpu.memory_space<vmem>>, vector<1x2x64xf32>,
    %c0_351 = arith.constant 0 : index
    %c12_352 = arith.constant 12 : index
    %c0_353 = arith.constant 0 : index
    %632 = vector.load %arg12[%c0_351, %c12_352, %c0_353] : memref<1x16x256xf32, #tpu.memory_space<vmem>>, vector<1x2x256xf32>
    %633 = vector.shape_cast %632 : vector<1x2x256xf32> to vector<2x256xf32>
    %c0_354 = arith.constant 0 : index
    %c0_355 = arith.constant 0 : index
    %c0_356 = arith.constant 0 : index
    %634 = vector.load %arg9[%c0_354, %c0_355, %c0_356] : memref<1x2x64xf32, #tpu.memory_space<vmem>>, vector<1x2x64xf32>
    %635 = vector.shape_cast %634 : vector<1x2x64xf32> to vector<2x64xf32>
    %cst_357 = arith.constant dense<0.000000e+00> : vector<2x256xf32>
    %636 = tpu.matmul %635, %359, %cst_357 {dimension_numbers = #tpu.dot_dimension_numbers<[1], [0], [0], [1], [0, 0, 1, 1], [], []>} : vector<2x64xf32>, vector<64x256xf32>, vector<2x256xf32> -> vector<2x256xf32>
    %637 = arith.addf %633, %636 : vector<2x256xf32>
    %638 = vector.extract_strided_slice %637 {offsets = [0, 0], sizes = [2, 64], strides = [1, 1]} : vector<2x256xf32> to vector<2x64xf32>
    %639 = arith.negf %638 : vector<2x64xf32>
    %640 = math.exp %639 : vector<2x64xf32>
    %cst_358 = arith.constant 1.000000e+00 : f32
    %641 = vector.broadcast %cst_358 : f32 to vector<2x64xf32>
    %642 = arith.addf %641, %640 : vector<2x64xf32>
    %643 = arith.divf %641, %642 : vector<2x64xf32>
    %644 = vector.extract_strided_slice %637 {offsets = [0, 64], sizes = [2, 64], strides = [1, 1]} : vector<2x256xf32> to vector<2x64xf32>
    %645 = arith.negf %644 : vector<2x64xf32>
    %646 = math.exp %645 : vector<2x64xf32>
    %cst_359 = arith.constant 1.000000e+00 : f32
    %647 = vector.broadcast %cst_359 : f32 to vector<2x64xf32>
    %648 = arith.addf %647, %646 : vector<2x64xf32>
    %649 = arith.divf %647, %648 : vector<2x64xf32>
    %650 = vector.extract_strided_slice %637 {offsets = [0, 128], sizes = [2, 64], strides = [1, 1]} : vector<2x256xf32> to vector<2x64xf32>
    %651 = math.tanh %650 : vector<2x64xf32>
    %652 = vector.extract_strided_slice %637 {offsets = [0, 192], sizes = [2, 64], strides = [1, 1]} : vector<2x256xf32> to vector<2x64xf32>
    %653 = arith.negf %652 : vector<2x64xf32>
    %654 = math.exp %653 : vector<2x64xf32>
    %cst_360 = arith.constant 1.000000e+00 : f32
    %655 = vector.broadcast %cst_360 : f32 to vector<2x64xf32>
    %656 = arith.addf %655, %654 : vector<2x64xf32>
    %657 = arith.divf %655, %656 : vector<2x64xf32>
    %c0_361 = arith.constant 0 : index
    %c0_362 = arith.constant 0 : index
    %c0_363 = arith.constant 0 : index
    %658 = vector.load %arg10[%c0_361, %c0_362, %c0_363] : memref<1x2x64xf32, #tpu.memory_space<vmem>>, vector<1x2x64xf32>
    %659 = vector.shape_cast %658 : vector<1x2x64xf32> to vector<2x64xf32>
    %660 = arith.mulf %649, %659 : vector<2x64xf32>
    %661 = arith.mulf %643, %651 : vector<2x64xf32>
    %662 = arith.addf %660, %661 : vector<2x64xf32>
    %663 = math.tanh %662 : vector<2x64xf32>
    %664 = arith.mulf %657, %663 : vector<2x64xf32>
    %c0_364 = arith.constant 0 : index
    %c0_365 = arith.constant 0 : index
    %c0_366 = arith.constant 0 : index
    %665 = vector.load %arg10[%c0_364, %c0_365, %c0_366] : memref<1x2x64xf32, #tpu.memory_space<vmem>>, vector<1x2x64xf32>
    %666 = vector.shape_cast %665 : vector<1x2x64xf32> to vector<2x64xf32>
    %667 = vector.shape_cast %662 : vector<2x64xf32> to vector<1x2x64xf32>
    tpu.vector_store %arg10[%c0_364, %c0_365, %c0_366], %667 {strides = array<i32>} : memref<1x2x64xf32, #tpu.memory_space<vmem>>, vector<1x2x64xf32>,
    %c0_367 = arith.constant 0 : index
    %c0_368 = arith.constant 0 : index
    %c0_369 = arith.constant 0 : index
    %668 = vector.load %arg9[%c0_367, %c0_368, %c0_369] : memref<1x2x64xf32, #tpu.memory_space<vmem>>, vector<1x2x64xf32>
    %669 = vector.shape_cast %668 : vector<1x2x64xf32> to vector<2x64xf32>
    %670 = vector.shape_cast %664 : vector<2x64xf32> to vector<1x2x64xf32>
    tpu.vector_store %arg9[%c0_367, %c0_368, %c0_369], %670 {strides = array<i32>} : memref<1x2x64xf32, #tpu.memory_space<vmem>>, vector<1x2x64xf32>,
    %c0_370 = arith.constant 0 : index
    %c12_371 = arith.constant 12 : index
    %c0_372 = arith.constant 0 : index
    %671 = vector.load %arg11[%c0_370, %c12_371, %c0_372] : memref<1x16x64xf32, #tpu.memory_space<vmem>>, vector<1x2x64xf32>
    %672 = vector.shape_cast %671 : vector<1x2x64xf32> to vector<2x64xf32>
    %673 = vector.shape_cast %664 : vector<2x64xf32> to vector<1x2x64xf32>
    tpu.vector_store %arg11[%c0_370, %c12_371, %c0_372], %673 {strides = array<i32>} : memref<1x16x64xf32, #tpu.memory_space<vmem>>, vector<1x2x64xf32>,
    %c0_373 = arith.constant 0 : index
    %c14_374 = arith.constant 14 : index
    %c0_375 = arith.constant 0 : index
    %674 = vector.load %arg12[%c0_373, %c14_374, %c0_375] : memref<1x16x256xf32, #tpu.memory_space<vmem>>, vector<1x2x256xf32>
    %675 = vector.shape_cast %674 : vector<1x2x256xf32> to vector<2x256xf32>
    %c0_376 = arith.constant 0 : index
    %c0_377 = arith.constant 0 : index
    %c0_378 = arith.constant 0 : index
    %676 = vector.load %arg9[%c0_376, %c0_377, %c0_378] : memref<1x2x64xf32, #tpu.memory_space<vmem>>, vector<1x2x64xf32>
    %677 = vector.shape_cast %676 : vector<1x2x64xf32> to vector<2x64xf32>
    %cst_379 = arith.constant dense<0.000000e+00> : vector<2x256xf32>
    %678 = tpu.matmul %677, %359, %cst_379 {dimension_numbers = #tpu.dot_dimension_numbers<[1], [0], [0], [1], [0, 0, 1, 1], [], []>} : vector<2x64xf32>, vector<64x256xf32>, vector<2x256xf32> -> vector<2x256xf32>
    %679 = arith.addf %675, %678 : vector<2x256xf32>
    %680 = vector.extract_strided_slice %679 {offsets = [0, 0], sizes = [2, 64], strides = [1, 1]} : vector<2x256xf32> to vector<2x64xf32>
    %681 = arith.negf %680 : vector<2x64xf32>
    %682 = math.exp %681 : vector<2x64xf32>
    %cst_380 = arith.constant 1.000000e+00 : f32
    %683 = vector.broadcast %cst_380 : f32 to vector<2x64xf32>
    %684 = arith.addf %683, %682 : vector<2x64xf32>
    %685 = arith.divf %683, %684 : vector<2x64xf32>
    %686 = vector.extract_strided_slice %679 {offsets = [0, 64], sizes = [2, 64], strides = [1, 1]} : vector<2x256xf32> to vector<2x64xf32>
    %687 = arith.negf %686 : vector<2x64xf32>
    %688 = math.exp %687 : vector<2x64xf32>
    %cst_381 = arith.constant 1.000000e+00 : f32
    %689 = vector.broadcast %cst_381 : f32 to vector<2x64xf32>
    %690 = arith.addf %689, %688 : vector<2x64xf32>
    %691 = arith.divf %689, %690 : vector<2x64xf32>
    %692 = vector.extract_strided_slice %679 {offsets = [0, 128], sizes = [2, 64], strides = [1, 1]} : vector<2x256xf32> to vector<2x64xf32>
    %693 = math.tanh %692 : vector<2x64xf32>
    %694 = vector.extract_strided_slice %679 {offsets = [0, 192], sizes = [2, 64], strides = [1, 1]} : vector<2x256xf32> to vector<2x64xf32>
    %695 = arith.negf %694 : vector<2x64xf32>
    %696 = math.exp %695 : vector<2x64xf32>
    %cst_382 = arith.constant 1.000000e+00 : f32
    %697 = vector.broadcast %cst_382 : f32 to vector<2x64xf32>
    %698 = arith.addf %697, %696 : vector<2x64xf32>
    %699 = arith.divf %697, %698 : vector<2x64xf32>
    %c0_383 = arith.constant 0 : index
    %c0_384 = arith.constant 0 : index
    %c0_385 = arith.constant 0 : index
    %700 = vector.load %arg10[%c0_383, %c0_384, %c0_385] : memref<1x2x64xf32, #tpu.memory_space<vmem>>, vector<1x2x64xf32>
    %701 = vector.shape_cast %700 : vector<1x2x64xf32> to vector<2x64xf32>
    %702 = arith.mulf %691, %701 : vector<2x64xf32>
    %703 = arith.mulf %685, %693 : vector<2x64xf32>
    %704 = arith.addf %702, %703 : vector<2x64xf32>
    %705 = math.tanh %704 : vector<2x64xf32>
    %706 = arith.mulf %699, %705 : vector<2x64xf32>
    %c0_386 = arith.constant 0 : index
    %c0_387 = arith.constant 0 : index
    %c0_388 = arith.constant 0 : index
    %707 = vector.load %arg10[%c0_386, %c0_387, %c0_388] : memref<1x2x64xf32, #tpu.memory_space<vmem>>, vector<1x2x64xf32>
    %708 = vector.shape_cast %707 : vector<1x2x64xf32> to vector<2x64xf32>
    %709 = vector.shape_cast %704 : vector<2x64xf32> to vector<1x2x64xf32>
    tpu.vector_store %arg10[%c0_386, %c0_387, %c0_388], %709 {strides = array<i32>} : memref<1x2x64xf32, #tpu.memory_space<vmem>>, vector<1x2x64xf32>,
    %c0_389 = arith.constant 0 : index
    %c0_390 = arith.constant 0 : index
    %c0_391 = arith.constant 0 : index
    %710 = vector.load %arg9[%c0_389, %c0_390, %c0_391] : memref<1x2x64xf32, #tpu.memory_space<vmem>>, vector<1x2x64xf32>
    %711 = vector.shape_cast %710 : vector<1x2x64xf32> to vector<2x64xf32>
    %712 = vector.shape_cast %706 : vector<2x64xf32> to vector<1x2x64xf32>
    tpu.vector_store %arg9[%c0_389, %c0_390, %c0_391], %712 {strides = array<i32>} : memref<1x2x64xf32, #tpu.memory_space<vmem>>, vector<1x2x64xf32>,
    %c0_392 = arith.constant 0 : index
    %c14_393 = arith.constant 14 : index
    %c0_394 = arith.constant 0 : index
    %713 = vector.load %arg11[%c0_392, %c14_393, %c0_394] : memref<1x16x64xf32, #tpu.memory_space<vmem>>, vector<1x2x64xf32>
    %714 = vector.shape_cast %713 : vector<1x2x64xf32> to vector<2x64xf32>
    %715 = vector.shape_cast %706 : vector<2x64xf32> to vector<1x2x64xf32>
    tpu.vector_store %arg11[%c0_392, %c14_393, %c0_394], %715 {strides = array<i32>} : memref<1x16x64xf32, #tpu.memory_space<vmem>>, vector<1x2x64xf32>,
    %c0_395 = arith.constant 0 : index
    %c0_396 = arith.constant 0 : index
    %c0_397 = arith.constant 0 : index
    %716 = vector.load %arg11[%c0_395, %c0_396, %c0_397] : memref<1x16x64xf32, #tpu.memory_space<vmem>>, vector<1x16x64xf32>
    %717 = vector.shape_cast %716 : vector<1x16x64xf32> to vector<16x64xf32>
    %c0_398 = arith.constant 0 : index
    %c0_399 = arith.constant 0 : index
    %c0_400 = arith.constant 0 : index
    %718 = vector.load %arg6[%c0_398, %c0_399, %c0_400] : memref<1x64x8xf32, #tpu.memory_space<vmem>>, vector<1x64x8xf32>
    %719 = vector.shape_cast %718 : vector<1x64x8xf32> to vector<64x8xf32>
    %cst_401 = arith.constant dense<0.000000e+00> : vector<16x8xf32>
    %720 = tpu.matmul %717, %719, %cst_401 {dimension_numbers = #tpu.dot_dimension_numbers<[1], [0], [0], [1], [0, 0, 1, 1], [], []>} : vector<16x64xf32>, vector<64x8xf32>, vector<16x8xf32> -> vector<16x8xf32>
    %c0_402 = arith.constant 0 : index
    %c0_403 = arith.constant 0 : index
    %c0_404 = arith.constant 0 : index
    %721 = vector.load %arg7[%c0_402, %c0_403, %c0_404] : memref<1x1x8xf32, #tpu.memory_space<vmem>>, vector<1x1x8xf32>
    %722 = vector.shape_cast %721 : vector<1x1x8xf32> to vector<1x8xf32>
    %723 = vector.broadcast %722 : vector<1x8xf32> to vector<16x8xf32>
    %724 = arith.addf %720, %723 : vector<16x8xf32>
    %c0_405 = arith.constant 0 : index
    %c0_406 = arith.constant 0 : index
    %c0_407 = arith.constant 0 : index
    %725 = vector.load %arg8[%c0_405, %c0_406, %c0_407] : memref<1x16x8xf32, #tpu.memory_space<vmem>>, vector<1x16x8xf32>
    %726 = vector.shape_cast %725 : vector<1x16x8xf32> to vector<16x8xf32>
    %727 = vector.shape_cast %724 : vector<16x8xf32> to vector<1x16x8xf32>
    tpu.vector_store %arg8[%c0_405, %c0_406, %c0_407], %727 {strides = array<i32>} : memref<1x16x8xf32, #tpu.memory_space<vmem>>, vector<1x16x8xf32>,
    return
  }
  func.func @transform_0(%arg0: i32) -> (i32, i32, i32) {
    %c0_i32 = arith.constant 0 : i32
    %c0_i32_0 = arith.constant 0 : i32
    %c0_i32_1 = arith.constant 0 : i32
    return %arg0, %c0_i32, %c0_i32_0 : i32, i32, i32
  }
  func.func @transform_1(%arg0: i32) -> (i32, i32, i32) {
    %c0_i32 = arith.constant 0 : i32
    %c0_i32_0 = arith.constant 0 : i32
    %c0_i32_1 = arith.constant 0 : i32
    return %arg0, %c0_i32, %c0_i32_0 : i32, i32, i32
  }
  func.func @transform_2(%arg0: i32) -> (i32, i32, i32, i32) {
    %c0_i32 = arith.constant 0 : i32
    %c0_i32_0 = arith.constant 0 : i32
    %c0_i32_1 = arith.constant 0 : i32
    %c0_i32_2 = arith.constant 0 : i32
    return %arg0, %c0_i32, %c0_i32_0, %c0_i32_1 : i32, i32, i32, i32
  }
  func.func @transform_3(%arg0: i32) -> (i32, i32, i32, i32) {
    %c0_i32 = arith.constant 0 : i32
    %c0_i32_0 = arith.constant 0 : i32
    %c0_i32_1 = arith.constant 0 : i32
    %c0_i32_2 = arith.constant 0 : i32
    return %arg0, %c0_i32, %c0_i32_0, %c0_i32_1 : i32, i32, i32, i32
  }
  func.func @transform_4(%arg0: i32) -> (i32, i32, i32, i32) {
    %c0_i32 = arith.constant 0 : i32
    %c0_i32_0 = arith.constant 0 : i32
    %c0_i32_1 = arith.constant 0 : i32
    %c0_i32_2 = arith.constant 0 : i32
    return %arg0, %c0_i32, %c0_i32_0, %c0_i32_1 : i32, i32, i32, i32
  }
  func.func @transform_5(%arg0: i32) -> (i32, i32, i32) {
    %c0_i32 = arith.constant 0 : i32
    %c0_i32_0 = arith.constant 0 : i32
    %c0_i32_1 = arith.constant 0 : i32
    return %arg0, %c0_i32, %c0_i32_0 : i32, i32, i32
  }
  func.func @transform_6(%arg0: i32) -> (i32, i32, i32) {
    %c0_i32 = arith.constant 0 : i32
    %c0_i32_0 = arith.constant 0 : i32
    %c0_i32_1 = arith.constant 0 : i32
    return %arg0, %c0_i32, %c0_i32_0 : i32, i32, i32
  }
  func.func @transform_7(%arg0: i32) -> (i32, i32, i32) {
    %c0_i32 = arith.constant 0 : i32
    %c0_i32_0 = arith.constant 0 : i32
    %c0_i32_1 = arith.constant 0 : i32
    return %arg0, %c0_i32, %c0_i32_0 : i32, i32, i32
  }
}

</mosaic_0001>

<bundles_post_ra>
// kernel: channelwise_lstm_forward.1
= control target key start
LH: loop header
LB: loop body
LE: loop exit
PB: predicated region body
PF: predicated region fallthrough
CT: control target
= control target key end

     0   :  { %s2995_s24 = smov 0   ;;  %s3619_s0 = inlined_call_operand.vmem [shape: f32[2,16,8], index: 0, kind: input, shape index: {}]   ;;  %s3620_s1 = inlined_call_operand.vmem [shape: f32[2,8,256], index: 1, kind: input, shape index: {}]   ;;  %s3621_s2 = inlined_call_operand.vmem [shape: f32[2,1,64,256], index: 2, kind: input, shape index: {}]   ;;  %s3622_s3 = inlined_call_operand.vmem [shape: f32[2,2,64,256], index: 3, kind: input, shape index: {}]   ;;  %s3623_s4 = inlined_call_operand.vmem [shape: f32[2,2,1,256], index: 4, kind: input, shape index: {}]   ;;  %s3624_s5 = inlined_call_operand.vmem [shape: f32[2,64,8], index: 5, kind: input, shape index: {}]   ;;  %s3625_s6 = inlined_call_operand.vmem [shape: f32[2,1,8], index: 6, kind: input, shape index: {}]   ;;  %s3626_s7 = inlined_call_operand.vmem [shape: f32[2,16,8], index: 7, kind: output, shape index: {}]  }
   0x1 LB: > { %s2625_s25 = sadd.s32 4294967295, %s2951_s24   ;;  %p2629_p0 = scmp.ge.s32.totalorder %s2951_s24, 1  ;;  %s2951_s24 = sphi %s2995_s24, %s17_s24  }
   0x2   : > { %p294_p1 = scmp.lt.s32.totalorder %s2951_s24, 3 }
   0x4   : > { %p295_p2 = pnand %p2629_p0, %p294_p1 }
   0x5   : > { %p353_p3 = scmp.lt.s32.totalorder (!%p295_p2), %s2625_s25, 1  ;;  %s2954_s14 = smov (!%p295_p2), 64  }
   0x6   : > { %298 = sbr.rel (%p295_p2) target bundleno = 6511 (0x196f), region = 48 }
   0xb   : > { %vm407_vm0 = vcmask 517120   ;;  %v2953_v0 = vmov 0.0   ;;  %s3628_s25 = smov (!%p353_p3, %s2625_s25), 1  ;;  %vm419_vm1 = vcmask 64512   ;;  %vm479_vm2 = vcmask 523264  }
   0xc   : > { %408 = vst.msk [vmem:[#allocation2] sm:$0x3] %vm407_vm0, %v2953_v0  ;;  %s2739_s26 = sshll.u32 %s3628_s25, 8  ;;  %s3011_s27 = sshll.u32 %s3628_s25, 4 }
   0xd   : > { %409 = vst.msk [vmem:[#allocation3] sm:$0x3] %vm407_vm0, %v2953_v0  ;;  %s3016_s30 = scalar_lea.vmem %s3622_s3, %s2739_s26  ;;  %s362_s10 = scalar_lea.vmem %s3620_s1, %s3011_s27 }
   0xe   : > { %v3023_v1 = vld [vmem:[%s3016_s30 + $0x70] sm:$0xff]  ;;  %v3026_v2 = vld [vmem:[%s3016_s30 + $0x60] sm:$0xff]  ;;  %s3032_s13 = scalar_lea.vmem %s3619_s0, %s3011_s27  ;;  %v3036_v3 = vld [vmem:[%s3016_s30 + $0x78] sm:$0xff]  ;;  %s2638_s15 = sshll.u32 %s3628_s25, 2 }
   0xf   : > { %491 = vmatpush.msra.mxu2 %v3023_v1  ;;  %v3039_v4 = vld [vmem:[%s3016_s30 + $0x50] sm:$0xff]  ;;  %511 = vmatpush.msra.mxu3 %v3036_v3  ;;  %v412_v5 = vld [vmem:[%s362_s10] sm:$0xff]  ;;  %v3043_v6 = vld [vmem:[%s3016_s30 + $0x68] sm:$0xff]  ;;  %s3166_s18 = scalar_lea.vmem %s3623_s4, %s2638_s15  ;;  %s2738_s19 = sshll.u32 %s3628_s25, 7 }
  0x10   : > { %441 = vmatpush.msra.mxu0 %v412_v5  ;;  %v410_v7 = vld [vmem:[%s3032_s13] sm:$0xff]  ;;  %v3048_v8 = vld [vmem:[%s3016_s30 + $0x58] sm:$0xff]  ;;  %v3057_v10 = vld [vmem:[%s3016_s30 + $0x48] sm:$0xff]  ;;  %s3284_s22 = scalar_lea.vmem %s3621_s2, %s2738_s19  ;;  %s2740_s23 = sshll.u32 %s3628_s25, 6 }
  0x11   : > { %492 = vmatpush.msra.mxu2 %v3026_v2  ;;  %v3051_v9 = vld [vmem:[%s3016_s30 + $0x40] sm:$0xff]  ;;  %512 = vmatpush.msra.mxu3 %v3043_v6  ;;  %v413_v11 = vld [vmem:[%s362_s10 + $0x8] sm:$0xff]  ;;  %v3061_v12 = vld [vmem:[%s3016_s30 + $0x30] sm:$0xff]  ;;  %s381_s29 = scalar_lea.vmem %s3624_s5, %s2740_s23  ;;  %s384_s9 = scalar_lea.vmem %s3625_s6, %s3628_s25 }
  0x12   : > { %2643 = vmatmul.msk.f32.vlgmr.msra.gmra.mxu0 %vm419_vm1, %v410_v7  ;;  %464 = vmatpush.msra.mxu1 %v413_v11  ;;  %v3066_v14 = vld [vmem:[%s3016_s30 + $0x38] sm:$0xff]  ;;  %v3070_v15 = vld [vmem:[%s3016_s30 + $0x20] sm:$0xff]  ;;  %v3076_v16 = vld [vmem:[%s3016_s30 + $0x28] sm:$0xff]  ;;  %s3592_s12 = scalar_lea.vmem %s3626_s7, %s3011_s27 }
  0x13   : > { %493 = vmatpush.msra.mxu2 %v3039_v4  ;;  %843 = vmatpush.msrb.mxu0 %v3023_v1  ;;  %v3080_v17 = vld [vmem:[%s3016_s30 + $0x10] sm:$0xff]  ;;  %v3086_v18 = vld [vmem:[%s3016_s30 + $0x18] sm:$0xff]  ;;  %v3090_v19 = vld [vmem:[%s3016_s30] sm:$0xff] }
  0x14   : > { %513 = vmatpush.msra.mxu3 %v3048_v8  ;;  %v564_v13 = vld [vmem:[#allocation3] sm:$0x3]  ;;  %2645 = vmatmul.msk.f32.vlgmr.msra.gmra.mxu1 %vm419_vm1, %v410_v7  ;;  %v478_v20 = vld [vmem:[#allocation2] sm:$0x3]  ;;  %v3096_v21 = vld [vmem:[%s3016_s30 + $0x8] sm:$0xff] }
  0x15   : > { %494 = vmatpush.msra.mxu2 %v3051_v9  ;;  %566 = vrot.lane.b32.xlu0 %v564_v13, %s2954_s14  ;;  %v3169_v22 = vld [vmem:[%s3166_s18] sm:$0x3] }
  0x16   : > { %514 = vmatpush.msra.mxu3 %v3057_v10  ;;  %603 = vmatpush.msrb.mxu1 %v3023_v1  ;;  %v415_v23 = vperm.slane %v3169_v22, 0  ;;  %v416_v25 = vperm.slane %v3169_v22, 1 }
  0x17   : > { %495 = vmatpush.msra.mxu2 %v3061_v12  ;;  %844 = vmatpush.msrb.mxu0 %v3026_v2 }
  0x18   : > { %515 = vmatpush.msra.mxu3 %v3066_v14  ;;  %604 = vmatpush.msrb.mxu1 %v3026_v2 }
  0x19   : > { %496 = vmatpush.msra.mxu2 %v3070_v15  ;;  %845 = vmatpush.msrb.mxu0 %v3039_v4 }
  0x1a   : > { %516 = vmatpush.msra.mxu3 %v3076_v16  ;;  %605 = vmatpush.msrb.mxu1 %v3039_v4 }
  0x1b   : > { %497 = vmatpush.msra.mxu2 %v3080_v17  ;;  %846 = vmatpush.msrb.mxu0 %v3051_v9 }
  0x1c   : > { %517 = vmatpush.msra.mxu3 %v3086_v18  ;;  %606 = vmatpush.msrb.mxu1 %v3051_v9 }
  0x1d   : > { %498 = vmatpush.msra.mxu2 %v3090_v19  ;;  %847 = vmatpush.msrb.mxu0 %v3061_v12 }
  0x1e   : > { %2647 = vmatmul.msk.f32.vlgmr.msra.gmra.mxu2 %vm479_vm2, %v478_v20  ;;  %518 = vmatpush.msra.mxu3 %v3096_v21 }
  0x1f   : > { %2648 = vmatmul.msk.f32.vlgmr.msra.gmra.mxu3 %vm479_vm2, %v478_v20  ;;  %607 = vmatpush.msrb.mxu1 %v3061_v12 }
  0x20   : > { %723 = vmatpush.msrb.mxu2 %v3023_v1  ;;  %743 = vmatpush.msrb.mxu3 %v3036_v3 }
  0x21   : > { %608 = vmatpush.msrb.mxu1 %v3070_v15  ;;  %848 = vmatpush.msrb.mxu0 %v3070_v15 }
  0x22   : > { %724 = vmatpush.msrb.mxu2 %v3026_v2  ;;  %744 = vmatpush.msrb.mxu3 %v3043_v6 }
  0x23   : > { %609 = vmatpush.msrb.mxu1 %v3080_v17  ;;  %849 = vmatpush.msrb.mxu0 %v3080_v17 }
  0x24   : > { %725 = vmatpush.msrb.mxu2 %v3039_v4  ;;  %745 = vmatpush.msrb.mxu3 %v3048_v8 }
  0x25   : > { %610 = vmatpush.msrb.mxu1 %v3090_v19  ;;  %850 = vmatpush.msrb.mxu0 %v3090_v19 }
  0x26   : > { %726 = vmatpush.msrb.mxu2 %v3051_v9  ;;  %746 = vmatpush.msrb.mxu3 %v3057_v10 }
  0x27   : > { %623 = vmatpush.msra.mxu1 %v3036_v3  ;;  %1075 = vmatpush.msra.mxu0 %v3023_v1 }
  0x28   : > { %727 = vmatpush.msrb.mxu2 %v3061_v12  ;;  %747 = vmatpush.msrb.mxu3 %v3066_v14 }
  0x29   : > { %624 = vmatpush.msra.mxu1 %v3043_v6  ;;  %1076 = vmatpush.msra.mxu0 %v3026_v2 }
  0x2a   : > { %728 = vmatpush.msrb.mxu2 %v3070_v15  ;;  %748 = vmatpush.msrb.mxu3 %v3076_v16 }
  0x2b   : > { %625 = vmatpush.msra.mxu1 %v3048_v8  ;;  %1077 = vmatpush.msra.mxu0 %v3039_v4 }
  0x2c   : > { %729 = vmatpush.msrb.mxu2 %v3080_v17  ;;  %749 = vmatpush.msrb.mxu3 %v3086_v18 }
  0x2d   : > { %626 = vmatpush.msra.mxu1 %v3057_v10  ;;  %1078 = vmatpush.msra.mxu0 %v3051_v9 }
  0x2e   : > { %730 = vmatpush.msrb.mxu2 %v3090_v19  ;;  %750 = vmatpush.msrb.mxu3 %v3096_v21 }
  0x2f   : > { %627 = vmatpush.msra.mxu1 %v3066_v14  ;;  %1079 = vmatpush.msra.mxu0 %v3061_v12 }
  0x30   : > { %963 = vmatpush.msra.mxu2 %v3023_v1  ;;  %983 = vmatpush.msra.mxu3 %v3036_v3 }
  0x31   : > { %628 = vmatpush.msra.mxu1 %v3076_v16  ;;  %1080 = vmatpush.msra.mxu0 %v3070_v15 }
  0x32   : > { %964 = vmatpush.msra.mxu2 %v3026_v2  ;;  %984 = vmatpush.msra.mxu3 %v3043_v6 }
  0x33   : > { %629 = vmatpush.msra.mxu1 %v3086_v18  ;;  %1081 = vmatpush.msra.mxu0 %v3080_v17 }
  0x34   : > { %965 = vmatpush.msra.mxu2 %v3039_v4  ;;  %985 = vmatpush.msra.mxu3 %v3048_v8 }
  0x35   : > { %630 = vmatpush.msra.mxu1 %v3096_v21  ;;  %1082 = vmatpush.msra.mxu0 %v3090_v19 }
  0x36   : > { %966 = vmatpush.msra.mxu2 %v3051_v9  ;;  %986 = vmatpush.msra.mxu3 %v3057_v10 }
  0x38   : > { %967 = vmatpush.msra.mxu2 %v3061_v12  ;;  %987 = vmatpush.msra.mxu3 %v3066_v14 }
  0x3a   : > { %968 = vmatpush.msra.mxu2 %v3070_v15  ;;  %988 = vmatpush.msra.mxu3 %v3076_v16 }
  0x3c   : > { %969 = vmatpush.msra.mxu2 %v3080_v17  ;;  %989 = vmatpush.msra.mxu3 %v3086_v18 }
  0x3e   : > { %970 = vmatpush.msra.mxu2 %v3090_v19  ;;  %990 = vmatpush.msra.mxu3 %v3096_v21 }
  0x87   : > { %v567_v55 = vpop.permute.xlu0 %566 }
  0x8f   : > { %v443_v24 = vpop.f32.mrf.mxu0 }
  0x90   : > { %v444_v26 = vadd.f32 %v443_v24, %v415_v23  ;;  %v411_v24 = vld [vmem:[%s3032_s13 + $0x8] sm:$0xff] }
  0x91   : > { %v466_v27 = vpop.f32.mrf.mxu1  ;;  %2646 = vmatmul.msk.f32.gmra.mxu1 %vm419_vm1, %v411_v24  ;;  %2644 = vmatmul.msk.f32.gmra.mxu0 %vm419_vm1, %v411_v24 }
  0x92   : > { %472 = vst [vmem:[#allocation5 + $0x10] sm:$0xff] %v444_v26  ;;  %v467_v28 = vadd.f32 %v466_v27, %v416_v25 }
  0x94   : > { %473 = vst [vmem:[#allocation5] sm:$0xff] %v467_v28 }
  0x99   : > { %v476_v29 = vld [vmem:[#allocation5 + $0x10] sm:$0x3] }
  0x9b   : > { %v477_v35 = vld [vmem:[#allocation5] sm:$0x3] }
  0xa1   : > { %v500_v30 = vpop.f32.mrf.mxu2 }
  0xa2   : > { %v523_v31 = vadd.f32 %v500_v30, %v476_v29  ;;  %v520_v36 = vpop.f32.mrf.mxu3 }
  0xa3   : > { %v524_v38 = vadd.f32 %v520_v36, %v477_v35  ;;  %v589_v35 = vld [vmem:[#allocation5 + $0x10] sm:$0xc] }
  0xa4   : > { %v2649_v32 = vmul.f32 -1.442695, %v523_v31 }
  0xa5   : > { %v2650_v50 = vmul.f32 -1.442695, %v524_v38 }
  0xa6   : > { %2753 = vpow2.f32 %v2649_v32 }
  0xac   : > { %v2754_v33 = vpop.eup %2753 }
  0xad   : > { %v528_v34 = vadd.f32 1.0, %v2754_v33 }
  0xaf   : > { %2755 = vrcp.f32 %v528_v34  ;;  %v540_v41 = vand.u32 2147483648, %v528_v34  ;;  %v538_v43 = vand.u32 2147483647, %v528_v34  ;;  %vm534_vm4 = vweird.f32 %v528_v34 }
  0xb0   : > { %2757 = vtanh.f32 %v524_v38 }
  0xb1   : > { %v541_v46 = vor.u32 1.1754944e-38, %v540_v41  ;;  %vm539_vm6 = vcmp.eq.f32.partialorder %v538_v43, 8.507059e+37  ;;  %2759 = vpow2.f32 %v2650_v50 }
  0xb5   : > { %v2756_v37 = vpop.eup %2755 }
  0xb6   : > { %v530_v39 = vmul.f32 %v2756_v37, %v528_v34  ;;  %vm535_vm3 = vweird.f32 %v2756_v37  ;;  %v2758_v45 = vpop.eup %2757 }
  0xb7   : > { %vm536_vm5 = vmor %vm534_vm4, %vm535_vm3  ;;  %v2760_v51 = vpop.eup %2759 }
  0xb8   : > { %v531_v40 = vsub.f32 1.0, %v530_v39  ;;  %v548_v52 = vadd.f32 1.0, %v2760_v51 }
  0xba   : > { %v532_v42 = vmul.f32 %v2756_v37, %v531_v40  ;;  %2761 = vrcp.f32 %v548_v52  ;;  %vm554_vm7 = vweird.f32 %v548_v52  ;;  %v560_v61 = vand.u32 2147483648, %v548_v52 }
  0xbb   : > { %v558_v63 = vand.u32 2147483647, %v548_v52 }
  0xbc   : > { %v533_v44 = vadd.f32 %v2756_v37, %v532_v42  ;;  %v561_v5 = vor.u32 1.1754944e-38, %v560_v61  ;;  %v590_v42 = vld [vmem:[#allocation5] sm:$0xc] }
  0xbd   : > { %vm559_vm10 = vcmp.eq.f32.partialorder %v558_v63, 8.507059e+37 }
  0xbe   : > { %v537_v47 = vsel %vm536_vm5, %v2756_v37, %v533_v44 }
  0xbf   : > { %v542_v48 = vsel %vm539_vm6, %v541_v46, %v537_v47  ;;  %vm701_vm6 = vcmask 519170  }
  0xc0   : > { %v570_v49 = vmul.f32 %v2758_v45, %v542_v48  ;;  %v2762_v53 = vpop.eup %2761  ;;  %v569_v58 = vmul.f32 %v567_v55, %v542_v48 }
  0xc1   : > { %v550_v54 = vmul.f32 %v2762_v53, %v548_v52  ;;  %vm555_vm8 = vweird.f32 %v2762_v53 }
  0xc2   : > { %572 = vrot.lane.b32.xlu0 %v570_v49, %s2954_s14  ;;  %vm556_vm9 = vmor %vm554_vm7, %vm555_vm8 }
  0xc3   : > { %v551_v56 = vsub.f32 1.0, %v550_v54 }
  0xc5   : > { %v552_v57 = vmul.f32 %v2762_v53, %v551_v56 }
  0xc7   : > { %v553_v62 = vadd.f32 %v2762_v53, %v552_v57 }
  0xc9   : > { %v557_v7 = vsel %vm556_vm9, %v2762_v53, %v553_v62 }
  0xca   : > { %v562_v13 = vsel %vm559_vm10, %v561_v5, %v557_v7 }
 0x10e   : > { %v469_v31 = vpop.f32.mrf.mxu1 }
 0x10f   : > { %v470_v32 = vadd.f32 %v469_v31, %v416_v25 }
 0x111   : > { %475 = vst [vmem:[#allocation5 + $0x8] sm:$0xff] %v470_v32 }
 0x134   : > { %v573_v59 = vpop.permute.xlu0 %572 }
 0x135   : > { %v575_v60 = vadd.f32 %v573_v59, %v569_v58 }
 0x137   : > { %2763 = vtanh.f32 %v575_v60 }
 0x13d   : > { %v2764_v11 = vpop.eup %2763 }
 0x13e   : > { %v577_v20 = vmul.f32 %v2764_v11, %v562_v13 }
 0x140   : > { %584 = vrot.lane.b32.xlu1 %v577_v20, %s2954_s14 }
 0x148   : > { %579 = vrot.lane.b32.xlu1 %v575_v60, %s2954_s14 }
 0x1b2   : > { %v585_v26 = vpop.permute.xlu1 %584 }
 0x1b3   : > { %587 = vst.msk [vmem:[#allocation2] sm:$0x3] %vm407_vm0, %v585_v26 }
 0x1b4   : > { %588 = vst.msk [vmem:[#allocation4] sm:$0x3] %vm407_vm0, %v585_v26 }
 0x1ba   : > { %v591_v27 = vld [vmem:[#allocation2] sm:$0x3]  ;;  %v580_v28 = vpop.permute.xlu1 %579 }
 0x1bb   : > { %582 = vst.msk [vmem:[#allocation3] sm:$0x3] %vm407_vm0, %v580_v28  ;;  %2651 = vmatmul.msk.f32.vlgmr.msrb.gmra.mxu1 %vm479_vm2, %v591_v27 }
 0x1bc   : > { %863 = vmatpush.msrb.mxu1 %v3036_v3 }
 0x1be   : > { %864 = vmatpush.msrb.mxu1 %v3043_v6 }
 0x1c0   : > { %865 = vmatpush.msrb.mxu1 %v3048_v8 }
 0x1c2   : > { %v682_v29 = vld [vmem:[#allocation3] sm:$0x3]  ;;  %866 = vmatpush.msrb.mxu1 %v3057_v10 }
 0x1c3   : > { %2652 = vmatmul.msk.f32.vlgmr.msra.gmra.mxu1 %vm479_vm2, %v591_v27  ;;  %v684_v30 = vrot.slane %v682_v29, 6 }
 0x1c4   : > { %867 = vmatpush.msrb.mxu1 %v3066_v14 }
 0x1c5   : > { %685 = vrot.lane.b32.xlu2 %v684_v30, %s2954_s14 }
 0x1c6   : > { %868 = vmatpush.msrb.mxu1 %v3076_v16 }
 0x1c8   : > { %869 = vmatpush.msrb.mxu1 %v3086_v18 }
 0x1ca   : > { %870 = vmatpush.msrb.mxu1 %v3096_v21 }
 0x1cc   : > { %1095 = vmatpush.msra.mxu1 %v3036_v3 }
 0x1ce   : > { %1096 = vmatpush.msra.mxu1 %v3043_v6 }
 0x1d0   : > { %1097 = vmatpush.msra.mxu1 %v3048_v8 }
 0x1d2   : > { %1098 = vmatpush.msra.mxu1 %v3057_v10 }
 0x1d4   : > { %1099 = vmatpush.msra.mxu1 %v3066_v14 }
 0x1d6   : > { %1100 = vmatpush.msra.mxu1 %v3076_v16 }
 0x1d8   : > { %1101 = vmatpush.msra.mxu1 %v3086_v18 }
 0x1da   : > { %1102 = vmatpush.msra.mxu1 %v3096_v21 }
 0x21f   : > { %v686_v60 = vpop.permute.xlu2 %685 }
 0x238   : > { %v612_v33 = vpop.f32.mrf.mxu1 }
 0x239   : > { %v637_v34 = vrot.slane %v612_v33, 6 }
 0x23b   : > { %v641_v36 = vadd.f32 %v637_v34, %v589_v35 }
 0x23d   : > { %v2653_v37 = vmul.f32 -1.442695, %v641_v36 }
 0x23f   : > { %2765 = vpow2.f32 %v2653_v37  ;;  %v709_v37 = vld [vmem:[#allocation5 + $0x10] sm:$0x30] }
 0x240   : > { %v632_v40 = vpop.f32.mrf.mxu1 }
 0x241   : > { %v638_v41 = vrot.slane %v632_v40, 6 }
 0x243   : > { %v642_v44 = vadd.f32 %v638_v41, %v590_v42 }
 0x245   : > { %v2766_v38 = vpop.eup %2765  ;;  %v2654_v55 = vmul.f32 -1.442695, %v642_v44 }
 0x246   : > { %v646_v39 = vadd.f32 1.0, %v2766_v38 }
 0x248   : > { %2767 = vrcp.f32 %v646_v39  ;;  %v658_v47 = vand.u32 2147483648, %v646_v39  ;;  %v656_v48 = vand.u32 2147483647, %v646_v39  ;;  %vm652_vm12 = vweird.f32 %v646_v39 }
 0x249   : > { %2769 = vtanh.f32 %v642_v44  ;;  %v710_v44 = vld [vmem:[#allocation5] sm:$0x30] }
 0x24a   : > { %v659_v50 = vor.u32 1.1754944e-38, %v658_v47  ;;  %vm657_vm14 = vcmp.eq.f32.partialorder %v656_v48, 8.507059e+37  ;;  %2771 = vpow2.f32 %v2654_v55 }
 0x24e   : > { %v2768_v43 = vpop.eup %2767 }
 0x24f   : > { %v648_v45 = vmul.f32 %v2768_v43, %v646_v39  ;;  %vm653_vm11 = vweird.f32 %v2768_v43  ;;  %v2770_v52 = vpop.eup %2769 }
 0x250   : > { %vm654_vm13 = vmor %vm652_vm12, %vm653_vm11  ;;  %v2772_v56 = vpop.eup %2771 }
 0x251   : > { %v649_v46 = vsub.f32 1.0, %v648_v45  ;;  %v666_v57 = vadd.f32 1.0, %v2772_v56 }
 0x253   : > { %v650_v25 = vmul.f32 %v2768_v43, %v649_v46  ;;  %2773 = vrcp.f32 %v666_v57  ;;  %v678_v13 = vand.u32 2147483648, %v666_v57  ;;  %vm672_vm3 = vweird.f32 %v666_v57 }
 0x254   : > { %v676_v20 = vand.u32 2147483647, %v666_v57 }
 0x255   : > { %v651_v49 = vadd.f32 %v2768_v43, %v650_v25  ;;  %v679_v26 = vor.u32 1.1754944e-38, %v678_v13 }
 0x256   : > { %vm677_vm5 = vcmp.eq.f32.partialorder %v676_v20, 8.507059e+37 }
 0x257   : > { %v655_v51 = vsel %vm654_vm13, %v2768_v43, %v651_v49 }
 0x258   : > { %v660_v53 = vsel %vm657_vm14, %v659_v50, %v655_v51 }
 0x259   : > { %v689_v54 = vmul.f32 %v2770_v52, %v660_v53  ;;  %v2774_v58 = vpop.eup %2773  ;;  %v688_v63 = vmul.f32 %v686_v60, %v660_v53 }
 0x25a   : > { %v668_v59 = vmul.f32 %v2774_v58, %v666_v57  ;;  %vm673_vm15 = vweird.f32 %v2774_v58 }
 0x25b   : > { %691 = vrot.lane.b32.xlu2 %v689_v54, %s2954_s14  ;;  %vm674_vm4 = vmor %vm672_vm3, %vm673_vm15  ;;  %vm821_vm15 = vcmask 521220  }
 0x25c   : > { %v669_v61 = vsub.f32 1.0, %v668_v59 }
 0x25e   : > { %v670_v62 = vmul.f32 %v2774_v58, %v669_v61 }
 0x260   : > { %v671_v11 = vadd.f32 %v2774_v58, %v670_v62 }
 0x262   : > { %v675_v24 = vsel %vm674_vm4, %v2774_v58, %v671_v11 }
 0x263   : > { %v680_v28 = vsel %vm677_vm5, %v679_v26, %v675_v24 }
 0x2b5   : > { %v692_v5 = vpop.permute.xlu2 %691 }
 0x2b6   : > { %v694_v7 = vadd.f32 %v692_v5, %v688_v63 }
 0x2b8   : > { %2775 = vtanh.f32 %v694_v7  ;;  %698 = vrot.lane.b32.xlu1 %v694_v7, %s2954_s14 }
 0x2be   : > { %v2776_v27 = vpop.eup %2775 }
 0x2bf   : > { %v696_v29 = vmul.f32 %v2776_v27, %v680_v28 }
 0x2c1   : > { %704 = vrot.lane.b32.xlu0 %v696_v29, %s2954_s14 }
 0x32a   : > { %v699_v30 = vpop.permute.xlu1 %698 }
 0x32b   : > { %702 = vst.msk [vmem:[#allocation3 - $0x2] sm:$0xc] %vm701_vm6, %v699_v30 }
 0x332   : > { %v802_v31 = vld [vmem:[#allocation3] sm:$0x3] }
 0x333   : > { %v705_v32 = vpop.permute.xlu0 %704  ;;  %v804_v33 = vrot.slane %v802_v31, 4 }
 0x334   : > { %707 = vst.msk [vmem:[#allocation2 - $0x2] sm:$0xc] %vm701_vm6, %v705_v32 }
 0x335   : > { %708 = vst.msk [vmem:[#allocation4] sm:$0xc] %vm701_vm6, %v705_v32  ;;  %805 = vrot.lane.b32.xlu2 %v804_v33, %s2954_s14 }
 0x33b   : > { %v711_v34 = vld [vmem:[#allocation2] sm:$0x3] }
 0x33c   : > { %2655 = vmatmul.msk.f32.vlgmr.msrb.gmra.mxu2 %vm479_vm2, %v711_v34  ;;  %2656 = vmatmul.msk.f32.vlgmr.msrb.gmra.mxu3 %vm479_vm2, %v711_v34 }
 0x33d   : > { %1194 = vmatpush.msrb.mxu2 %v3023_v1  ;;  %1214 = vmatpush.msrb.mxu3 %v3036_v3 }
 0x33f   : > { %1195 = vmatpush.msrb.mxu2 %v3026_v2  ;;  %1215 = vmatpush.msrb.mxu3 %v3043_v6 }
 0x341   : > { %1196 = vmatpush.msrb.mxu2 %v3039_v4  ;;  %1216 = vmatpush.msrb.mxu3 %v3048_v8 }
 0x343   : > { %1197 = vmatpush.msrb.mxu2 %v3051_v9  ;;  %1217 = vmatpush.msrb.mxu3 %v3057_v10 }
 0x345   : > { %1198 = vmatpush.msrb.mxu2 %v3061_v12  ;;  %1218 = vmatpush.msrb.mxu3 %v3066_v14 }
 0x347   : > { %1199 = vmatpush.msrb.mxu2 %v3070_v15  ;;  %1219 = vmatpush.msrb.mxu3 %v3076_v16 }
 0x349   : > { %1200 = vmatpush.msrb.mxu2 %v3080_v17  ;;  %1220 = vmatpush.msrb.mxu3 %v3086_v18 }
 0x34b   : > { %1201 = vmatpush.msrb.mxu2 %v3090_v19  ;;  %1221 = vmatpush.msrb.mxu3 %v3096_v21 }
 0x38f   : > { %v806_v63 = vpop.permute.xlu2 %805 }
 0x3bf   : > { %v732_v35 = vpop.f32.mrf.mxu2  ;;  %v752_v42 = vpop.f32.mrf.mxu3 }
 0x3c0   : > { %v757_v36 = vrot.slane %v732_v35, 4  ;;  %v758_v43 = vrot.slane %v752_v42, 4 }
 0x3c2   : > { %v761_v38 = vadd.f32 %v757_v36, %v709_v37  ;;  %v762_v46 = vadd.f32 %v758_v43, %v710_v44 }
 0x3c4   : > { %v2657_v39 = vmul.f32 -1.442695, %v761_v38  ;;  %v2658_v57 = vmul.f32 -1.442695, %v762_v46 }
 0x3c6   : > { %2777 = vpow2.f32 %v2657_v39 }
 0x3cc   : > { %v2778_v40 = vpop.eup %2777 }
 0x3cd   : > { %v766_v41 = vadd.f32 1.0, %v2778_v40 }
 0x3cf   : > { %2779 = vrcp.f32 %v766_v41  ;;  %v778_v48 = vand.u32 2147483648, %v766_v41  ;;  %v776_v50 = vand.u32 2147483647, %v766_v41  ;;  %vm772_vm8 = vweird.f32 %v766_v41 }
 0x3d0   : > { %2781 = vtanh.f32 %v762_v46 }
 0x3d1   : > { %v779_v52 = vor.u32 1.1754944e-38, %v778_v48  ;;  %vm777_vm10 = vcmp.eq.f32.partialorder %v776_v50, 8.507059e+37  ;;  %2783 = vpow2.f32 %v2658_v57 }
 0x3d5   : > { %v2780_v45 = vpop.eup %2779 }
 0x3d6   : > { %v768_v47 = vmul.f32 %v2780_v45, %v766_v41  ;;  %vm773_vm7 = vweird.f32 %v2780_v45  ;;  %v2782_v54 = vpop.eup %2781 }
 0x3d7   : > { %vm774_vm9 = vmor %vm772_vm8, %vm773_vm7  ;;  %v2784_v58 = vpop.eup %2783 }
 0x3d8   : > { %v769_v25 = vsub.f32 1.0, %v768_v47  ;;  %v786_v59 = vadd.f32 1.0, %v2784_v58 }
 0x3da   : > { %v770_v49 = vmul.f32 %v2780_v45, %v769_v25  ;;  %2785 = vrcp.f32 %v786_v59  ;;  %v798_v24 = vand.u32 2147483648, %v786_v59  ;;  %vm792_vm12 = vweird.f32 %v786_v59 }
 0x3db   : > { %v796_v26 = vand.u32 2147483647, %v786_v59 }
 0x3dc   : > { %v771_v51 = vadd.f32 %v2780_v45, %v770_v49  ;;  %v799_v28 = vor.u32 1.1754944e-38, %v798_v24 }
 0x3dd   : > { %vm797_vm14 = vcmp.eq.f32.partialorder %v796_v26, 8.507059e+37 }
 0x3de   : > { %v775_v53 = vsel %vm774_vm9, %v2780_v45, %v771_v51 }
 0x3df   : > { %v780_v55 = vsel %vm777_vm10, %v779_v52, %v775_v53 }
 0x3e0   : > { %v809_v56 = vmul.f32 %v2782_v54, %v780_v55  ;;  %v2786_v60 = vpop.eup %2785  ;;  %v808_v7 = vmul.f32 %v806_v63, %v780_v55 }
 0x3e1   : > { %v788_v61 = vmul.f32 %v2786_v60, %v786_v59  ;;  %vm793_vm11 = vweird.f32 %v2786_v60 }
 0x3e2   : > { %811 = vrot.lane.b32.xlu0 %v809_v56, %s2954_s14  ;;  %vm794_vm13 = vmor %vm792_vm12, %vm793_vm11  ;;  %vm941_vm12 = vcmask 523270  }
 0x3e3   : > { %v789_v62 = vsub.f32 1.0, %v788_v61 }
 0x3e5   : > { %v790_v5 = vmul.f32 %v2786_v60, %v789_v62 }
 0x3e7   : > { %v791_v20 = vadd.f32 %v2786_v60, %v790_v5 }
 0x3e9   : > { %v795_v27 = vsel %vm794_vm13, %v2786_v60, %v791_v20 }
 0x3ea   : > { %v800_v30 = vsel %vm797_vm14, %v799_v28, %v795_v27 }
 0x454   : > { %v812_v11 = vpop.permute.xlu0 %811 }
 0x455   : > { %v814_v13 = vadd.f32 %v812_v11, %v808_v7 }
 0x457   : > { %2787 = vtanh.f32 %v814_v13  ;;  %818 = vrot.lane.b32.xlu2 %v814_v13, %s2954_s14 }
 0x45d   : > { %v2788_v29 = vpop.eup %2787 }
 0x45e   : > { %v816_v31 = vmul.f32 %v2788_v29, %v800_v30  ;;  %v950_v29 = vld [vmem:[#allocation5 + $0x8] sm:$0x3] }
 0x460   : > { %824 = vrot.lane.b32.xlu1 %v816_v31, %s2954_s14 }
 0x4b1   : > { %v819_v32 = vpop.permute.xlu2 %818 }
 0x4b2   : > { %822 = vst.msk [vmem:[#allocation3 - $0x4] sm:$0x30] %vm821_vm15, %v819_v32 }
 0x4b9   : > { %v922_v33 = vld [vmem:[#allocation3] sm:$0x3] }
 0x4ba   : > { %v924_v34 = vrot.slane %v922_v33, 2 }
 0x4bc   : > { %925 = vrot.lane.b32.xlu0 %v924_v34, %s2954_s14 }
 0x4d2   : > { %v825_v35 = vpop.permute.xlu1 %824 }
 0x4d3   : > { %827 = vst.msk [vmem:[#allocation2 - $0x4] sm:$0x30] %vm821_vm15, %v825_v35 }
 0x4d4   : > { %828 = vst.msk [vmem:[#allocation4] sm:$0x30] %vm821_vm15, %v825_v35 }
 0x4da   : > { %v831_v36 = vld [vmem:[#allocation2] sm:$0x3] }
 0x4db   : > { %2659 = vmatmul.msk.f32.vlgmr.msrb.gmra.mxu0 %vm479_vm2, %v831_v36  ;;  %2660 = vmatmul.msk.f32.vlgmr.msrb.gmra.mxu1 %vm479_vm2, %v831_v36 }
 0x4dc   : > { %1313 = vmatpush.msrb.mxu0 %v3023_v1  ;;  %1333 = vmatpush.msrb.mxu1 %v3036_v3  ;;  %v446_v1 = vpop.f32.mrf.mxu0 }
 0x4de   : > { %1314 = vmatpush.msrb.mxu0 %v3026_v2  ;;  %1334 = vmatpush.msrb.mxu1 %v3043_v6  ;;  %v447_v2 = vadd.f32 %v446_v1, %v415_v23  ;;  %v829_v6 = vld [vmem:[#allocation5 + $0x10] sm:$0xc0] }
 0x4e0   : > { %1315 = vmatpush.msrb.mxu0 %v3039_v4  ;;  %1335 = vmatpush.msrb.mxu1 %v3048_v8  ;;  %474 = vst [vmem:[#allocation5 + $0x18] sm:$0xff] %v447_v2 }
 0x4e2   : > { %1316 = vmatpush.msrb.mxu0 %v3051_v9  ;;  %1336 = vmatpush.msrb.mxu1 %v3057_v10 }
 0x4e4   : > { %1317 = vmatpush.msrb.mxu0 %v3061_v12  ;;  %1337 = vmatpush.msrb.mxu1 %v3066_v14 }
 0x4e6   : > { %1318 = vmatpush.msrb.mxu0 %v3070_v15  ;;  %1338 = vmatpush.msrb.mxu1 %v3076_v16  ;;  %v830_v16 = vld [vmem:[#allocation5] sm:$0xc0] }
 0x4e7   : > { %v949_v11 = vld [vmem:[#allocation5 + $0x18] sm:$0x3] }
 0x4e8   : > { %1319 = vmatpush.msrb.mxu0 %v3080_v17  ;;  %1339 = vmatpush.msrb.mxu1 %v3086_v18 }
 0x4ea   : > { %1320 = vmatpush.msrb.mxu0 %v3090_v19  ;;  %1340 = vmatpush.msrb.mxu1 %v3096_v21 }
 0x52e   : > { %v926_v49 = vpop.permute.xlu0 %925 }
 0x558   : > { %v852_v3 = vpop.f32.mrf.mxu0  ;;  %v872_v14 = vpop.f32.mrf.mxu1 }
 0x559   : > { %v877_v4 = vrot.slane %v852_v3, 2  ;;  %v878_v15 = vrot.slane %v872_v14, 2 }
 0x55b   : > { %v881_v8 = vadd.f32 %v877_v4, %v829_v6  ;;  %v882_v18 = vadd.f32 %v878_v15, %v830_v16 }
 0x55d   : > { %v2661_v9 = vmul.f32 -1.442695, %v881_v8  ;;  %v2662_v44 = vmul.f32 -1.442695, %v882_v18 }
 0x55f   : > { %2789 = vpow2.f32 %v2661_v9 }
 0x565   : > { %v2790_v10 = vpop.eup %2789 }
 0x566   : > { %v886_v12 = vadd.f32 1.0, %v2790_v10 }
 0x568   : > { %2791 = vrcp.f32 %v886_v12  ;;  %v898_v22 = vand.u32 2147483648, %v886_v12  ;;  %v896_v37 = vand.u32 2147483647, %v886_v12  ;;  %vm892_vm4 = vweird.f32 %v886_v12 }
 0x569   : > { %2793 = vtanh.f32 %v882_v18 }
 0x56a   : > { %v899_v39 = vor.u32 1.1754944e-38, %v898_v22  ;;  %vm897_vm7 = vcmp.eq.f32.partialorder %v896_v37, 8.507059e+37  ;;  %2795 = vpow2.f32 %v2662_v44 }
 0x56e   : > { %v2792_v17 = vpop.eup %2791 }
 0x56f   : > { %v888_v19 = vmul.f32 %v2792_v17, %v886_v12  ;;  %vm893_vm3 = vweird.f32 %v2792_v17  ;;  %v2794_v41 = vpop.eup %2793 }
 0x570   : > { %vm894_vm5 = vmor %vm892_vm4, %vm893_vm3  ;;  %v2796_v45 = vpop.eup %2795 }
 0x571   : > { %v889_v21 = vsub.f32 1.0, %v888_v19  ;;  %v906_v46 = vadd.f32 1.0, %v2796_v45 }
 0x573   : > { %v890_v23 = vmul.f32 %v2792_v17, %v889_v21  ;;  %2797 = vrcp.f32 %v906_v46  ;;  %v918_v55 = vand.u32 2147483648, %v906_v46  ;;  %vm912_vm9 = vweird.f32 %v906_v46 }
 0x574   : > { %v916_v56 = vand.u32 2147483647, %v906_v46 }
 0x575   : > { %v891_v38 = vadd.f32 %v2792_v17, %v890_v23  ;;  %v919_v58 = vor.u32 1.1754944e-38, %v918_v55 }
 0x576   : > { %vm917_vm11 = vcmp.eq.f32.partialorder %v916_v56, 8.507059e+37 }
 0x577   : > { %v895_v40 = vsel %vm894_vm5, %v2792_v17, %v891_v38 }
 0x578   : > { %v900_v42 = vsel %vm897_vm7, %v899_v39, %v895_v40 }
 0x579   : > { %v929_v43 = vmul.f32 %v2794_v41, %v900_v42  ;;  %v2798_v47 = vpop.eup %2797  ;;  %v928_v51 = vmul.f32 %v926_v49, %v900_v42 }
 0x57a   : > { %v908_v25 = vmul.f32 %v2798_v47, %v906_v46  ;;  %vm913_vm8 = vweird.f32 %v2798_v47 }
 0x57b   : > { %931 = vrot.lane.b32.xlu1 %v929_v43, %s2954_s14  ;;  %vm914_vm10 = vmor %vm912_vm9, %vm913_vm8 }
 0x57c   : > { %v909_v48 = vsub.f32 1.0, %v908_v25 }
 0x57e   : > { %v910_v50 = vmul.f32 %v2798_v47, %v909_v48 }
 0x580   : > { %v911_v54 = vadd.f32 %v2798_v47, %v910_v50  ;;  %v1061_v50 = vld [vmem:[#allocation5 + $0x18] sm:$0xc] }
 0x582   : > { %v915_v57 = vsel %vm914_vm10, %v2798_v47, %v911_v54 }
 0x583   : > { %v920_v60 = vsel %vm917_vm11, %v919_v58, %v915_v57  ;;  %v1062_v57 = vld [vmem:[#allocation5 + $0x8] sm:$0xc] }
 0x5ed   : > { %v932_v52 = vpop.permute.xlu1 %931 }
 0x5ee   : > { %v934_v53 = vadd.f32 %v932_v52, %v928_v51 }
 0x5f0   : > { %2799 = vtanh.f32 %v934_v53  ;;  %938 = vrot.lane.b32.xlu0 %v934_v53, %s2954_s14 }
 0x5f6   : > { %v2800_v59 = vpop.eup %2799 }
 0x5f7   : > { %v936_v61 = vmul.f32 %v2800_v59, %v920_v60 }
 0x5f9   : > { %944 = vrot.lane.b32.xlu2 %v936_v61, %s2954_s14 }
 0x653   : > { %v945_v62 = vpop.permute.xlu2 %944 }
 0x654   : > { %947 = vst.msk [vmem:[#allocation2 - $0x6] sm:$0xc0] %vm941_vm12, %v945_v62 }
 0x655   : > { %948 = vst.msk [vmem:[#allocation4] sm:$0xc0] %vm941_vm12, %v945_v62 }
 0x65b   : > { %v951_v63 = vld [vmem:[#allocation2] sm:$0x3] }
 0x65c   : > { %2663 = vmatmul.msk.f32.vlgmr.msra.gmra.mxu2 %vm479_vm2, %v951_v63  ;;  %2664 = vmatmul.msk.f32.vlgmr.msra.gmra.mxu3 %vm479_vm2, %v951_v63 }
 0x662   : > { %v939_v5 = vpop.permute.xlu0 %938 }
 0x663   : > { %942 = vst.msk [vmem:[#allocation3 - $0x6] sm:$0xc0] %vm941_vm12, %v939_v5 }
 0x66a   : > { %v1036_v7 = vld [vmem:[#allocation3] sm:$0x3] }
 0x66b   : > { %1038 = vrot.lane.b32.xlu1 %v1036_v7, %s2954_s14 }
 0x6dd   : > { %v1039_v17 = vpop.permute.xlu1 %1038 }
 0x6df   : > { %v972_v13 = vpop.f32.mrf.mxu2  ;;  %v992_v28 = vpop.f32.mrf.mxu3 }
 0x6e0   : > { %v995_v20 = vadd.f32 %v972_v13, %v949_v11  ;;  %v996_v31 = vadd.f32 %v992_v28, %v950_v29 }
 0x6e2   : > { %v2665_v24 = vmul.f32 -1.442695, %v995_v20  ;;  %v2666_v9 = vmul.f32 -1.442695, %v996_v31 }
 0x6e4   : > { %2801 = vpow2.f32 %v2665_v24 }
 0x6ea   : > { %v2802_v26 = vpop.eup %2801 }
 0x6eb   : > { %v1000_v27 = vadd.f32 1.0, %v2802_v26 }
 0x6ed   : > { %2803 = vrcp.f32 %v1000_v27  ;;  %v1012_v34 = vand.u32 2147483648, %v1000_v27  ;;  %v1010_v36 = vand.u32 2147483647, %v1000_v27  ;;  %vm1006_vm14 = vweird.f32 %v1000_v27 }
 0x6ee   : > { %2805 = vtanh.f32 %v996_v31 }
 0x6ef   : > { %v1013_v2 = vor.u32 1.1754944e-38, %v1012_v34  ;;  %vm1011_vm4 = vcmp.eq.f32.partialorder %v1010_v36, 8.507059e+37  ;;  %2807 = vpow2.f32 %v2666_v9 }
 0x6f3   : > { %v2804_v30 = vpop.eup %2803 }
 0x6f4   : > { %v1002_v32 = vmul.f32 %v2804_v30, %v1000_v27  ;;  %vm1007_vm13 = vweird.f32 %v2804_v30  ;;  %v2806_v4 = vpop.eup %2805 }
 0x6f5   : > { %vm1008_vm3 = vmor %vm1006_vm14, %vm1007_vm13  ;;  %v2808_v10 = vpop.eup %2807 }
 0x6f6   : > { %v1003_v33 = vsub.f32 1.0, %v1002_v32  ;;  %v1020_v12 = vadd.f32 1.0, %v2808_v10 }
 0x6f8   : > { %v1004_v35 = vmul.f32 %v2804_v30, %v1003_v33  ;;  %2809 = vrcp.f32 %v1020_v12  ;;  %v1032_v37 = vand.u32 2147483648, %v1020_v12  ;;  %vm1026_vm7 = vweird.f32 %v1020_v12 }
 0x6f9   : > { %v1030_v38 = vand.u32 2147483647, %v1020_v12 }
 0x6fa   : > { %v1005_v1 = vadd.f32 %v2804_v30, %v1004_v35  ;;  %v1033_v40 = vor.u32 1.1754944e-38, %v1032_v37 }
 0x6fb   : > { %vm1031_vm9 = vcmp.eq.f32.partialorder %v1030_v38, 8.507059e+37 }
 0x6fc   : > { %v1009_v3 = vsel %vm1008_vm3, %v2804_v30, %v1005_v1 }
 0x6fd   : > { %v1014_v6 = vsel %vm1011_vm4, %v1013_v2, %v1009_v3 }
 0x6fe   : > { %v1042_v8 = vmul.f32 %v2806_v4, %v1014_v6  ;;  %v2810_v14 = vpop.eup %2809  ;;  %v1041_v19 = vmul.f32 %v1039_v17, %v1014_v6  ;;  %v1453_v17 = vld [vmem:[%s3284_s22 + $0x60] sm:$0xff] }
 0x6ff   : > { %v1022_v15 = vmul.f32 %v2810_v14, %v1020_v12  ;;  %vm1027_vm5 = vweird.f32 %v2810_v14 }
 0x700   : > { %1044 = vrot.lane.b32.xlu2 %v1042_v8, %s2954_s14  ;;  %vm1028_vm8 = vmor %vm1026_vm7, %vm1027_vm5 }
 0x701   : > { %v1023_v16 = vsub.f32 1.0, %v1022_v15  ;;  %v1455_v15 = vld [vmem:[%s3284_s22 + $0x70] sm:$0xff] }
 0x702   : > { %1476 = vmatpush.msra.mxu2 %v1455_v15 }
 0x703   : > { %v1024_v18 = vmul.f32 %v2810_v14, %v1023_v16  ;;  %v1456_v16 = vld [vmem:[%s3284_s22 + $0x78] sm:$0xff] }
 0x704   : > { %1499 = vmatpush.msra.mxu3 %v1456_v16  ;;  %1477 = vmatpush.msra.mxu2 %v1453_v17 }
 0x705   : > { %v1025_v23 = vadd.f32 %v2810_v14, %v1024_v18  ;;  %v1454_v18 = vld [vmem:[%s3284_s22 + $0x68] sm:$0xff] }
 0x706   : > { %1500 = vmatpush.msra.mxu3 %v1454_v18 }
 0x707   : > { %v1029_v39 = vsel %vm1028_vm8, %v2810_v14, %v1025_v23  ;;  %v1450_v23 = vld [vmem:[%s3284_s22 + $0x48] sm:$0xff] }
 0x708   : > { %v1034_v42 = vsel %vm1031_vm9, %v1033_v40, %v1029_v39  ;;  %v1447_v39 = vld [vmem:[%s3284_s22 + $0x30] sm:$0xff]  ;;  %v1448_v40 = vld [vmem:[%s3284_s22 + $0x38] sm:$0xff] }
 0x75a   : > { %v1045_v21 = vpop.permute.xlu2 %1044 }
 0x75b   : > { %v1047_v22 = vadd.f32 %v1045_v21, %v1041_v19  ;;  %v1451_v19 = vld [vmem:[%s3284_s22 + $0x50] sm:$0xff]  ;;  %v1452_v21 = vld [vmem:[%s3284_s22 + $0x58] sm:$0xff] }
 0x75c   : > { %1478 = vmatpush.msra.mxu2 %v1451_v19  ;;  %1501 = vmatpush.msra.mxu3 %v1452_v21 }
 0x75d   : > { %2811 = vtanh.f32 %v1047_v22  ;;  %1051 = vrot.lane.b32.xlu1 %v1047_v22, %s2954_s14  ;;  %v1449_v22 = vld [vmem:[%s3284_s22 + $0x40] sm:$0xff] }
 0x75e   : > { %1479 = vmatpush.msra.mxu2 %v1449_v22  ;;  %1502 = vmatpush.msra.mxu3 %v1450_v23 }
 0x760   : > { %1480 = vmatpush.msra.mxu2 %v1447_v39  ;;  %1503 = vmatpush.msra.mxu3 %v1448_v40 }
 0x763   : > { %v2812_v41 = vpop.eup %2811 }
 0x764   : > { %v1049_v43 = vmul.f32 %v2812_v41, %v1034_v42  ;;  %v1445_v41 = vld [vmem:[%s3284_s22 + $0x20] sm:$0xff]  ;;  %v1446_v42 = vld [vmem:[%s3284_s22 + $0x28] sm:$0xff] }
 0x765   : > { %1481 = vmatpush.msra.mxu2 %v1445_v41  ;;  %1504 = vmatpush.msra.mxu3 %v1446_v42 }
 0x766   : > { %1056 = vrot.lane.b32.xlu0 %v1049_v43, %s2954_s14  ;;  %v1443_v43 = vld [vmem:[%s3284_s22 + $0x10] sm:$0xff] }
 0x767   : > { %1482 = vmatpush.msra.mxu2 %v1443_v43  ;;  %v1299_v43 = vld [vmem:[#allocation5 + $0x18] sm:$0xc0] }
 0x7cf   : > { %v1052_v44 = vpop.permute.xlu1 %1051 }
 0x7d0   : > { %1054 = vst.msk [vmem:[#allocation3] sm:$0x3] %vm407_vm0, %v1052_v44  ;;  %v1444_v44 = vld [vmem:[%s3284_s22 + $0x18] sm:$0xff] }
 0x7d1   : > { %1505 = vmatpush.msra.mxu3 %v1444_v44 }
 0x7d7   : > { %v1154_v45 = vld [vmem:[#allocation3] sm:$0x3] }
 0x7d8   : > { %v1057_v46 = vpop.permute.xlu0 %1056  ;;  %v1156_v47 = vrot.slane %v1154_v45, 6  ;;  %v1441_v45 = vld [vmem:[%s3284_s22] sm:$0xff] }
 0x7d9   : > { %1059 = vst.msk [vmem:[#allocation2] sm:$0x3] %vm407_vm0, %v1057_v46  ;;  %1483 = vmatpush.msra.mxu2 %v1441_v45 }
 0x7da   : > { %1060 = vst.msk [vmem:[#allocation4 + $0x8] sm:$0x3] %vm407_vm0, %v1057_v46  ;;  %1157 = vrot.lane.b32.xlu2 %v1156_v47, %s2954_s14  ;;  %v1442_v46 = vld [vmem:[%s3284_s22 + $0x8] sm:$0xff] }
 0x7db   : > { %1506 = vmatpush.msra.mxu3 %v1442_v46 }
 0x7e0   : > { %v1063_v25 = vld [vmem:[#allocation2] sm:$0x3] }
 0x7e1   : > { %2667 = vmatmul.msk.f32.vlgmr.msra.gmra.mxu0 %vm479_vm2, %v1063_v25  ;;  %2668 = vmatmul.msk.f32.vlgmr.msra.gmra.mxu1 %vm479_vm2, %v1063_v25 }
 0x834   : > { %v1158_v33 = vpop.permute.xlu2 %1157 }
 0x85e   : > { %v1084_v48 = vpop.f32.mrf.mxu0  ;;  %v1104_v55 = vpop.f32.mrf.mxu1 }
 0x85f   : > { %v1109_v49 = vrot.slane %v1084_v48, 6  ;;  %v1110_v56 = vrot.slane %v1104_v55, 6  ;;  %v1439_v48 = vld [vmem:[#allocation4] sm:$0xff] }
 0x861   : > { %v1113_v51 = vadd.f32 %v1109_v49, %v1061_v50  ;;  %v1114_v59 = vadd.f32 %v1110_v56, %v1062_v57 }
 0x863   : > { %v2669_v52 = vmul.f32 -1.442695, %v1113_v51  ;;  %v2670_v27 = vmul.f32 -1.442695, %v1114_v59 }
 0x865   : > { %2813 = vpow2.f32 %v2669_v52  ;;  %v1180_v52 = vld [vmem:[#allocation5 + $0x18] sm:$0x30] }
 0x86b   : > { %v2814_v53 = vpop.eup %2813 }
 0x86c   : > { %v1118_v54 = vadd.f32 1.0, %v2814_v53  ;;  %v3311_v53 = vld [vmem:[%s3166_s18 + $0x2] sm:$0x3] }
 0x86d   : > { %v1458_v56 = vperm.slane %v3311_v53, 0  ;;  %v1459_v57 = vperm.slane %v3311_v53, 1 }
 0x86e   : > { %2815 = vrcp.f32 %v1118_v54  ;;  %v1130_v62 = vand.u32 2147483648, %v1118_v54  ;;  %v1128_v5 = vand.u32 2147483647, %v1118_v54  ;;  %vm1124_vm11 = vweird.f32 %v1118_v54 }
 0x86f   : > { %2817 = vtanh.f32 %v1114_v59 }
 0x870   : > { %v1131_v11 = vor.u32 1.1754944e-38, %v1130_v62  ;;  %vm1129_vm14 = vcmp.eq.f32.partialorder %v1128_v5, 8.507059e+37  ;;  %2819 = vpow2.f32 %v2670_v27 }
 0x874   : > { %v2816_v58 = vpop.eup %2815 }
 0x875   : > { %v1120_v60 = vmul.f32 %v2816_v58, %v1118_v54  ;;  %vm1125_vm10 = vweird.f32 %v2816_v58  ;;  %v2818_v20 = vpop.eup %2817 }
 0x876   : > { %vm1126_vm13 = vmor %vm1124_vm11, %vm1125_vm10  ;;  %v2820_v28 = vpop.eup %2819 }
 0x877   : > { %v1121_v61 = vsub.f32 1.0, %v1120_v60  ;;  %v1138_v29 = vadd.f32 1.0, %v2820_v28 }
 0x879   : > { %v1122_v63 = vmul.f32 %v2816_v58, %v1121_v61  ;;  %2821 = vrcp.f32 %v1138_v29  ;;  %v1150_v3 = vand.u32 2147483648, %v1138_v29  ;;  %vm1144_vm4 = vweird.f32 %v1138_v29 }
 0x87a   : > { %v1148_v4 = vand.u32 2147483647, %v1138_v29 }
 0x87b   : > { %v1123_v7 = vadd.f32 %v2816_v58, %v1122_v63  ;;  %v1151_v8 = vor.u32 1.1754944e-38, %v1150_v3 }
 0x87c   : > { %vm1149_vm7 = vcmp.eq.f32.partialorder %v1148_v4, 8.507059e+37 }
 0x87d   : > { %v1127_v13 = vsel %vm1126_vm13, %v2816_v58, %v1123_v7  ;;  %v1181_v7 = vld [vmem:[#allocation5 + $0x8] sm:$0x30] }
 0x87e   : > { %v1132_v24 = vsel %vm1129_vm14, %v1131_v11, %v1127_v13 }
 0x87f   : > { %v1161_v26 = vmul.f32 %v2818_v20, %v1132_v24  ;;  %v2822_v30 = vpop.eup %2821  ;;  %v1160_v35 = vmul.f32 %v1158_v33, %v1132_v24 }
 0x880   : > { %v1140_v31 = vmul.f32 %v2822_v30, %v1138_v29  ;;  %vm1145_vm3 = vweird.f32 %v2822_v30 }
 0x881   : > { %1163 = vrot.lane.b32.xlu0 %v1161_v26, %s2954_s14  ;;  %vm1146_vm5 = vmor %vm1144_vm4, %vm1145_vm3 }
 0x882   : > { %v1141_v32 = vsub.f32 1.0, %v1140_v31 }
 0x884   : > { %v1142_v34 = vmul.f32 %v2822_v30, %v1141_v32 }
 0x886   : > { %v1143_v2 = vadd.f32 %v2822_v30, %v1142_v34 }
 0x888   : > { %v1147_v6 = vsel %vm1146_vm5, %v2822_v30, %v1143_v2 }
 0x889   : > { %v1152_v10 = vsel %vm1149_vm7, %v1151_v8, %v1147_v6 }
 0x8f3   : > { %v1164_v36 = vpop.permute.xlu0 %1163 }
 0x8f4   : > { %v1166_v1 = vadd.f32 %v1164_v36, %v1160_v35 }
 0x8f6   : > { %2823 = vtanh.f32 %v1166_v1  ;;  %1170 = vrot.lane.b32.xlu2 %v1166_v1, %s2954_s14 }
 0x8fc   : > { %v2824_v9 = vpop.eup %2823 }
 0x8fd   : > { %v1168_v12 = vmul.f32 %v2824_v9, %v1152_v10 }
 0x8ff   : > { %1175 = vrot.lane.b32.xlu1 %v1168_v12, %s2954_s14 }
 0x950   : > { %v1171_v14 = vpop.permute.xlu2 %1170 }
 0x951   : > { %1173 = vst.msk [vmem:[#allocation3 - $0x2] sm:$0xc] %vm701_vm6, %v1171_v14 }
 0x958   : > { %v1273_v37 = vld [vmem:[#allocation3] sm:$0x3] }
 0x959   : > { %v1275_v38 = vrot.slane %v1273_v37, 4 }
 0x95b   : > { %1276 = vrot.lane.b32.xlu0 %v1275_v38, %s2954_s14 }
 0x971   : > { %v1176_v47 = vpop.permute.xlu1 %1175 }
 0x972   : > { %1178 = vst.msk [vmem:[#allocation2 - $0x2] sm:$0xc] %vm701_vm6, %v1176_v47 }
 0x973   : > { %1179 = vst.msk [vmem:[#allocation4 + $0x8] sm:$0xc] %vm701_vm6, %v1176_v47 }
 0x979   : > { %v1182_v25 = vld [vmem:[#allocation2] sm:$0x3] }
 0x97a   : > { %2671 = vmatmul.msk.f32.vlgmr.msrb.gmra.mxu2 %vm479_vm2, %v1182_v25  ;;  %2672 = vmatmul.msk.f32.vlgmr.msrb.gmra.mxu3 %vm479_vm2, %v1182_v25 }
 0x982   : > { %2696 = vmatmul.msk.f32.vlgmr.msra.gmra.mxu2 %vm479_vm2, %v1439_v48  ;;  %2698 = vmatmul.msk.f32.vlgmr.msra.gmra.mxu3 %vm479_vm2, %v1439_v48 }
 0x9cd   : > { %v1277_v6 = vpop.permute.xlu0 %1276 }
 0x9fd   : > { %v1203_v49 = vpop.f32.mrf.mxu2  ;;  %v1223_v50 = vpop.f32.mrf.mxu3 }
 0x9fe   : > { %v1228_v51 = vrot.slane %v1203_v49, 4  ;;  %v1229_v5 = vrot.slane %v1223_v50, 4  ;;  %v1300_v49 = vld [vmem:[#allocation5 + $0x8] sm:$0xc0] }
 0xa00   : > { %v1232_v54 = vadd.f32 %v1228_v51, %v1180_v52  ;;  %v1233_v13 = vadd.f32 %v1229_v5, %v1181_v7 }
 0xa02   : > { %v2673_v55 = vmul.f32 -1.442695, %v1232_v54  ;;  %v2674_v35 = vmul.f32 -1.442695, %v1233_v13 }
 0xa04   : > { %2825 = vpow2.f32 %v2673_v55 }
 0xa05   : > { %v1485_v58 = vpop.f32.mrf.mxu2  ;;  %v1508_v59 = vpop.f32.mrf.mxu3 }
 0xa06   : > { %v1486_v60 = vadd.f32 %v1485_v58, %v1458_v56  ;;  %v1509_v61 = vadd.f32 %v1508_v59, %v1459_v57 }
 0xa08   : > { %1514 = vst [vmem:[#allocation5 + $0x10] sm:$0xff] %v1486_v60 }
 0xa09   : > { %1515 = vst [vmem:[#allocation5] sm:$0xff] %v1509_v61 }
 0xa0a   : > { %v2826_v62 = vpop.eup %2825 }
 0xa0b   : > { %v1237_v63 = vadd.f32 1.0, %v2826_v62 }
 0xa0d   : > { %2827 = vrcp.f32 %v1237_v63  ;;  %v1249_v26 = vand.u32 2147483648, %v1237_v63  ;;  %v1247_v28 = vand.u32 2147483647, %v1237_v63  ;;  %vm1243_vm9 = vweird.f32 %v1237_v63 }
 0xa0e   : > { %2829 = vtanh.f32 %v1233_v13 }
 0xa0f   : > { %v1250_v30 = vor.u32 1.1754944e-38, %v1249_v26  ;;  %vm1248_vm11 = vcmp.eq.f32.partialorder %v1247_v28, 8.507059e+37  ;;  %2831 = vpow2.f32 %v2674_v35 }
 0xa13   : > { %v2828_v11 = vpop.eup %2827 }
 0xa14   : > { %v1239_v20 = vmul.f32 %v2828_v11, %v1237_v63  ;;  %vm1244_vm8 = vweird.f32 %v2828_v11  ;;  %v2830_v32 = vpop.eup %2829 }
 0xa15   : > { %vm1245_vm10 = vmor %vm1243_vm9, %vm1244_vm8  ;;  %v2832_v36 = vpop.eup %2831 }
 0xa16   : > { %v1240_v24 = vsub.f32 1.0, %v1239_v20  ;;  %v1257_v1 = vadd.f32 1.0, %v2832_v36 }
 0xa18   : > { %v1241_v27 = vmul.f32 %v2828_v11, %v1240_v24  ;;  %2833 = vrcp.f32 %v1257_v1  ;;  %v1269_v15 = vand.u32 2147483648, %v1257_v1  ;;  %vm1263_vm14 = vweird.f32 %v1257_v1 }
 0xa19   : > { %v1267_v16 = vand.u32 2147483647, %v1257_v1 }
 0xa1a   : > { %v1242_v29 = vadd.f32 %v2828_v11, %v1241_v27  ;;  %v1270_v18 = vor.u32 1.1754944e-38, %v1269_v15  ;;  %v3362_v15 = vld [vmem:[%s3016_s30 + $0xc0] sm:$0xff] }
 0xa1b   : > { %vm1268_vm4 = vcmp.eq.f32.partialorder %v1267_v16, 8.507059e+37  ;;  %v3365_v16 = vld [vmem:[%s3016_s30 + $0xc8] sm:$0xff] }
 0xa1c   : > { %v1246_v31 = vsel %vm1245_vm10, %v2828_v11, %v1242_v29 }
 0xa1d   : > { %v1251_v33 = vsel %vm1248_vm11, %v1250_v30, %v1246_v31 }
 0xa1e   : > { %v1280_v34 = vmul.f32 %v2830_v32, %v1251_v33  ;;  %v2834_v2 = vpop.eup %2833  ;;  %v1279_v9 = vmul.f32 %v1277_v6, %v1251_v33  ;;  %v3332_v6 = vld [vmem:[%s3016_s30 + $0xf0] sm:$0xff] }
 0xa1f   : > { %v1259_v3 = vmul.f32 %v2834_v2, %v1257_v1  ;;  %vm1264_vm13 = vweird.f32 %v2834_v2  ;;  %1532 = vmatpush.msra.mxu0 %v3332_v6  ;;  %1644 = vmatpush.msrb.mxu2 %v3332_v6 }
 0xa20   : > { %1282 = vrot.lane.b32.xlu1 %v1280_v34, %s2954_s14  ;;  %vm1265_vm3 = vmor %vm1263_vm14, %vm1264_vm13 }
 0xa21   : > { %v1260_v4 = vsub.f32 1.0, %v1259_v3 }
 0xa23   : > { %v1261_v8 = vmul.f32 %v2834_v2, %v1260_v4 }
 0xa25   : > { %v1262_v14 = vadd.f32 %v2834_v2, %v1261_v8  ;;  %v3335_v8 = vld [vmem:[%s3016_s30 + $0xf8] sm:$0xff] }
 0xa26   : > { %1552 = vmatpush.msra.mxu1 %v3335_v8  ;;  %1664 = vmatpush.msrb.mxu3 %v3335_v8 }
 0xa27   : > { %v1266_v17 = vsel %vm1265_vm3, %v2834_v2, %v1262_v14  ;;  %v3349_v14 = vld [vmem:[%s3016_s30 + $0xd8] sm:$0xff] }
 0xa28   : > { %v1271_v21 = vsel %vm1268_vm4, %v1270_v18, %v1266_v17  ;;  %v3370_v17 = vld [vmem:[%s3016_s30 + $0xb0] sm:$0xff]  ;;  %v3373_v18 = vld [vmem:[%s3016_s30 + $0xb8] sm:$0xff] }
 0xa92   : > { %v1283_v10 = vpop.permute.xlu1 %1282 }
 0xa93   : > { %v1285_v12 = vadd.f32 %v1283_v10, %v1279_v9  ;;  %v3338_v9 = vld [vmem:[%s3016_s30 + $0xe0] sm:$0xff]  ;;  %v3343_v10 = vld [vmem:[%s3016_s30 + $0xe8] sm:$0xff] }
 0xa94   : > { %1533 = vmatpush.msra.mxu0 %v3338_v9  ;;  %1553 = vmatpush.msra.mxu1 %v3343_v10 }
 0xa95   : > { %2835 = vtanh.f32 %v1285_v12  ;;  %1289 = vrot.lane.b32.xlu0 %v1285_v12, %s2954_s14  ;;  %v3346_v12 = vld [vmem:[%s3016_s30 + $0xd0] sm:$0xff]  ;;  %1645 = vmatpush.msrb.mxu2 %v3338_v9 }
 0xa96   : > { %1665 = vmatpush.msrb.mxu3 %v3343_v10  ;;  %1534 = vmatpush.msra.mxu0 %v3346_v12 }
 0xa97   : > { %1554 = vmatpush.msra.mxu1 %v3349_v14  ;;  %1646 = vmatpush.msrb.mxu2 %v3346_v12 }
 0xa98   : > { %1666 = vmatpush.msrb.mxu3 %v3349_v14  ;;  %1535 = vmatpush.msra.mxu0 %v3362_v15 }
 0xa99   : > { %1555 = vmatpush.msra.mxu1 %v3365_v16  ;;  %1647 = vmatpush.msrb.mxu2 %v3362_v15 }
 0xa9a   : > { %1667 = vmatpush.msrb.mxu3 %v3365_v16  ;;  %1536 = vmatpush.msra.mxu0 %v3370_v17 }
 0xa9b   : > { %v2836_v19 = vpop.eup %2835  ;;  %1556 = vmatpush.msra.mxu1 %v3373_v18  ;;  %1648 = vmatpush.msrb.mxu2 %v3370_v17 }
 0xa9c   : > { %v1287_v22 = vmul.f32 %v2836_v19, %v1271_v21  ;;  %v3376_v19 = vld [vmem:[%s3016_s30 + $0xa0] sm:$0xff]  ;;  %v3383_v21 = vld [vmem:[%s3016_s30 + $0xa8] sm:$0xff]  ;;  %1668 = vmatpush.msrb.mxu3 %v3373_v18 }
 0xa9d   : > { %1537 = vmatpush.msra.mxu0 %v3376_v19  ;;  %1557 = vmatpush.msra.mxu1 %v3383_v21 }
 0xa9e   : > { %1294 = vrot.lane.b32.xlu2 %v1287_v22, %s2954_s14  ;;  %v3386_v22 = vld [vmem:[%s3016_s30 + $0x90] sm:$0xff]  ;;  %1649 = vmatpush.msrb.mxu2 %v3376_v19 }
 0xa9f   : > { %1669 = vmatpush.msrb.mxu3 %v3383_v21  ;;  %1538 = vmatpush.msra.mxu0 %v3386_v22 }
 0xaa0   : > { %1650 = vmatpush.msrb.mxu2 %v3386_v22 }
 0xaf8   : > { %v1295_v23 = vpop.permute.xlu2 %1294 }
 0xaf9   : > { %1297 = vst.msk [vmem:[#allocation2 - $0x4] sm:$0x30] %vm821_vm15, %v1295_v23 }
 0xafa   : > { %1298 = vst.msk [vmem:[#allocation4 + $0x8] sm:$0x30] %vm821_vm15, %v1295_v23  ;;  %v3389_v23 = vld [vmem:[%s3016_s30 + $0x98] sm:$0xff] }
 0xafb   : > { %1558 = vmatpush.msra.mxu1 %v3389_v23  ;;  %1670 = vmatpush.msrb.mxu3 %v3389_v23 }
 0xb00   : > { %v1301_v37 = vld [vmem:[#allocation2] sm:$0x3] }
 0xb01   : > { %2675 = vmatmul.msk.f32.vlgmr.msrb.gmra.mxu0 %vm479_vm2, %v1301_v37  ;;  %2676 = vmatmul.msk.f32.vlgmr.msrb.gmra.mxu1 %vm479_vm2, %v1301_v37  ;;  %v3400_v37 = vld [vmem:[%s3016_s30 + $0x80] sm:$0xff] }
 0xb02   : > { %1539 = vmatpush.msra.mxu0 %v3400_v37  ;;  %1651 = vmatpush.msrb.mxu2 %v3400_v37 }
 0xb04   : > { %1763 = vmatpush.msrb.mxu0 %v3332_v6  ;;  %1882 = vmatpush.msra.mxu2 %v3332_v6 }
 0xb06   : > { %1764 = vmatpush.msrb.mxu0 %v3338_v9  ;;  %1883 = vmatpush.msra.mxu2 %v3338_v9 }
 0xb07   : > { %v1290_v38 = vpop.permute.xlu0 %1289 }
 0xb08   : > { %1292 = vst.msk [vmem:[#allocation3 - $0x4] sm:$0x30] %vm821_vm15, %v1290_v38  ;;  %v3403_v38 = vld [vmem:[%s3016_s30 + $0x88] sm:$0xff]  ;;  %1765 = vmatpush.msrb.mxu0 %v3346_v12  ;;  %1884 = vmatpush.msra.mxu2 %v3346_v12 }
 0xb09   : > { %1559 = vmatpush.msra.mxu1 %v3403_v38  ;;  %1671 = vmatpush.msrb.mxu3 %v3403_v38 }
 0xb0a   : > { %1766 = vmatpush.msrb.mxu0 %v3362_v15  ;;  %1885 = vmatpush.msra.mxu2 %v3362_v15 }
 0xb0b   : > { %1783 = vmatpush.msrb.mxu1 %v3335_v8  ;;  %1902 = vmatpush.msra.mxu3 %v3335_v8 }
 0xb0c   : > { %1767 = vmatpush.msrb.mxu0 %v3370_v17  ;;  %1886 = vmatpush.msra.mxu2 %v3370_v17 }
 0xb0d   : > { %1784 = vmatpush.msrb.mxu1 %v3343_v10  ;;  %1903 = vmatpush.msra.mxu3 %v3343_v10 }
 0xb0e   : > { %1768 = vmatpush.msrb.mxu0 %v3376_v19  ;;  %1887 = vmatpush.msra.mxu2 %v3376_v19 }
 0xb0f   : > { %v1392_v39 = vld [vmem:[#allocation3] sm:$0x3]  ;;  %1785 = vmatpush.msrb.mxu1 %v3349_v14  ;;  %1904 = vmatpush.msra.mxu3 %v3349_v14 }
 0xb10   : > { %v1394_v40 = vrot.slane %v1392_v39, 2  ;;  %1769 = vmatpush.msrb.mxu0 %v3386_v22  ;;  %1888 = vmatpush.msra.mxu2 %v3386_v22 }
 0xb11   : > { %1786 = vmatpush.msrb.mxu1 %v3365_v16  ;;  %1905 = vmatpush.msra.mxu3 %v3365_v16 }
 0xb12   : > { %1395 = vrot.lane.b32.xlu1 %v1394_v40, %s2954_s14  ;;  %1770 = vmatpush.msrb.mxu0 %v3400_v37 }
 0xb13   : > { %1787 = vmatpush.msrb.mxu1 %v3373_v18  ;;  %1906 = vmatpush.msra.mxu3 %v3373_v18 }
 0xb14   : > { %1889 = vmatpush.msra.mxu2 %v3400_v37 }
 0xb15   : > { %1788 = vmatpush.msrb.mxu1 %v3383_v21  ;;  %1907 = vmatpush.msra.mxu3 %v3383_v21 }
 0xb17   : > { %1789 = vmatpush.msrb.mxu1 %v3389_v23  ;;  %1908 = vmatpush.msra.mxu3 %v3389_v23 }
 0xb19   : > { %1790 = vmatpush.msrb.mxu1 %v3403_v38  ;;  %1909 = vmatpush.msra.mxu3 %v3403_v38 }
 0xb7e   : > { %v1322_v41 = vpop.f32.mrf.mxu0  ;;  %v1342_v25 = vpop.f32.mrf.mxu1 }
 0xb7f   : > { %v1347_v42 = vrot.slane %v1322_v41, 2  ;;  %v1348_v48 = vrot.slane %v1342_v25, 2 }
 0xb81   : > { %v1351_v44 = vadd.f32 %v1347_v42, %v1299_v43  ;;  %v1352_v51 = vadd.f32 %v1348_v48, %v1300_v49 }
 0xb83   : > { %v2677_v45 = vmul.f32 -1.442695, %v1351_v44  ;;  %v2678_v11 = vmul.f32 -1.442695, %v1352_v51 }
 0xb84   : > { %v1396_v28 = vpop.permute.xlu1 %1395 }
 0xb85   : > { %2837 = vpow2.f32 %v2677_v45 }
 0xb8b   : > { %v2838_v46 = vpop.eup %2837 }
 0xb8c   : > { %v1356_v47 = vadd.f32 1.0, %v2838_v46 }
 0xb8e   : > { %2839 = vrcp.f32 %v1356_v47  ;;  %v1368_v55 = vand.u32 2147483648, %v1356_v47  ;;  %v1366_v59 = vand.u32 2147483647, %v1356_v47  ;;  %vm1362_vm7 = vweird.f32 %v1356_v47 }
 0xb8f   : > { %2841 = vtanh.f32 %v1352_v51 }
 0xb90   : > { %v1369_v61 = vor.u32 1.1754944e-38, %v1368_v55  ;;  %vm1367_vm9 = vcmp.eq.f32.partialorder %v1366_v59, 8.507059e+37  ;;  %2843 = vpow2.f32 %v2678_v11 }
 0xb94   : > { %v2840_v50 = vpop.eup %2839 }
 0xb95   : > { %v1358_v52 = vmul.f32 %v2840_v50, %v1356_v47  ;;  %vm1363_vm5 = vweird.f32 %v2840_v50  ;;  %v2842_v63 = vpop.eup %2841 }
 0xb96   : > { %vm1364_vm8 = vmor %vm1362_vm7, %vm1363_vm5  ;;  %v2844_v13 = vpop.eup %2843 }
 0xb97   : > { %v1359_v54 = vsub.f32 1.0, %v1358_v52  ;;  %v1376_v20 = vadd.f32 1.0, %v2844_v13 }
 0xb99   : > { %v1360_v58 = vmul.f32 %v2840_v50, %v1359_v54  ;;  %2845 = vrcp.f32 %v1376_v20  ;;  %v1388_v34 = vand.u32 2147483648, %v1376_v20  ;;  %vm1382_vm11 = vweird.f32 %v1376_v20  ;;  %v1519_v54 = vld [vmem:[#allocation5] sm:$0x3] }
 0xb9a   : > { %v1386_v35 = vand.u32 2147483647, %v1376_v20 }
 0xb9b   : > { %v1361_v60 = vadd.f32 %v2840_v50, %v1360_v58  ;;  %v1389_v1 = vor.u32 1.1754944e-38, %v1388_v34 }
 0xb9c   : > { %vm1387_vm14 = vcmp.eq.f32.partialorder %v1386_v35, 8.507059e+37 }
 0xb9d   : > { %v1365_v62 = vsel %vm1364_vm8, %v2840_v50, %v1361_v60 }
 0xb9e   : > { %v1370_v5 = vsel %vm1367_vm9, %v1369_v61, %v1365_v62 }
 0xb9f   : > { %v1399_v7 = vmul.f32 %v2842_v63, %v1370_v5  ;;  %v2846_v24 = vpop.eup %2845  ;;  %v1398_v30 = vmul.f32 %v1396_v28, %v1370_v5 }
 0xba0   : > { %v1378_v26 = vmul.f32 %v2846_v24, %v1376_v20  ;;  %vm1383_vm10 = vweird.f32 %v2846_v24 }
 0xba1   : > { %1401 = vrot.lane.b32.xlu2 %v1399_v7, %s2954_s14  ;;  %vm1384_vm13 = vmor %vm1382_vm11, %vm1383_vm10 }
 0xba2   : > { %v1379_v27 = vsub.f32 1.0, %v1378_v26 }
 0xba4   : > { %v1380_v29 = vmul.f32 %v2846_v24, %v1379_v27 }
 0xba6   : > { %v1381_v33 = vadd.f32 %v2846_v24, %v1380_v29 }
 0xba8   : > { %v1385_v36 = vsel %vm1384_vm13, %v2846_v24, %v1381_v33 }
 0xba9   : > { %v1390_v3 = vsel %vm1387_vm14, %v1389_v1, %v1385_v36 }
 0xbfb   : > { %v1402_v31 = vpop.permute.xlu2 %1401 }
 0xbfc   : > { %v1404_v32 = vadd.f32 %v1402_v31, %v1398_v30 }
 0xbfe   : > { %2847 = vtanh.f32 %v1404_v32  ;;  %1408 = vrot.lane.b32.xlu1 %v1404_v32, %s2954_s14 }
 0xc04   : > { %v2848_v2 = vpop.eup %2847 }
 0xc05   : > { %v1406_v4 = vmul.f32 %v2848_v2, %v1390_v3 }
 0xc07   : > { %1413 = vrot.lane.b32.xlu0 %v1406_v4, %s2954_s14 }
 0xc70   : > { %v1409_v39 = vpop.permute.xlu1 %1408 }
 0xc71   : > { %1411 = vst.msk [vmem:[#allocation3 - $0x6] sm:$0xc0] %vm941_vm12, %v1409_v39 }
 0xc72   : > { %1438 = vst.msk [vmem:[#allocation3] sm:$0x3] %vm407_vm0, %v2953_v0 }
 0xc79   : > { %v1414_v40 = vpop.permute.xlu0 %1413  ;;  %v1605_v41 = vld [vmem:[#allocation3] sm:$0x3] }
 0xc7a   : > { %1416 = vst.msk [vmem:[#allocation2 - $0x6] sm:$0xc0] %vm941_vm12, %v1414_v40  ;;  %1607 = vrot.lane.b32.xlu2 %v1605_v41, %s2954_s14 }
 0xc7b   : > { %1417 = vst.msk [vmem:[#allocation4 + $0x8] sm:$0xc0] %vm941_vm12, %v1414_v40 }
 0xc7c   : > { %1437 = vst.msk [vmem:[#allocation2] sm:$0x3] %vm407_vm0, %v2953_v0  ;;  %v1518_v0 = vld [vmem:[#allocation5 + $0x10] sm:$0x3] }
 0xc82   : > { %v1440_v42 = vld [vmem:[#allocation4 + $0x8] sm:$0xff] }
 0xc83   : > { %2697 = vmatmul.msk.f32.gmra.mxu2 %vm479_vm2, %v1440_v42  ;;  %2699 = vmatmul.msk.f32.gmra.mxu3 %vm479_vm2, %v1440_v42  ;;  %v1520_v43 = vld [vmem:[#allocation2] sm:$0x3] }
 0xc84   : > { %2700 = vmatmul.msk.f32.vlgmr.msra.gmra.mxu0 %vm479_vm2, %v1520_v43  ;;  %2701 = vmatmul.msk.f32.vlgmr.msra.gmra.mxu1 %vm479_vm2, %v1520_v43 }
 0xc85   : > { %2001 = vmatpush.msra.mxu0 %v3332_v6  ;;  %2021 = vmatpush.msra.mxu1 %v3335_v8 }
 0xc87   : > { %2002 = vmatpush.msra.mxu0 %v3338_v9  ;;  %2022 = vmatpush.msra.mxu1 %v3343_v10 }
 0xc89   : > { %2003 = vmatpush.msra.mxu0 %v3346_v12  ;;  %2023 = vmatpush.msra.mxu1 %v3349_v14 }
 0xc8b   : > { %2004 = vmatpush.msra.mxu0 %v3362_v15  ;;  %2024 = vmatpush.msra.mxu1 %v3365_v16 }
 0xc8d   : > { %2005 = vmatpush.msra.mxu0 %v3370_v17  ;;  %2025 = vmatpush.msra.mxu1 %v3373_v18 }
 0xc8f   : > { %2006 = vmatpush.msra.mxu0 %v3376_v19  ;;  %2026 = vmatpush.msra.mxu1 %v3383_v21 }
 0xc91   : > { %2007 = vmatpush.msra.mxu0 %v3386_v22  ;;  %2027 = vmatpush.msra.mxu1 %v3389_v23 }
 0xc93   : > { %2008 = vmatpush.msra.mxu0 %v3400_v37  ;;  %2028 = vmatpush.msra.mxu1 %v3403_v38 }
 0xcd4   : > { %v1608_v29 = vpop.permute.xlu2 %1607 }
 0xd01   : > { %v1541_v44 = vpop.f32.mrf.mxu0  ;;  %v1561_v52 = vpop.f32.mrf.mxu1 }
 0xd02   : > { %v1564_v45 = vadd.f32 %v1541_v44, %v1518_v0  ;;  %v1565_v58 = vadd.f32 %v1561_v52, %v1519_v54  ;;  %v1631_v52 = vld [vmem:[#allocation5] sm:$0xc] }
 0xd04   : > { %v2702_v46 = vmul.f32 -1.442695, %v1564_v45  ;;  %v2703_v13 = vmul.f32 -1.442695, %v1565_v58 }
 0xd06   : > { %2849 = vpow2.f32 %v2702_v46  ;;  %v1488_v47 = vpop.f32.mrf.mxu2  ;;  %v1511_v25 = vpop.f32.mrf.mxu3  ;;  %v1630_v46 = vld [vmem:[#allocation5 + $0x10] sm:$0xc] }
 0xd07   : > { %v1489_v48 = vadd.f32 %v1488_v47, %v1458_v56  ;;  %v1512_v49 = vadd.f32 %v1511_v25, %v1459_v57 }
 0xd09   : > { %1516 = vst [vmem:[#allocation5 + $0x18] sm:$0xff] %v1489_v48 }
 0xd0a   : > { %1517 = vst [vmem:[#allocation5 + $0x8] sm:$0xff] %v1512_v49 }
 0xd0c   : > { %v2850_v50 = vpop.eup %2849 }
 0xd0d   : > { %v1569_v51 = vadd.f32 1.0, %v2850_v50 }
 0xd0f   : > { %2851 = vrcp.f32 %v1569_v51  ;;  %v1581_v61 = vand.u32 2147483648, %v1569_v51  ;;  %v1579_v63 = vand.u32 2147483647, %v1569_v51  ;;  %vm1575_vm4 = vweird.f32 %v1569_v51 }
 0xd10   : > { %2853 = vtanh.f32 %v1565_v58 }
 0xd11   : > { %v1582_v53 = vor.u32 1.1754944e-38, %v1581_v61  ;;  %vm1580_vm7 = vcmp.eq.f32.partialorder %v1579_v63, 8.507059e+37  ;;  %2855 = vpow2.f32 %v2703_v13 }
 0xd15   : > { %v2852_v55 = vpop.eup %2851 }
 0xd16   : > { %v1571_v59 = vmul.f32 %v2852_v55, %v1569_v51  ;;  %vm1576_vm3 = vweird.f32 %v2852_v55  ;;  %v2854_v5 = vpop.eup %2853 }
 0xd17   : > { %vm1577_vm5 = vmor %vm1575_vm4, %vm1576_vm3  ;;  %v2856_v20 = vpop.eup %2855 }
 0xd18   : > { %v1572_v60 = vsub.f32 1.0, %v1571_v59  ;;  %v1589_v24 = vadd.f32 1.0, %v2856_v20 }
 0xd1a   : > { %v1573_v62 = vmul.f32 %v2852_v55, %v1572_v60  ;;  %2857 = vrcp.f32 %v1589_v24  ;;  %v1601_v35 = vand.u32 2147483648, %v1589_v24  ;;  %vm1595_vm9 = vweird.f32 %v1589_v24 }
 0xd1b   : > { %v1599_v36 = vand.u32 2147483647, %v1589_v24 }
 0xd1c   : > { %v1574_v56 = vadd.f32 %v2852_v55, %v1573_v62  ;;  %v1602_v2 = vor.u32 1.1754944e-38, %v1601_v35 }
 0xd1d   : > { %vm1600_vm11 = vcmp.eq.f32.partialorder %v1599_v36, 8.507059e+37 }
 0xd1e   : > { %v1578_v57 = vsel %vm1577_vm5, %v2852_v55, %v1574_v56 }
 0xd1f   : > { %v1583_v7 = vsel %vm1580_vm7, %v1582_v53, %v1578_v57 }
 0xd20   : > { %v1611_v11 = vmul.f32 %v2854_v5, %v1583_v7  ;;  %v2858_v26 = vpop.eup %2857  ;;  %v1610_v31 = vmul.f32 %v1608_v29, %v1583_v7 }
 0xd21   : > { %v1591_v27 = vmul.f32 %v2858_v26, %v1589_v24  ;;  %vm1596_vm8 = vweird.f32 %v2858_v26 }
 0xd22   : > { %1613 = vrot.lane.b32.xlu0 %v1611_v11, %s2954_s14  ;;  %vm1597_vm10 = vmor %vm1595_vm9, %vm1596_vm8 }
 0xd23   : > { %v1592_v28 = vsub.f32 1.0, %v1591_v27 }
 0xd25   : > { %v1593_v30 = vmul.f32 %v2858_v26, %v1592_v28 }
 0xd27   : > { %v1594_v34 = vadd.f32 %v2858_v26, %v1593_v30 }
 0xd29   : > { %v1598_v1 = vsel %vm1597_vm10, %v2858_v26, %v1594_v34 }
 0xd2a   : > { %v1603_v4 = vsel %vm1600_vm11, %v1602_v2, %v1598_v1 }
 0xd94   : > { %v1614_v32 = vpop.permute.xlu0 %1613 }
 0xd95   : > { %v1616_v33 = vadd.f32 %v1614_v32, %v1610_v31 }
 0xd97   : > { %2859 = vtanh.f32 %v1616_v33  ;;  %1620 = vrot.lane.b32.xlu2 %v1616_v33, %s2954_s14 }
 0xd9d   : > { %v2860_v3 = vpop.eup %2859 }
 0xd9e   : > { %v1618_v39 = vmul.f32 %v2860_v3, %v1603_v4 }
 0xda0   : > { %1625 = vrot.lane.b32.xlu1 %v1618_v39, %s2954_s14 }
 0xdf1   : > { %v1621_v40 = vpop.permute.xlu2 %1620 }
 0xdf2   : > { %1623 = vst.msk [vmem:[#allocation3] sm:$0x3] %vm407_vm0, %v1621_v40 }
 0xdf9   : > { %v1723_v41 = vld [vmem:[#allocation3] sm:$0x3] }
 0xdfa   : > { %v1725_v42 = vrot.slane %v1723_v41, 6 }
 0xdfc   : > { %1726 = vrot.lane.b32.xlu0 %v1725_v42, %s2954_s14 }
 0xe12   : > { %v1626_v43 = vpop.permute.xlu1 %1625 }
 0xe13   : > { %1628 = vst.msk [vmem:[#allocation2] sm:$0x3] %vm407_vm0, %v1626_v43 }
 0xe14   : > { %1629 = vst.msk [vmem:[#allocation4] sm:$0x3] %vm407_vm0, %v1626_v43 }
 0xe1a   : > { %v1632_v0 = vld [vmem:[#allocation2] sm:$0x3] }
 0xe1b   : > { %2704 = vmatmul.msk.f32.vlgmr.msrb.gmra.mxu2 %vm479_vm2, %v1632_v0  ;;  %2705 = vmatmul.msk.f32.vlgmr.msrb.gmra.mxu3 %vm479_vm2, %v1632_v0 }
 0xe1c   : > { %2113 = vmatpush.msrb.mxu2 %v3332_v6  ;;  %2133 = vmatpush.msrb.mxu3 %v3335_v8 }
 0xe1e   : > { %2114 = vmatpush.msrb.mxu2 %v3338_v9  ;;  %2134 = vmatpush.msrb.mxu3 %v3343_v10 }
 0xe20   : > { %2115 = vmatpush.msrb.mxu2 %v3346_v12  ;;  %2135 = vmatpush.msrb.mxu3 %v3349_v14 }
 0xe22   : > { %2116 = vmatpush.msrb.mxu2 %v3362_v15  ;;  %2136 = vmatpush.msrb.mxu3 %v3365_v16 }
 0xe24   : > { %2117 = vmatpush.msrb.mxu2 %v3370_v17  ;;  %2137 = vmatpush.msrb.mxu3 %v3373_v18 }
 0xe26   : > { %2118 = vmatpush.msrb.mxu2 %v3376_v19  ;;  %2138 = vmatpush.msrb.mxu3 %v3383_v21 }
 0xe28   : > { %2119 = vmatpush.msrb.mxu2 %v3386_v22  ;;  %2139 = vmatpush.msrb.mxu3 %v3389_v23 }
 0xe2a   : > { %2120 = vmatpush.msrb.mxu2 %v3400_v37  ;;  %2140 = vmatpush.msrb.mxu3 %v3403_v38 }
 0xe6e   : > { %v1727_v28 = vpop.permute.xlu0 %1726 }
 0xe9e   : > { %v1653_v44 = vpop.f32.mrf.mxu2  ;;  %v1673_v50 = vpop.f32.mrf.mxu3 }
 0xe9f   : > { %v1678_v45 = vrot.slane %v1653_v44, 6  ;;  %v1679_v51 = vrot.slane %v1673_v50, 6 }
 0xea1   : > { %v1682_v47 = vadd.f32 %v1678_v45, %v1630_v46  ;;  %v1683_v55 = vadd.f32 %v1679_v51, %v1631_v52  ;;  %v1749_v45 = vld [vmem:[#allocation5 + $0x10] sm:$0x30]  ;;  %v1750_v51 = vld [vmem:[#allocation5] sm:$0x30] }
 0xea3   : > { %v2706_v25 = vmul.f32 -1.442695, %v1682_v47  ;;  %v2707_v11 = vmul.f32 -1.442695, %v1683_v55 }
 0xea5   : > { %2861 = vpow2.f32 %v2706_v25 }
 0xeab   : > { %v2862_v48 = vpop.eup %2861 }
 0xeac   : > { %v1687_v49 = vadd.f32 1.0, %v2862_v48 }
 0xeae   : > { %2863 = vrcp.f32 %v1687_v49  ;;  %v1699_v60 = vand.u32 2147483648, %v1687_v49  ;;  %v1697_v62 = vand.u32 2147483647, %v1687_v49  ;;  %vm1693_vm14 = vweird.f32 %v1687_v49 }
 0xeaf   : > { %2865 = vtanh.f32 %v1683_v55 }
 0xeb0   : > { %v1700_v56 = vor.u32 1.1754944e-38, %v1699_v60  ;;  %vm1698_vm4 = vcmp.eq.f32.partialorder %v1697_v62, 8.507059e+37  ;;  %2867 = vpow2.f32 %v2707_v11 }
 0xeb4   : > { %v2864_v54 = vpop.eup %2863 }
 0xeb5   : > { %v1689_v58 = vmul.f32 %v2864_v54, %v1687_v49  ;;  %vm1694_vm13 = vweird.f32 %v2864_v54  ;;  %v2866_v57 = vpop.eup %2865 }
 0xeb6   : > { %vm1695_vm3 = vmor %vm1693_vm14, %vm1694_vm13  ;;  %v2868_v13 = vpop.eup %2867 }
 0xeb7   : > { %v1690_v59 = vsub.f32 1.0, %v1689_v58  ;;  %v1707_v20 = vadd.f32 1.0, %v2868_v13 }
 0xeb9   : > { %v1691_v61 = vmul.f32 %v2864_v54, %v1690_v59  ;;  %2869 = vrcp.f32 %v1707_v20  ;;  %v1719_v34 = vand.u32 2147483648, %v1707_v20  ;;  %vm1713_vm7 = vweird.f32 %v1707_v20 }
 0xeba   : > { %v1717_v35 = vand.u32 2147483647, %v1707_v20 }
 0xebb   : > { %v1692_v63 = vadd.f32 %v2864_v54, %v1691_v61  ;;  %v1720_v1 = vor.u32 1.1754944e-38, %v1719_v34 }
 0xebc   : > { %vm1718_vm9 = vcmp.eq.f32.partialorder %v1717_v35, 8.507059e+37 }
 0xebd   : > { %v1696_v53 = vsel %vm1695_vm3, %v2864_v54, %v1692_v63 }
 0xebe   : > { %v1701_v5 = vsel %vm1698_vm4, %v1700_v56, %v1696_v53 }
 0xebf   : > { %v1730_v7 = vmul.f32 %v2866_v57, %v1701_v5  ;;  %v2870_v24 = vpop.eup %2869  ;;  %v1729_v30 = vmul.f32 %v1727_v28, %v1701_v5 }
 0xec0   : > { %v1709_v26 = vmul.f32 %v2870_v24, %v1707_v20  ;;  %vm1714_vm5 = vweird.f32 %v2870_v24 }
 0xec1   : > { %1732 = vrot.lane.b32.xlu1 %v1730_v7, %s2954_s14  ;;  %vm1715_vm8 = vmor %vm1713_vm7, %vm1714_vm5 }
 0xec2   : > { %v1710_v27 = vsub.f32 1.0, %v1709_v26 }
 0xec4   : > { %v1711_v29 = vmul.f32 %v2870_v24, %v1710_v27 }
 0xec6   : > { %v1712_v33 = vadd.f32 %v2870_v24, %v1711_v29 }
 0xec8   : > { %v1716_v36 = vsel %vm1715_vm8, %v2870_v24, %v1712_v33 }
 0xec9   : > { %v1721_v3 = vsel %vm1718_vm9, %v1720_v1, %v1716_v36 }
 0xf33   : > { %v1733_v31 = vpop.permute.xlu1 %1732 }
 0xf34   : > { %v1735_v32 = vadd.f32 %v1733_v31, %v1729_v30 }
 0xf36   : > { %2871 = vtanh.f32 %v1735_v32  ;;  %1739 = vrot.lane.b32.xlu0 %v1735_v32, %s2954_s14 }
 0xf3c   : > { %v2872_v2 = vpop.eup %2871 }
 0xf3d   : > { %v1737_v4 = vmul.f32 %v2872_v2, %v1721_v3 }
 0xf3f   : > { %1744 = vrot.lane.b32.xlu2 %v1737_v4, %s2954_s14 }
 0xf99   : > { %v1745_v39 = vpop.permute.xlu2 %1744 }
 0xf9a   : > { %1747 = vst.msk [vmem:[#allocation2 - $0x2] sm:$0xc] %vm701_vm6, %v1745_v39 }
 0xf9b   : > { %1748 = vst.msk [vmem:[#allocation4] sm:$0xc] %vm701_vm6, %v1745_v39 }
 0xfa1   : > { %v1751_v40 = vld [vmem:[#allocation2] sm:$0x3] }
 0xfa2   : > { %2708 = vmatmul.msk.f32.vlgmr.msrb.gmra.mxu0 %vm479_vm2, %v1751_v40  ;;  %2709 = vmatmul.msk.f32.vlgmr.msrb.gmra.mxu1 %vm479_vm2, %v1751_v40 }
 0xfa3   : > { %2232 = vmatpush.msrb.mxu0 %v3332_v6  ;;  %2252 = vmatpush.msrb.mxu1 %v3335_v8 }
 0xfa5   : > { %2233 = vmatpush.msrb.mxu0 %v3338_v9  ;;  %2253 = vmatpush.msrb.mxu1 %v3343_v10 }
 0xfa7   : > { %2234 = vmatpush.msrb.mxu0 %v3346_v12  ;;  %2254 = vmatpush.msrb.mxu1 %v3349_v14 }
 0xfa8   : > { %v1740_v41 = vpop.permute.xlu0 %1739 }
 0xfa9   : > { %1742 = vst.msk [vmem:[#allocation3 - $0x2] sm:$0xc] %vm701_vm6, %v1740_v41  ;;  %2235 = vmatpush.msrb.mxu0 %v3362_v15  ;;  %2255 = vmatpush.msrb.mxu1 %v3365_v16 }
 0xfab   : > { %2236 = vmatpush.msrb.mxu0 %v3370_v17  ;;  %2256 = vmatpush.msrb.mxu1 %v3373_v18 }
 0xfad   : > { %2237 = vmatpush.msrb.mxu0 %v3376_v19  ;;  %2257 = vmatpush.msrb.mxu1 %v3383_v21 }
 0xfaf   : > { %2238 = vmatpush.msrb.mxu0 %v3386_v22  ;;  %2258 = vmatpush.msrb.mxu1 %v3389_v23 }
 0xfb0   : > { %v1842_v42 = vld [vmem:[#allocation3] sm:$0x3] }
 0xfb1   : > { %v1844_v43 = vrot.slane %v1842_v42, 4  ;;  %2239 = vmatpush.msrb.mxu0 %v3400_v37  ;;  %2259 = vmatpush.msrb.mxu1 %v3403_v38 }
 0xfb3   : > { %1845 = vrot.lane.b32.xlu1 %v1844_v43, %s2954_s14 }
0x101f   : > { %v1772_v0 = vpop.f32.mrf.mxu0  ;;  %v1792_v49 = vpop.f32.mrf.mxu1 }
0x1020   : > { %v1797_v44 = vrot.slane %v1772_v0, 4  ;;  %v1798_v50 = vrot.slane %v1792_v49, 4 }
0x1022   : > { %v1801_v46 = vadd.f32 %v1797_v44, %v1749_v45  ;;  %v1802_v54 = vadd.f32 %v1798_v50, %v1750_v51 }
0x1024   : > { %v2710_v47 = vmul.f32 -1.442695, %v1801_v46  ;;  %v2711_v7 = vmul.f32 -1.442695, %v1802_v54 }
0x1025   : > { %v1846_v27 = vpop.permute.xlu1 %1845 }
0x1026   : > { %2873 = vpow2.f32 %v2710_v47 }
0x102c   : > { %v2874_v25 = vpop.eup %2873 }
0x102d   : > { %v1806_v48 = vadd.f32 1.0, %v2874_v25 }
0x102f   : > { %2875 = vrcp.f32 %v1806_v48  ;;  %v1818_v59 = vand.u32 2147483648, %v1806_v48  ;;  %v1816_v61 = vand.u32 2147483647, %v1806_v48  ;;  %vm1812_vm11 = vweird.f32 %v1806_v48 }
0x1030   : > { %2877 = vtanh.f32 %v1802_v54 }
0x1031   : > { %v1819_v63 = vor.u32 1.1754944e-38, %v1818_v59  ;;  %vm1817_vm14 = vcmp.eq.f32.partialorder %v1816_v61, 8.507059e+37  ;;  %2879 = vpow2.f32 %v2711_v7 }
0x1035   : > { %v2876_v52 = vpop.eup %2875 }
0x1036   : > { %v1808_v55 = vmul.f32 %v2876_v52, %v1806_v48  ;;  %vm1813_vm10 = vweird.f32 %v2876_v52  ;;  %v2878_v53 = vpop.eup %2877 }
0x1037   : > { %vm1814_vm13 = vmor %vm1812_vm11, %vm1813_vm10  ;;  %v2880_v11 = vpop.eup %2879 }
0x1038   : > { %v1809_v58 = vsub.f32 1.0, %v1808_v55  ;;  %v1826_v13 = vadd.f32 1.0, %v2880_v11 }
0x103a   : > { %v1810_v60 = vmul.f32 %v2876_v52, %v1809_v58  ;;  %2881 = vrcp.f32 %v1826_v13  ;;  %v1838_v33 = vand.u32 2147483648, %v1826_v13  ;;  %vm1832_vm4 = vweird.f32 %v1826_v13 }
0x103b   : > { %v1836_v34 = vand.u32 2147483647, %v1826_v13 }
0x103c   : > { %v1811_v62 = vadd.f32 %v2876_v52, %v1810_v60  ;;  %v1839_v36 = vor.u32 1.1754944e-38, %v1838_v33 }
0x103d   : > { %vm1837_vm7 = vcmp.eq.f32.partialorder %v1836_v34, 8.507059e+37  ;;  %v1988_v34 = vld [vmem:[#allocation5 + $0x8] sm:$0x3] }
0x103e   : > { %v1815_v56 = vsel %vm1814_vm13, %v2876_v52, %v1811_v62 }
0x103f   : > { %v1820_v57 = vsel %vm1817_vm14, %v1819_v63, %v1815_v56 }
0x1040   : > { %v1849_v5 = vmul.f32 %v2878_v53, %v1820_v57  ;;  %v2882_v20 = vpop.eup %2881  ;;  %v1848_v29 = vmul.f32 %v1846_v27, %v1820_v57  ;;  %v1987_v27 = vld [vmem:[#allocation5 + $0x18] sm:$0x3] }
0x1041   : > { %v1828_v24 = vmul.f32 %v2882_v20, %v1826_v13  ;;  %vm1833_vm3 = vweird.f32 %v2882_v20 }
0x1042   : > { %1851 = vrot.lane.b32.xlu2 %v1849_v5, %s2954_s14  ;;  %vm1834_vm5 = vmor %vm1832_vm4, %vm1833_vm3 }
0x1043   : > { %v1829_v26 = vsub.f32 1.0, %v1828_v24 }
0x1045   : > { %v1830_v28 = vmul.f32 %v2882_v20, %v1829_v26 }
0x1047   : > { %v1831_v32 = vadd.f32 %v2882_v20, %v1830_v28 }
0x1049   : > { %v1835_v35 = vsel %vm1834_vm5, %v2882_v20, %v1831_v32 }
0x104a   : > { %v1840_v2 = vsel %vm1837_vm7, %v1839_v36, %v1835_v35 }
0x109c   : > { %v1852_v30 = vpop.permute.xlu2 %1851 }
0x109d   : > { %v1854_v31 = vadd.f32 %v1852_v30, %v1848_v29 }
0x109f   : > { %2883 = vtanh.f32 %v1854_v31  ;;  %1858 = vrot.lane.b32.xlu1 %v1854_v31, %s2954_s14 }
0x10a5   : > { %v2884_v1 = vpop.eup %2883 }
0x10a6   : > { %v1856_v3 = vmul.f32 %v2884_v1, %v1840_v2 }
0x10a8   : > { %1863 = vrot.lane.b32.xlu0 %v1856_v3, %s2954_s14 }
0x1111   : > { %v1859_v4 = vpop.permute.xlu1 %1858 }
0x1112   : > { %1861 = vst.msk [vmem:[#allocation3 - $0x4] sm:$0x30] %vm821_vm15, %v1859_v4 }
0x1119   : > { %v1961_v39 = vld [vmem:[#allocation3] sm:$0x3] }
0x111a   : > { %v1864_v40 = vpop.permute.xlu0 %1863  ;;  %v1963_v41 = vrot.slane %v1961_v39, 2 }
0x111b   : > { %1867 = vst.msk [vmem:[#allocation4] sm:$0x30] %vm821_vm15, %v1864_v40 }
0x111c   : > { %1866 = vst.msk [vmem:[#allocation2 - $0x4] sm:$0x30] %vm821_vm15, %v1864_v40  ;;  %1964 = vrot.lane.b32.xlu2 %v1963_v41, %s2954_s14 }
0x1123   : > { %v1870_v42 = vld [vmem:[#allocation2] sm:$0x3] }
0x1124   : > { %2712 = vmatmul.msk.f32.vlgmr.msra.gmra.mxu2 %vm479_vm2, %v1870_v42  ;;  %2713 = vmatmul.msk.f32.vlgmr.msra.gmra.mxu3 %vm479_vm2, %v1870_v42 }
0x1125   : > { %2351 = vmatpush.msra.mxu2 %v3332_v6  ;;  %2371 = vmatpush.msra.mxu3 %v3335_v8 }
0x1127   : > { %2352 = vmatpush.msra.mxu2 %v3338_v9  ;;  %2372 = vmatpush.msra.mxu3 %v3343_v10  ;;  %v1868_v9 = vld [vmem:[#allocation5 + $0x10] sm:$0xc0] }
0x1129   : > { %2353 = vmatpush.msra.mxu2 %v3346_v12  ;;  %2373 = vmatpush.msra.mxu3 %v3349_v14 }
0x112b   : > { %2354 = vmatpush.msra.mxu2 %v3362_v15  ;;  %2374 = vmatpush.msra.mxu3 %v3365_v16 }
0x112d   : > { %2355 = vmatpush.msra.mxu2 %v3370_v17  ;;  %2375 = vmatpush.msra.mxu3 %v3373_v18  ;;  %v1869_v18 = vld [vmem:[#allocation5] sm:$0xc0] }
0x112f   : > { %2356 = vmatpush.msra.mxu2 %v3376_v19  ;;  %2376 = vmatpush.msra.mxu3 %v3383_v21 }
0x1131   : > { %2357 = vmatpush.msra.mxu2 %v3386_v22  ;;  %2377 = vmatpush.msra.mxu3 %v3389_v23 }
0x1133   : > { %2358 = vmatpush.msra.mxu2 %v3400_v37  ;;  %2378 = vmatpush.msra.mxu3 %v3403_v38 }
0x1176   : > { %v1965_v55 = vpop.permute.xlu2 %1964 }
0x11a7   : > { %v1891_v6 = vpop.f32.mrf.mxu2  ;;  %v1911_v16 = vpop.f32.mrf.mxu3 }
0x11a8   : > { %v1916_v8 = vrot.slane %v1891_v6, 2  ;;  %v1917_v17 = vrot.slane %v1911_v16, 2 }
0x11aa   : > { %v1920_v10 = vadd.f32 %v1916_v8, %v1868_v9  ;;  %v1921_v21 = vadd.f32 %v1917_v17, %v1869_v18 }
0x11ac   : > { %v2714_v12 = vmul.f32 -1.442695, %v1920_v10  ;;  %v2715_v48 = vmul.f32 -1.442695, %v1921_v21 }
0x11ae   : > { %2885 = vpow2.f32 %v2714_v12 }
0x11b4   : > { %v2886_v14 = vpop.eup %2885 }
0x11b5   : > { %v1925_v15 = vadd.f32 1.0, %v2886_v14 }
0x11b7   : > { %2887 = vrcp.f32 %v1925_v15  ;;  %v1937_v37 = vand.u32 2147483648, %v1925_v15  ;;  %v1935_v38 = vand.u32 2147483647, %v1925_v15  ;;  %vm1931_vm9 = vweird.f32 %v1925_v15 }
0x11b8   : > { %2889 = vtanh.f32 %v1921_v21 }
0x11b9   : > { %v1938_v44 = vor.u32 1.1754944e-38, %v1937_v37  ;;  %vm1936_vm11 = vcmp.eq.f32.partialorder %v1935_v38, 8.507059e+37  ;;  %2891 = vpow2.f32 %v2715_v48 }
0x11bd   : > { %v2888_v19 = vpop.eup %2887 }
0x11be   : > { %v1927_v22 = vmul.f32 %v2888_v19, %v1925_v15  ;;  %vm1932_vm8 = vweird.f32 %v2888_v19  ;;  %v2890_v46 = vpop.eup %2889 }
0x11bf   : > { %vm1933_vm10 = vmor %vm1931_vm9, %vm1932_vm8  ;;  %v2892_v49 = vpop.eup %2891 }
0x11c0   : > { %v1928_v23 = vsub.f32 1.0, %v1927_v22  ;;  %v1945_v50 = vadd.f32 1.0, %v2892_v49 }
0x11c2   : > { %v1929_v43 = vmul.f32 %v2888_v19, %v1928_v23  ;;  %2893 = vrcp.f32 %v1945_v50  ;;  %v1957_v63 = vand.u32 2147483648, %v1945_v50  ;;  %vm1951_vm14 = vweird.f32 %v1945_v50 }
0x11c3   : > { %v1955_v56 = vand.u32 2147483647, %v1945_v50 }
0x11c4   : > { %v1930_v0 = vadd.f32 %v2888_v19, %v1929_v43  ;;  %v1958_v57 = vor.u32 1.1754944e-38, %v1957_v63 }
0x11c5   : > { %vm1956_vm4 = vcmp.eq.f32.partialorder %v1955_v56, 8.507059e+37  ;;  %v2100_v56 = vld [vmem:[#allocation5 + $0x8] sm:$0xc] }
0x11c6   : > { %v1934_v45 = vsel %vm1933_vm10, %v2888_v19, %v1930_v0 }
0x11c7   : > { %v1939_v47 = vsel %vm1936_vm11, %v1938_v44, %v1934_v45 }
0x11c8   : > { %v1968_v25 = vmul.f32 %v2890_v46, %v1939_v47  ;;  %v2894_v51 = vpop.eup %2893  ;;  %v1967_v59 = vmul.f32 %v1965_v55, %v1939_v47  ;;  %v2099_v55 = vld [vmem:[#allocation5 + $0x18] sm:$0xc] }
0x11c9   : > { %v1947_v52 = vmul.f32 %v2894_v51, %v1945_v50  ;;  %vm1952_vm13 = vweird.f32 %v2894_v51 }
0x11ca   : > { %1970 = vrot.lane.b32.xlu0 %v1968_v25, %s2954_s14  ;;  %vm1953_vm3 = vmor %vm1951_vm14, %vm1952_vm13 }
0x11cb   : > { %v1948_v54 = vsub.f32 1.0, %v1947_v52 }
0x11cd   : > { %v1949_v58 = vmul.f32 %v2894_v51, %v1948_v54 }
0x11cf   : > { %v1950_v62 = vadd.f32 %v2894_v51, %v1949_v58 }
0x11d1   : > { %v1954_v53 = vsel %vm1953_vm3, %v2894_v51, %v1950_v62 }
0x11d2   : > { %v1959_v7 = vsel %vm1956_vm4, %v1958_v57, %v1954_v53 }
0x123c   : > { %v1971_v60 = vpop.permute.xlu0 %1970 }
0x123d   : > { %v1973_v61 = vadd.f32 %v1971_v60, %v1967_v59 }
0x123f   : > { %2895 = vtanh.f32 %v1973_v61  ;;  %1977 = vrot.lane.b32.xlu2 %v1973_v61, %s2954_s14 }
0x1245   : > { %v2896_v5 = vpop.eup %2895 }
0x1246   : > { %v1975_v11 = vmul.f32 %v2896_v5, %v1959_v7 }
0x1248   : > { %1982 = vrot.lane.b32.xlu1 %v1975_v11, %s2954_s14 }
0x1299   : > { %v1978_v13 = vpop.permute.xlu2 %1977 }
0x129a   : > { %1980 = vst.msk [vmem:[#allocation3 - $0x6] sm:$0xc0] %vm941_vm12, %v1978_v13 }
0x12a1   : > { %v2074_v20 = vld [vmem:[#allocation3] sm:$0x3] }
0x12a2   : > { %2076 = vrot.lane.b32.xlu0 %v2074_v20, %s2954_s14 }
0x12ba   : > { %v1983_v24 = vpop.permute.xlu1 %1982 }
0x12bb   : > { %1986 = vst.msk [vmem:[#allocation4] sm:$0xc0] %vm941_vm12, %v1983_v24 }
0x12bc   : > { %1985 = vst.msk [vmem:[#allocation2 - $0x6] sm:$0xc0] %vm941_vm12, %v1983_v24 }
0x12c3   : > { %v1989_v26 = vld [vmem:[#allocation2] sm:$0x3] }
0x12c4   : > { %2716 = vmatmul.msk.f32.vlgmr.msra.gmra.mxu0 %vm479_vm2, %v1989_v26  ;;  %2717 = vmatmul.msk.f32.vlgmr.msra.gmra.mxu1 %vm479_vm2, %v1989_v26 }
0x1314   : > { %v2077_v18 = vpop.permute.xlu0 %2076 }
0x1341   : > { %v2010_v28 = vpop.f32.mrf.mxu0  ;;  %v2030_v33 = vpop.f32.mrf.mxu1 }
0x1342   : > { %v2033_v29 = vadd.f32 %v2010_v28, %v1987_v27  ;;  %v2034_v36 = vadd.f32 %v2030_v33, %v1988_v34 }
0x1344   : > { %v2718_v30 = vmul.f32 -1.442695, %v2033_v29  ;;  %v2719_v10 = vmul.f32 -1.442695, %v2034_v36 }
0x1346   : > { %2897 = vpow2.f32 %v2718_v30 }
0x134c   : > { %v2898_v31 = vpop.eup %2897 }
0x134d   : > { %v2038_v32 = vadd.f32 1.0, %v2898_v31 }
0x134f   : > { %2899 = vrcp.f32 %v2038_v32  ;;  %v2050_v3 = vand.u32 2147483648, %v2038_v32  ;;  %v2048_v39 = vand.u32 2147483647, %v2038_v32  ;;  %vm2044_vm7 = vweird.f32 %v2038_v32 }
0x1350   : > { %2901 = vtanh.f32 %v2034_v36 }
0x1351   : > { %v2051_v41 = vor.u32 1.1754944e-38, %v2050_v3  ;;  %vm2049_vm9 = vcmp.eq.f32.partialorder %v2048_v39, 8.507059e+37  ;;  %2903 = vpow2.f32 %v2719_v10 }
0x1355   : > { %v2900_v35 = vpop.eup %2899 }
0x1356   : > { %v2040_v1 = vmul.f32 %v2900_v35, %v2038_v32  ;;  %vm2045_vm5 = vweird.f32 %v2900_v35  ;;  %v2902_v6 = vpop.eup %2901 }
0x1357   : > { %vm2046_vm8 = vmor %vm2044_vm7, %vm2045_vm5  ;;  %v2904_v12 = vpop.eup %2903 }
0x1358   : > { %v2041_v2 = vsub.f32 1.0, %v2040_v1  ;;  %v2058_v14 = vadd.f32 1.0, %v2904_v12 }
0x135a   : > { %v2042_v4 = vmul.f32 %v2900_v35, %v2041_v2  ;;  %2905 = vrcp.f32 %v2058_v14  ;;  %v2070_v43 = vand.u32 2147483648, %v2058_v14  ;;  %vm2064_vm11 = vweird.f32 %v2058_v14 }
0x135b   : > { %v2068_v38 = vand.u32 2147483647, %v2058_v14 }
0x135c   : > { %v2043_v40 = vadd.f32 %v2900_v35, %v2042_v4  ;;  %v2071_v44 = vor.u32 1.1754944e-38, %v2070_v43 }
0x135d   : > { %vm2069_vm14 = vcmp.eq.f32.partialorder %v2068_v38, 8.507059e+37 }
0x135e   : > { %v2047_v42 = vsel %vm2046_vm8, %v2900_v35, %v2043_v40 }
0x135f   : > { %v2052_v8 = vsel %vm2049_vm9, %v2051_v41, %v2047_v42 }
0x1360   : > { %v2080_v9 = vmul.f32 %v2902_v6, %v2052_v8  ;;  %v2906_v15 = vpop.eup %2905  ;;  %v2079_v21 = vmul.f32 %v2077_v18, %v2052_v8  ;;  %v2461_v18 = vld [vmem:[%s381_s29 + $0x18] sm:$0xff] }
0x1361   : > { %v2060_v16 = vmul.f32 %v2906_v15, %v2058_v14  ;;  %vm2065_vm10 = vweird.f32 %v2906_v15  ;;  %v2465_v14 = vld [vmem:[%s381_s29 + $0x38] sm:$0xff] }
0x1362   : > { %2082 = vrot.lane.b32.xlu1 %v2080_v9, %s2954_s14  ;;  %vm2066_vm13 = vmor %vm2064_vm11, %vm2065_vm10  ;;  %2484 = vmatpush.msra.mxu0 %v2465_v14 }
0x1363   : > { %v2061_v17 = vsub.f32 1.0, %v2060_v16  ;;  %v2463_v16 = vld [vmem:[%s381_s29 + $0x28] sm:$0xff] }
0x1365   : > { %v2062_v19 = vmul.f32 %v2906_v15, %v2061_v17  ;;  %v2462_v17 = vld [vmem:[%s381_s29 + $0x20] sm:$0xff] }
0x1367   : > { %v2063_v37 = vadd.f32 %v2906_v15, %v2062_v19  ;;  %v2460_v19 = vld [vmem:[%s381_s29 + $0x10] sm:$0xff] }
0x1369   : > { %v2067_v0 = vsel %vm2066_vm13, %v2906_v15, %v2063_v37  ;;  %v2464_v15 = vld [vmem:[%s381_s29 + $0x30] sm:$0xff] }
0x136a   : > { %v2072_v46 = vsel %vm2069_vm14, %v2071_v44, %v2067_v0  ;;  %2485 = vmatpush.msra.mxu0 %v2464_v15  ;;  %v2456_v44 = vld [vmem:[#allocation4] sm:$0xff] }
0x136c   : > { %2486 = vmatpush.msra.mxu0 %v2463_v16  ;;  %v2337_v16 = vld [vmem:[#allocation5 + $0x18] sm:$0xc0] }
0x136e   : > { %2487 = vmatpush.msra.mxu0 %v2462_v17 }
0x1370   : > { %2488 = vmatpush.msra.mxu0 %v2461_v18 }
0x1372   : > { %2489 = vmatpush.msra.mxu0 %v2460_v19 }
0x13d4   : > { %v2083_v22 = vpop.permute.xlu1 %2082 }
0x13d5   : > { %v2085_v23 = vadd.f32 %v2083_v22, %v2079_v21  ;;  %v2459_v21 = vld [vmem:[%s381_s29 + $0x8] sm:$0xff]  ;;  %v2458_v22 = vld [vmem:[%s381_s29] sm:$0xff] }
0x13d6   : > { %2490 = vmatpush.msra.mxu0 %v2459_v21 }
0x13d7   : > { %2907 = vtanh.f32 %v2085_v23  ;;  %2089 = vrot.lane.b32.xlu0 %v2085_v23, %s2954_s14 }
0x13d8   : > { %2491 = vmatpush.msra.mxu0 %v2458_v22 }
0x13dd   : > { %v2908_v45 = vpop.eup %2907 }
0x13de   : > { %v2087_v47 = vmul.f32 %v2908_v45, %v2072_v46 }
0x13e0   : > { %2094 = vrot.lane.b32.xlu2 %v2087_v47, %s2954_s14  ;;  %v2218_v47 = vld [vmem:[#allocation5 + $0x18] sm:$0x30] }
0x143a   : > { %v2095_v25 = vpop.permute.xlu2 %2094 }
0x143b   : > { %2098 = vst.msk [vmem:[#allocation4 + $0x8] sm:$0x3] %vm407_vm0, %v2095_v25 }
0x143c   : > { %2097 = vst.msk [vmem:[#allocation2] sm:$0x3] %vm407_vm0, %v2095_v25 }
0x1443   : > { %v2101_v48 = vld [vmem:[#allocation2] sm:$0x3] }
0x1444   : > { %2720 = vmatmul.msk.f32.vlgmr.msrb.gmra.mxu2 %vm479_vm2, %v2101_v48  ;;  %2721 = vmatmul.msk.f32.vlgmr.msrb.gmra.mxu3 %vm479_vm2, %v2101_v48 }
0x1449   : > { %v2090_v49 = vpop.permute.xlu0 %2089 }
0x144a   : > { %2092 = vst.msk [vmem:[#allocation3] sm:$0x3] %vm407_vm0, %v2090_v49  ;;  %v3586_v49 = vld [vmem:[%s384_s9] ss:$0 sm:$0xff] }
0x1451   : > { %v2192_v50 = vld [vmem:[#allocation3] sm:$0x3] }
0x1452   : > { %v2194_v51 = vrot.slane %v2192_v50, 6 }
0x1454   : > { %2195 = vrot.lane.b32.xlu1 %v2194_v51, %s2954_s14 }
0x14c6   : > { %v2196_v1 = vpop.permute.xlu1 %2195 }
0x14c7   : > { %v2122_v52 = vpop.f32.mrf.mxu2  ;;  %v2142_v62 = vpop.f32.mrf.mxu3 }
0x14c8   : > { %v2147_v54 = vrot.slane %v2122_v52, 6  ;;  %v2148_v63 = vrot.slane %v2142_v62, 6 }
0x14ca   : > { %v2151_v58 = vadd.f32 %v2147_v54, %v2099_v55  ;;  %v2152_v57 = vadd.f32 %v2148_v63, %v2100_v56 }
0x14cc   : > { %v2722_v59 = vmul.f32 -1.442695, %v2151_v58  ;;  %v2723_v31 = vmul.f32 -1.442695, %v2152_v57 }
0x14ce   : > { %2909 = vpow2.f32 %v2722_v59  ;;  %v2219_v59 = vld [vmem:[#allocation5 + $0x8] sm:$0x30] }
0x14d4   : > { %v2910_v60 = vpop.eup %2909 }
0x14d5   : > { %v2156_v61 = vadd.f32 1.0, %v2910_v60 }
0x14d7   : > { %2911 = vrcp.f32 %v2156_v61  ;;  %v2168_v11 = vand.u32 2147483648, %v2156_v61  ;;  %v2166_v20 = vand.u32 2147483647, %v2156_v61  ;;  %vm2162_vm3 = vweird.f32 %v2156_v61 }
0x14d8   : > { %2913 = vtanh.f32 %v2152_v57 }
0x14d9   : > { %v2169_v26 = vor.u32 1.1754944e-38, %v2168_v11  ;;  %vm2167_vm5 = vcmp.eq.f32.partialorder %v2166_v20, 8.507059e+37  ;;  %2915 = vpow2.f32 %v2723_v31 }
0x14dd   : > { %v2912_v53 = vpop.eup %2911 }
0x14de   : > { %v2158_v5 = vmul.f32 %v2912_v53, %v2156_v61  ;;  %vm2163_vm0 = vweird.f32 %v2912_v53  ;;  %v2914_v28 = vpop.eup %2913 }
0x14df   : > { %vm2164_vm4 = vmor %vm2162_vm3, %vm2163_vm0  ;;  %v2916_v32 = vpop.eup %2915 }
0x14e0   : > { %v2159_v7 = vsub.f32 1.0, %v2158_v5  ;;  %v2176_v33 = vadd.f32 1.0, %v2916_v32 }
0x14e2   : > { %v2160_v13 = vmul.f32 %v2912_v53, %v2159_v7  ;;  %2917 = vrcp.f32 %v2176_v33  ;;  %v2188_v41 = vand.u32 2147483648, %v2176_v33  ;;  %vm2182_vm8 = vweird.f32 %v2176_v33 }
0x14e3   : > { %v2186_v42 = vand.u32 2147483647, %v2176_v33 }
0x14e4   : > { %v2161_v24 = vadd.f32 %v2912_v53, %v2160_v13  ;;  %v2189_v8 = vor.u32 1.1754944e-38, %v2188_v41 }
0x14e5   : > { %vm2187_vm10 = vcmp.eq.f32.partialorder %v2186_v42, 8.507059e+37 }
0x14e6   : > { %v2165_v27 = vsel %vm2164_vm4, %v2912_v53, %v2161_v24 }
0x14e7   : > { %v2170_v29 = vsel %vm2167_vm5, %v2169_v26, %v2165_v27 }
0x14e8   : > { %v2199_v30 = vmul.f32 %v2914_v28, %v2170_v29  ;;  %v2918_v34 = vpop.eup %2917  ;;  %v2198_v3 = vmul.f32 %v2196_v1, %v2170_v29 }
0x14e9   : > { %v2178_v35 = vmul.f32 %v2918_v34, %v2176_v33  ;;  %vm2183_vm7 = vweird.f32 %v2918_v34 }
0x14ea   : > { %2201 = vrot.lane.b32.xlu2 %v2199_v30, %s2954_s14  ;;  %vm2184_vm9 = vmor %vm2182_vm8, %vm2183_vm7 }
0x14eb   : > { %v2179_v36 = vsub.f32 1.0, %v2178_v35 }
0x14ed   : > { %v2180_v2 = vmul.f32 %v2918_v34, %v2179_v36 }
0x14ef   : > { %v2181_v40 = vadd.f32 %v2918_v34, %v2180_v2 }
0x14f1   : > { %v2185_v6 = vsel %vm2184_vm9, %v2918_v34, %v2181_v40 }
0x14f2   : > { %v2190_v10 = vsel %vm2187_vm10, %v2189_v8, %v2185_v6 }
0x1544   : > { %v2202_v4 = vpop.permute.xlu2 %2201 }
0x1545   : > { %v2204_v39 = vadd.f32 %v2202_v4, %v2198_v3 }
0x1547   : > { %2919 = vtanh.f32 %v2204_v39  ;;  %2208 = vrot.lane.b32.xlu1 %v2204_v39, %s2954_s14 }
0x154d   : > { %v2920_v9 = vpop.eup %2919 }
0x154e   : > { %v2206_v12 = vmul.f32 %v2920_v9, %v2190_v10 }
0x1550   : > { %2213 = vrot.lane.b32.xlu0 %v2206_v12, %s2954_s14 }
0x15b9   : > { %v2209_v23 = vpop.permute.xlu1 %2208 }
0x15ba   : > { %2211 = vst.msk [vmem:[#allocation3 - $0x2] sm:$0xc] %vm701_vm6, %v2209_v23 }
0x15c1   : > { %v2311_v37 = vld [vmem:[#allocation3] sm:$0x3] }
0x15c2   : > { %v2214_v43 = vpop.permute.xlu0 %2213  ;;  %v2313_v38 = vrot.slane %v2311_v37, 4  ;;  %v2338_v37 = vld [vmem:[#allocation5 + $0x8] sm:$0xc0] }
0x15c3   : > { %2217 = vst.msk [vmem:[#allocation4 + $0x8] sm:$0xc] %vm701_vm6, %v2214_v43 }
0x15c4   : > { %2216 = vst.msk [vmem:[#allocation2 - $0x2] sm:$0xc] %vm701_vm6, %v2214_v43  ;;  %2314 = vrot.lane.b32.xlu2 %v2313_v38, %s2954_s14 }
0x15cb   : > { %v2220_v0 = vld [vmem:[#allocation2] sm:$0x3] }
0x15cc   : > { %2724 = vmatmul.msk.f32.vlgmr.msrb.gmra.mxu0 %vm479_vm2, %v2220_v0  ;;  %2725 = vmatmul.msk.f32.vlgmr.msrb.gmra.mxu1 %vm479_vm2, %v2220_v0 }
0x15d4   : > { %2732 = vmatmul.msk.f32.vlgmr.msra.gmra.mxu0 %vm479_vm2, %v2456_v44 }
0x161e   : > { %v2315_v32 = vpop.permute.xlu2 %2314 }
0x1649   : > { %v2241_v45 = vpop.f32.mrf.mxu0  ;;  %v2261_v55 = vpop.f32.mrf.mxu1 }
0x164a   : > { %v2266_v46 = vrot.slane %v2241_v45, 4  ;;  %v2267_v58 = vrot.slane %v2261_v55, 4 }
0x164c   : > { %v2270_v25 = vadd.f32 %v2266_v46, %v2218_v47  ;;  %v2271_v61 = vadd.f32 %v2267_v58, %v2219_v59 }
0x164e   : > { %v2726_v48 = vmul.f32 -1.442695, %v2270_v25  ;;  %v2727_v26 = vmul.f32 -1.442695, %v2271_v61 }
0x1650   : > { %2921 = vpow2.f32 %v2726_v48 }
0x1651   : > { %v2493_v50 = vpop.f32.mrf.mxu0 }
0x1652   : > { %v2494_v51 = vadd.f32 %v3586_v49, %v2493_v50 }
0x1654   : > { %2499 = vst.msk [vmem:[%s3592_s12] sm:$0xff] %vm419_vm1, %v2494_v51 }
0x1656   : > { %v2922_v52 = vpop.eup %2921 }
0x1657   : > { %v2275_v54 = vadd.f32 1.0, %v2922_v52 }
0x1659   : > { %2923 = vrcp.f32 %v2275_v54  ;;  %v2287_v56 = vand.u32 2147483648, %v2275_v54  ;;  %v2285_v57 = vand.u32 2147483647, %v2275_v54  ;;  %vm2281_vm11 = vweird.f32 %v2275_v54 }
0x165a   : > { %2925 = vtanh.f32 %v2271_v61 }
0x165b   : > { %v2288_v7 = vor.u32 1.1754944e-38, %v2287_v56  ;;  %vm2286_vm14 = vcmp.eq.f32.partialorder %v2285_v57, 8.507059e+37  ;;  %2927 = vpow2.f32 %v2727_v26 }
0x165f   : > { %v2924_v60 = vpop.eup %2923 }
0x1660   : > { %v2277_v62 = vmul.f32 %v2924_v60, %v2275_v54  ;;  %vm2282_vm6 = vweird.f32 %v2924_v60  ;;  %v2926_v13 = vpop.eup %2925 }
0x1661   : > { %vm2283_vm13 = vmor %vm2281_vm11, %vm2282_vm6  ;;  %v2928_v27 = vpop.eup %2927 }
0x1662   : > { %v2278_v63 = vsub.f32 1.0, %v2277_v62  ;;  %v2295_v28 = vadd.f32 1.0, %v2928_v27 }
0x1664   : > { %v2279_v53 = vmul.f32 %v2924_v60, %v2278_v63  ;;  %2929 = vrcp.f32 %v2295_v28  ;;  %v2307_v2 = vand.u32 2147483648, %v2295_v28  ;;  %vm2301_vm3 = vweird.f32 %v2295_v28 }
0x1665   : > { %v2305_v3 = vand.u32 2147483647, %v2295_v28 }
0x1666   : > { %v2280_v5 = vadd.f32 %v2924_v60, %v2279_v53  ;;  %v2308_v39 = vor.u32 1.1754944e-38, %v2307_v2 }
0x1667   : > { %vm2306_vm5 = vcmp.eq.f32.partialorder %v2305_v3, 8.507059e+37 }
0x1668   : > { %v2284_v11 = vsel %vm2283_vm13, %v2924_v60, %v2280_v5 }
0x1669   : > { %v2289_v20 = vsel %vm2286_vm14, %v2288_v7, %v2284_v11 }
0x166a   : > { %v2318_v24 = vmul.f32 %v2926_v13, %v2289_v20  ;;  %v2930_v29 = vpop.eup %2929  ;;  %v2317_v34 = vmul.f32 %v2315_v32, %v2289_v20 }
0x166b   : > { %v2297_v30 = vmul.f32 %v2930_v29, %v2295_v28  ;;  %vm2302_vm0 = vweird.f32 %v2930_v29 }
0x166c   : > { %2320 = vrot.lane.b32.xlu0 %v2318_v24, %s2954_s14  ;;  %vm2303_vm4 = vmor %vm2301_vm3, %vm2302_vm0 }
0x166d   : > { %v2298_v31 = vsub.f32 1.0, %v2297_v30 }
0x166f   : > { %v2299_v33 = vmul.f32 %v2930_v29, %v2298_v31 }
0x1671   : > { %v2300_v1 = vadd.f32 %v2930_v29, %v2299_v33 }
0x1673   : > { %v2304_v4 = vsel %vm2303_vm4, %v2930_v29, %v2300_v1 }
0x1674   : > { %v2309_v41 = vsel %vm2306_vm5, %v2308_v39, %v2304_v4 }
0x16de   : > { %v2321_v35 = vpop.permute.xlu0 %2320 }
0x16df   : > { %v2323_v36 = vadd.f32 %v2321_v35, %v2317_v34 }
0x16e1   : > { %2931 = vtanh.f32 %v2323_v36  ;;  %2327 = vrot.lane.b32.xlu2 %v2323_v36, %s2954_s14 }
0x16e7   : > { %v2932_v40 = vpop.eup %2931 }
0x16e8   : > { %v2325_v42 = vmul.f32 %v2932_v40, %v2309_v41 }
0x16ea   : > { %2332 = vrot.lane.b32.xlu1 %v2325_v42, %s2954_s14 }
0x173b   : > { %v2328_v6 = vpop.permute.xlu2 %2327 }
0x173c   : > { %2330 = vst.msk [vmem:[#allocation3 - $0x4] sm:$0x30] %vm821_vm15, %v2328_v6 }
0x1743   : > { %v2430_v8 = vld [vmem:[#allocation3] sm:$0x3] }
0x1744   : > { %v2432_v9 = vrot.slane %v2430_v8, 2 }
0x1746   : > { %2433 = vrot.lane.b32.xlu0 %v2432_v9, %s2954_s14 }
0x175c   : > { %v2333_v10 = vpop.permute.xlu1 %2332 }
0x175d   : > { %2336 = vst.msk [vmem:[#allocation4 + $0x8] sm:$0x30] %vm821_vm15, %v2333_v10 }
0x175e   : > { %2335 = vst.msk [vmem:[#allocation2 - $0x4] sm:$0x30] %vm821_vm15, %v2333_v10 }
0x1765   : > { %v2339_v12 = vld [vmem:[#allocation2] sm:$0x3] }
0x1766   : > { %2728 = vmatmul.msk.f32.vlgmr.msra.gmra.mxu2 %vm479_vm2, %v2339_v12  ;;  %2729 = vmatmul.msk.f32.vlgmr.msra.gmra.mxu3 %vm479_vm2, %v2339_v12 }
0x17b8   : > { %v2434_v63 = vpop.permute.xlu0 %2433 }
0x17e9   : > { %v2360_v14 = vpop.f32.mrf.mxu2  ;;  %v2380_v22 = vpop.f32.mrf.mxu3 }
0x17ea   : > { %v2385_v15 = vrot.slane %v2360_v14, 2  ;;  %v2386_v23 = vrot.slane %v2380_v22, 2 }
0x17ec   : > { %v2389_v17 = vadd.f32 %v2385_v15, %v2337_v16  ;;  %v2390_v38 = vadd.f32 %v2386_v23, %v2338_v37 }
0x17ee   : > { %v2730_v18 = vmul.f32 -1.442695, %v2389_v17  ;;  %v2731_v55 = vmul.f32 -1.442695, %v2390_v38 }
0x17f0   : > { %2933 = vpow2.f32 %v2730_v18 }
0x17f6   : > { %v2934_v19 = vpop.eup %2933 }
0x17f7   : > { %v2394_v21 = vadd.f32 1.0, %v2934_v19 }
0x17f9   : > { %2935 = vrcp.f32 %v2394_v21  ;;  %v2406_v45 = vand.u32 2147483648, %v2394_v21  ;;  %v2404_v47 = vand.u32 2147483647, %v2394_v21  ;;  %vm2400_vm7 = vweird.f32 %v2394_v21 }
0x17fa   : > { %2937 = vtanh.f32 %v2390_v38 }
0x17fb   : > { %v2407_v48 = vor.u32 1.1754944e-38, %v2406_v45  ;;  %vm2405_vm9 = vcmp.eq.f32.partialorder %v2404_v47, 8.507059e+37  ;;  %2939 = vpow2.f32 %v2731_v55 }
0x17ff   : > { %v2936_v43 = vpop.eup %2935 }
0x1800   : > { %v2396_v0 = vmul.f32 %v2936_v43, %v2394_v21  ;;  %vm2401_vm15 = vweird.f32 %v2936_v43  ;;  %v2938_v51 = vpop.eup %2937 }
0x1801   : > { %vm2402_vm8 = vmor %vm2400_vm7, %vm2401_vm15  ;;  %v2940_v58 = vpop.eup %2939 }
0x1802   : > { %v2397_v44 = vsub.f32 1.0, %v2396_v0  ;;  %v2414_v59 = vadd.f32 1.0, %v2940_v58 }
0x1804   : > { %v2398_v46 = vmul.f32 %v2936_v43, %v2397_v44  ;;  %2941 = vrcp.f32 %v2414_v59  ;;  %v2426_v11 = vand.u32 2147483648, %v2414_v59  ;;  %vm2420_vm6 = vweird.f32 %v2414_v59 }
0x1805   : > { %v2424_v13 = vand.u32 2147483647, %v2414_v59 }
0x1806   : > { %v2399_v25 = vadd.f32 %v2936_v43, %v2398_v46  ;;  %v2427_v24 = vor.u32 1.1754944e-38, %v2426_v11 }
0x1807   : > { %vm2425_vm13 = vcmp.eq.f32.partialorder %v2424_v13, 8.507059e+37 }
0x1808   : > { %v2403_v50 = vsel %vm2402_vm8, %v2936_v43, %v2399_v25 }
0x1809   : > { %v2408_v52 = vsel %vm2405_vm9, %v2407_v48, %v2403_v50 }
0x180a   : > { %v2437_v54 = vmul.f32 %v2938_v51, %v2408_v52  ;;  %v2942_v60 = vpop.eup %2941  ;;  %v2436_v53 = vmul.f32 %v2434_v63, %v2408_v52 }
0x180b   : > { %v2416_v61 = vmul.f32 %v2942_v60, %v2414_v59  ;;  %vm2421_vm10 = vweird.f32 %v2942_v60 }
0x180c   : > { %2439 = vrot.lane.b32.xlu1 %v2437_v54, %s2954_s14  ;;  %vm2422_vm11 = vmor %vm2420_vm6, %vm2421_vm10 }
0x180d   : > { %v2417_v62 = vsub.f32 1.0, %v2416_v61 }
0x180f   : > { %v2418_v56 = vmul.f32 %v2942_v60, %v2417_v62 }
0x1811   : > { %v2419_v7 = vadd.f32 %v2942_v60, %v2418_v56 }
0x1813   : > { %v2423_v20 = vsel %vm2422_vm11, %v2942_v60, %v2419_v7 }
0x1814   : > { %v2428_v27 = vsel %vm2425_vm13, %v2427_v24, %v2423_v20 }
0x187e   : > { %v2440_v57 = vpop.permute.xlu1 %2439 }
0x187f   : > { %v2442_v5 = vadd.f32 %v2440_v57, %v2436_v53 }
0x1881   : > { %2943 = vtanh.f32 %v2442_v5  ;;  %2446 = vrot.lane.b32.xlu0 %v2442_v5, %s2954_s14 }
0x1887   : > { %v2944_v26 = vpop.eup %2943 }
0x1888   : > { %v2444_v28 = vmul.f32 %v2944_v26, %v2428_v27 }
0x188a   : > { %2451 = vrot.lane.b32.xlu2 %v2444_v28, %s2954_s14 }
0x18e4   : > { %v2452_v29 = vpop.permute.xlu2 %2451 }
0x18e5   : > { %2454 = vst.msk [vmem:[#allocation2 - $0x6] sm:$0xc0] %vm941_vm12, %v2452_v29 }
0x18e6   : > { %2455 = vst.msk [vmem:[#allocation4 + $0x8] sm:$0xc0] %vm941_vm12, %v2452_v29 }
0x18ed   : > { %v2457_v30 = vld [vmem:[#allocation4 + $0x8] sm:$0xff] }
0x18ee   : > { %2733 = vmatmul.msk.f32.gmra.mxu0 %vm479_vm2, %v2457_v30 }
0x18f3   : > { %v2447_v31 = vpop.permute.xlu0 %2446 }
0x18f4   : > { %2449 = vst.msk [vmem:[#allocation3 - $0x6] sm:$0xc0] %vm941_vm12, %v2447_v31 }
0x196b   : > { %v2496_v32 = vpop.f32.mrf.mxu0 }
0x196c   : > { %v2497_v33 = vadd.f32 %v3586_v49, %v2496_v32 }
0x196e   : > { %2500 = vst.msk [vmem:[%s3592_s12 + $0x8] sm:$0xff] %vm419_vm1, %v2497_v33 }
0x196f PF: > { %s17_s24 = sadd.s32 1, %s2951_s24  }
0x1970   : > { %p14_p4 = scmp.ge.s32.totalorder %s17_s24, 4  }
0x1972   :  { %16 = sbr.rel (!%p14_p4) target bundleno = 1 (0x1), region = 98 }

</bundles_post_ra>
